<compile_context>
chip_gen: v7x
topology: tpu7x:2x2x1
jax: 0.10.0
libtpu: 0.0.40
codegen_flags: <defaults>
</compile_context>

<pallas_src>
import functools

import jax
import jax.numpy as jnp
from jax import lax
from jax.experimental import pallas as pl
from jax.experimental.pallas import tpu as pltpu


def _round_up(x, m):
    return ((x + m - 1) // m) * m


def _flash_attend_kernel(q_ref, k_ref, v_ref, o_ref,
                         qs_ref, m_ref, l_ref, acc_ref,
                         *, scale, mxu_dtype, n_kv_real, block_k, mask_kv):
    kv = pl.program_id(2)

    @pl.when(kv == 0)
    def _init():
        # Stage q*scale once per q tile (the q block is resident across the kv
        # axis) in the MXU feed dtype -> hoists the per-step VPU multiply.
        qs_ref[...] = (q_ref[...].astype(jnp.float32) * scale).astype(mxu_dtype)
        m_ref[...] = jnp.full_like(m_ref, -jnp.inf)
        l_ref[...] = jnp.zeros_like(l_ref)
        acc_ref[...] = jnp.zeros_like(acc_ref)

    q = qs_ref[...]                                     # (TQ, D) mxu_dtype
    k = k_ref[...].astype(mxu_dtype)                    # (TK, D) mxu_dtype

    # s = q @ k^T, contracting d on both operands (no explicit K transpose).
    s = lax.dot_general(
        q, k,
        dimension_numbers=(((1,), (1,)), ((), ())),
        preferred_element_type=jnp.float32,
    )                                                   # (TQ, TK) f32

    if mask_kv:
        # Mask kv columns that are padding (n was rounded up to a tile multiple).
        col = kv * block_k + lax.broadcasted_iota(jnp.int32, s.shape, 1)
        s = jnp.where(col < n_kv_real, s, jnp.float32(-1e30))

    # Online softmax update.
    m_prev = m_ref[...]
    m_new = jnp.maximum(m_prev, jnp.max(s, axis=-1, keepdims=True))
    alpha = jnp.exp(m_prev - m_new)
    p = jnp.exp(s - m_new)                              # (TQ, TK) f32

    l_ref[...] = alpha * l_ref[...] + jnp.sum(p, axis=-1, keepdims=True)
    acc_ref[...] = alpha * acc_ref[...] + jnp.dot(
        p.astype(mxu_dtype), v_ref[...].astype(mxu_dtype),
        preferred_element_type=jnp.float32,
    )
    m_ref[...] = m_new

    @pl.when(kv == pl.num_programs(2) - 1)
    def _finalize():
        # Normalize once after the PV matmul; approx reciprocal goes to the EUP.
        inv_l = pl.reciprocal(l_ref[...], approx=True)
        o_ref[...] = (acc_ref[...] * inv_l).astype(o_ref.dtype)


def attend(q, k, v, scale=None, dropout=0.0, block_q=256, block_k=512):
    """Pallas TPU equivalent of Attend.forward (non-flash path, eval mode)."""
    if dropout != 0.0:
        # TODO(synk): training-mode attention dropout would need pltpu.prng_seed /
        # prng_random_bits masking of p; eval mode (dropout=0) only for now.
        raise NotImplementedError("attend(): only dropout=0.0 (eval mode) is supported")

    b, h, n, d = q.shape
    if scale is None:
        scale = d ** (-0.5)

    bh = b * h
    # Lane-dense layout: pad head_dim up to a multiple of 128.  Zero padding is
    # exact for both matmuls; padded output columns are sliced off below.
    d_pad = _round_up(d, 128)

    # Sublane-aligned tiles; pad the sequence up to a tile multiple so the s/p
    # intermediates stay bounded even when n is not divisible by the block size.
    tq = min(block_q, _round_up(n, 8))
    tk = min(block_k, _round_up(n, 8))
    n_q_pad = _round_up(n, tq)
    n_k_pad = _round_up(n, tk)
    n_q = n_q_pad // tq
    n_k = n_k_pad // tk
    mask_kv = (n_k_pad != n)

    def _prep(x, n_pad):
        x = x.reshape(bh, n, d)
        if n_pad != n or d_pad != d:
            x = jnp.pad(x, ((0, 0), (0, n_pad - n), (0, d_pad - d)))
        return x

    qf = _prep(q, n_q_pad)
    kf = _prep(k, n_k_pad)
    vf = _prep(v, n_k_pad)

    # Feed the MXU in bf16 (with f32 accumulation) when the caller passes f32.
    mxu_dtype = jnp.bfloat16 if q.dtype == jnp.float32 else q.dtype

    kernel = functools.partial(
        _flash_attend_kernel,
        scale=float(scale), mxu_dtype=mxu_dtype,
        n_kv_real=n, block_k=tk, mask_kv=mask_kv,
    )

    q_spec = pl.BlockSpec((pl.Squeezed(), tq, d_pad), lambda bi, qi, ki: (bi, qi, 0))
    kv_spec = pl.BlockSpec((pl.Squeezed(), tk, d_pad), lambda bi, qi, ki: (bi, ki, 0))
    o_spec = pl.BlockSpec((pl.Squeezed(), tq, d_pad), lambda bi, qi, ki: (bi, qi, 0))

    itemsize = jnp.dtype(q.dtype).itemsize
    mxu_itemsize = jnp.dtype(mxu_dtype).itemsize

    # Explicit VMEM budget: double-buffered q/k/v/o blocks + scratch + a generous
    # allowance for the f32 s/p working set.  Clamped to 64 MiB so the same
    # source stays valid on v7x's per-TC VMEM; also lifts v5e's 16 MiB default.
    block_bytes = 2 * itemsize * d_pad * (2 * tq + 2 * tk)         # q,o + k,v (x2 bufs)
    scratch_bytes = tq * d_pad * (4 + mxu_itemsize) + 2 * tq * 4   # acc + staged q + m,l
    interm_bytes = 6 * tq * tk * 4                                 # s/p intermediates
    vmem_limit = int(min(max(block_bytes + scratch_bytes + interm_bytes + (8 << 20),
                             32 << 20), 64 << 20))

    # bytes_accessed includes the K/V re-stream factor of the kv-innermost schedule.
    cost = pl.CostEstimate(
        flops=4 * bh * n_q_pad * n_k_pad * d_pad,
        transcendentals=bh * n_q_pad * n_k_pad,
        bytes_accessed=bh * itemsize * d_pad * (2 * n_q_pad + 2 * n_q * n_k_pad),
    )

    out = pl.pallas_call(
        kernel,
        out_shape=jax.ShapeDtypeStruct((bh, n_q_pad, d_pad), q.dtype),
        grid_spec=pltpu.PrefetchScalarGridSpec(
            num_scalar_prefetch=0,
            grid=(bh, n_q, n_k),
            in_specs=[q_spec, kv_spec, kv_spec],
            out_specs=o_spec,
            scratch_shapes=[
                pltpu.VMEM((tq, d_pad), mxu_dtype),    # staged q * scale
                pltpu.VMEM((tq, 1), jnp.float32),      # running max m
                pltpu.VMEM((tq, 1), jnp.float32),      # running denom l
                pltpu.VMEM((tq, d_pad), jnp.float32),  # output accumulator
            ],
        ),
        compiler_params=pltpu.CompilerParams(
            dimension_semantics=("parallel", "parallel", "arbitrary"),
            vmem_limit_bytes=vmem_limit,
        ),
        cost_estimate=cost,
    )(qf, kf, vf)

    out = out[:, :n, :d]
    return out.reshape(b, h, n, d)


def attend_reference(q, k, v, scale=None):
    """Pure-JAX reference mirroring the PyTorch forward."""
    if scale is None:
        scale = q.shape[-1] ** (-0.5)
    sim = jnp.einsum("bhid,bhjd->bhij", q, k) * scale
    attn = jax.nn.softmax(sim, axis=-1)
    return jnp.einsum("bhij,bhjd->bhid", attn, v)


if __name__ == "__main__":
    key = jax.random.PRNGKey(0)

    # Case 1: multi-tile flash path, head_dim 64 padded to lane-dense 128.
    b, h, n, d = 2, 4, 256, 64
    kq, kk, kv_ = jax.random.split(key, 3)
    q = jax.random.normal(kq, (b, h, n, d), dtype=jnp.float32)
    k = jax.random.normal(kk, (b, h, n, d), dtype=jnp.float32)
    v = jax.random.normal(kv_, (b, h, n, d), dtype=jnp.float32)

    out = jax.block_until_ready(attend(q, k, v))
    ref = attend_reference(q, k, v)
    assert out.shape == (b, h, n, d)
    assert jnp.allclose(out, ref, atol=2e-2, rtol=2e-2)

    # Case 2: tiny shapes, matching the original module's small-config smoke test.
    b2, h2, n2, d2 = 2, 4, 8, 32
    kq2, kk2, kv2 = jax.random.split(jax.random.PRNGKey(1), 3)
    q2 = jax.random.normal(kq2, (b2, h2, n2, d2), dtype=jnp.float32)
    k2 = jax.random.normal(kk2, (b2, h2, n2, d2), dtype=jnp.float32)
    v2 = jax.random.normal(kv2, (b2, h2, n2, d2), dtype=jnp.float32)

    out2 = jax.block_until_ready(attend(q2, k2, v2))
    ref2 = attend_reference(q2, k2, v2)
    assert out2.shape == (b2, h2, n2, d2)
    assert jnp.allclose(out2, ref2, atol=2e-2, rtol=2e-2)

    # Case 3: non-divisible sequence length -> padded tiles + in-kernel kv mask.
    b3, h3, n3, d3 = 1, 2, 300, 64
    kq3, kk3, kv3 = jax.random.split(jax.random.PRNGKey(2), 3)
    q3 = jax.random.normal(kq3, (b3, h3, n3, d3), dtype=jnp.float32)
    k3 = jax.random.normal(kk3, (b3, h3, n3, d3), dtype=jnp.float32)
    v3 = jax.random.normal(kv3, (b3, h3, n3, d3), dtype=jnp.float32)

    out3 = jax.block_until_ready(attend(q3, k3, v3, block_q=128, block_k=128))
    ref3 = attend_reference(q3, k3, v3)
    assert out3.shape == (b3, h3, n3, d3)
    assert jnp.allclose(out3, ref3, atol=2e-2, rtol=2e-2)

    print("KERNEL_OK")
</pallas_src>

<mosaic_0001>
module attributes {stable_mosaic.version = 11 : i64} {
  func.func @_flash_attend_kernel(%arg0: i32, %arg1: i32, %arg2: i32, %arg3: memref<1x256x128xf32, #tpu.memory_space<vmem>>, %arg4: memref<1x256x128xf32, #tpu.memory_space<vmem>>, %arg5: memref<1x256x128xf32, #tpu.memory_space<vmem>>, %arg6: memref<1x256x128xf32, #tpu.memory_space<vmem>>, %arg7: memref<256x128xbf16, #tpu.memory_space<vmem>>, %arg8: memref<256x1xf32, #tpu.memory_space<vmem>>, %arg9: memref<256x1xf32, #tpu.memory_space<vmem>>, %arg10: memref<256x128xf32, #tpu.memory_space<vmem>>) attributes {dimension_semantics = [#tpu.dimension_semantics<parallel>, #tpu.dimension_semantics<parallel>, #tpu.dimension_semantics<arbitrary>], iteration_bounds = array<i64: 8, 1, 1>, scalar_prefetch = 0 : i64, scratch_operands = 4 : i64, tpu.core_type = #tpu.core_type<tc>, window_params = [{transform_indices = @transform_0, window_bounds = array<i64: 1, 256, 128>}, {transform_indices = @transform_1, window_bounds = array<i64: 1, 256, 128>}, {transform_indices = @transform_2, window_bounds = array<i64: 1, 256, 128>}, {transform_indices = @transform_3, window_bounds = array<i64: 1, 256, 128>}]} {
    %c0_i32 = arith.constant 0 : i32
    %0 = arith.cmpi eq, %arg2, %c0_i32 : i32
    %1 = arith.extui %0 : i1 to i32
    %c0_i32_0 = arith.constant 0 : i32
    %2 = arith.cmpi ne, %1, %c0_i32_0 : i32
    scf.if %2 {
      %c0_25 = arith.constant 0 : index
      %c0_26 = arith.constant 0 : index
      %c0_27 = arith.constant 0 : index
      %37 = vector.load %arg3[%c0_25, %c0_26, %c0_27] : memref<1x256x128xf32, #tpu.memory_space<vmem>>, vector<1x256x128xf32>
      %38 = vector.shape_cast %37 : vector<1x256x128xf32> to vector<256x128xf32>
      %cst_28 = arith.constant 1.250000e-01 : f32
      %39 = vector.broadcast %cst_28 : f32 to vector<256x128xf32>
      %40 = arith.mulf %38, %39 : vector<256x128xf32>
      %41 = arith.truncf %40 : vector<256x128xf32> to vector<256x128xbf16>
      %c0_29 = arith.constant 0 : index
      %c0_30 = arith.constant 0 : index
      %42 = vector.load %arg7[%c0_29, %c0_30] : memref<256x128xbf16, #tpu.memory_space<vmem>>, vector<256x128xbf16>
      tpu.vector_store %arg7[%c0_29, %c0_30], %41 {strides = array<i32>} : memref<256x128xbf16, #tpu.memory_space<vmem>>, vector<256x128xbf16>,
      %cst_31 = arith.constant 0xFF800000 : f32
      %43 = vector.broadcast %cst_31 : f32 to vector<256x1xf32>
      %c0_32 = arith.constant 0 : index
      %c0_33 = arith.constant 0 : index
      %44 = vector.load %arg8[%c0_32, %c0_33] : memref<256x1xf32, #tpu.memory_space<vmem>>, vector<256x1xf32>
      tpu.vector_store %arg8[%c0_32, %c0_33], %43 {strides = array<i32>} : memref<256x1xf32, #tpu.memory_space<vmem>>, vector<256x1xf32>,
      %cst_34 = arith.constant 0.000000e+00 : f32
      %45 = vector.broadcast %cst_34 : f32 to vector<256x1xf32>
      %c0_35 = arith.constant 0 : index
      %c0_36 = arith.constant 0 : index
      %46 = vector.load %arg9[%c0_35, %c0_36] : memref<256x1xf32, #tpu.memory_space<vmem>>, vector<256x1xf32>
      tpu.vector_store %arg9[%c0_35, %c0_36], %45 {strides = array<i32>} : memref<256x1xf32, #tpu.memory_space<vmem>>, vector<256x1xf32>,
      %cst_37 = arith.constant 0.000000e+00 : f32
      %47 = vector.broadcast %cst_37 : f32 to vector<256x128xf32>
      %c0_38 = arith.constant 0 : index
      %c0_39 = arith.constant 0 : index
      %48 = vector.load %arg10[%c0_38, %c0_39] : memref<256x128xf32, #tpu.memory_space<vmem>>, vector<256x128xf32>
      tpu.vector_store %arg10[%c0_38, %c0_39], %47 {strides = array<i32>} : memref<256x128xf32, #tpu.memory_space<vmem>>, vector<256x128xf32>,
    } else {
    }
    %c0 = arith.constant 0 : index
    %c0_1 = arith.constant 0 : index
    %3 = vector.load %arg7[%c0, %c0_1] : memref<256x128xbf16, #tpu.memory_space<vmem>>, vector<256x128xbf16>
    %c0_2 = arith.constant 0 : index
    %c0_3 = arith.constant 0 : index
    %c0_4 = arith.constant 0 : index
    %4 = vector.load %arg4[%c0_2, %c0_3, %c0_4] : memref<1x256x128xf32, #tpu.memory_space<vmem>>, vector<1x256x128xf32>
    %5 = vector.shape_cast %4 : vector<1x256x128xf32> to vector<256x128xf32>
    %6 = arith.truncf %5 : vector<256x128xf32> to vector<256x128xbf16>
    %cst = arith.constant dense<0.000000e+00> : vector<256x256xf32>
    %7 = tpu.matmul %3, %6, %cst {dimension_numbers = #tpu.dot_dimension_numbers<[1], [1], [0], [0], [0, 0, 1, 0], [], []>} : vector<256x128xbf16>, vector<256x128xbf16>, vector<256x256xf32> -> vector<256x256xf32>
    %c0_5 = arith.constant 0 : index
    %c0_6 = arith.constant 0 : index
    %8 = vector.load %arg8[%c0_5, %c0_6] : memref<256x1xf32, #tpu.memory_space<vmem>>, vector<256x1xf32>
    %cst_7 = arith.constant dense<0xFF800000> : vector<256xf32>
    %9 = vector.multi_reduction <maximumf>, %7, %cst_7 [1] : vector<256x256xf32> to vector<256xf32>
    %10 = vector.shape_cast %9 : vector<256xf32> to vector<256x1xf32>
    %11 = arith.maximumf %8, %10 : vector<256x1xf32>
    %12 = arith.subf %8, %11 : vector<256x1xf32>
    %13 = math.exp %12 : vector<256x1xf32>
    %14 = vector.broadcast %11 : vector<256x1xf32> to vector<256x256xf32>
    %15 = arith.subf %7, %14 : vector<256x256xf32>
    %16 = math.exp %15 : vector<256x256xf32>
    %c0_8 = arith.constant 0 : index
    %c0_9 = arith.constant 0 : index
    %17 = vector.load %arg9[%c0_8, %c0_9] : memref<256x1xf32, #tpu.memory_space<vmem>>, vector<256x1xf32>
    %18 = arith.mulf %13, %17 : vector<256x1xf32>
    %cst_10 = arith.constant dense<0.000000e+00> : vector<256xf32>
    %19 = vector.multi_reduction <add>, %16, %cst_10 [1] : vector<256x256xf32> to vector<256xf32>
    %20 = vector.shape_cast %19 : vector<256xf32> to vector<256x1xf32>
    %21 = arith.addf %18, %20 : vector<256x1xf32>
    %c0_11 = arith.constant 0 : index
    %c0_12 = arith.constant 0 : index
    %22 = vector.load %arg9[%c0_11, %c0_12] : memref<256x1xf32, #tpu.memory_space<vmem>>, vector<256x1xf32>
    tpu.vector_store %arg9[%c0_11, %c0_12], %21 {strides = array<i32>} : memref<256x1xf32, #tpu.memory_space<vmem>>, vector<256x1xf32>,
    %c0_13 = arith.constant 0 : index
    %c0_14 = arith.constant 0 : index
    %23 = vector.load %arg10[%c0_13, %c0_14] : memref<256x128xf32, #tpu.memory_space<vmem>>, vector<256x128xf32>
    %24 = vector.broadcast %13 : vector<256x1xf32> to vector<256x128xf32>
    %25 = arith.mulf %24, %23 : vector<256x128xf32>
    %26 = arith.truncf %16 : vector<256x256xf32> to vector<256x256xbf16>
    %c0_15 = arith.constant 0 : index
    %c0_16 = arith.constant 0 : index
    %c0_17 = arith.constant 0 : index
    %27 = vector.load %arg5[%c0_15, %c0_16, %c0_17] : memref<1x256x128xf32, #tpu.memory_space<vmem>>, vector<1x256x128xf32>
    %28 = vector.shape_cast %27 : vector<1x256x128xf32> to vector<256x128xf32>
    %29 = arith.truncf %28 : vector<256x128xf32> to vector<256x128xbf16>
    %cst_18 = arith.constant dense<0.000000e+00> : vector<256x128xf32>
    %30 = tpu.matmul %26, %29, %cst_18 {dimension_numbers = #tpu.dot_dimension_numbers<[1], [0], [0], [1], [0, 0, 1, 1], [], []>} : vector<256x256xbf16>, vector<256x128xbf16>, vector<256x128xf32> -> vector<256x128xf32>
    %31 = arith.addf %25, %30 : vector<256x128xf32>
    %c0_19 = arith.constant 0 : index
    %c0_20 = arith.constant 0 : index
    %32 = vector.load %arg10[%c0_19, %c0_20] : memref<256x128xf32, #tpu.memory_space<vmem>>, vector<256x128xf32>
    tpu.vector_store %arg10[%c0_19, %c0_20], %31 {strides = array<i32>} : memref<256x128xf32, #tpu.memory_space<vmem>>, vector<256x128xf32>,
    %c0_21 = arith.constant 0 : index
    %c0_22 = arith.constant 0 : index
    %33 = vector.load %arg8[%c0_21, %c0_22] : memref<256x1xf32, #tpu.memory_space<vmem>>, vector<256x1xf32>
    tpu.vector_store %arg8[%c0_21, %c0_22], %11 {strides = array<i32>} : memref<256x1xf32, #tpu.memory_space<vmem>>, vector<256x1xf32>,
    %c0_i32_23 = arith.constant 0 : i32
    %34 = arith.cmpi eq, %arg2, %c0_i32_23 : i32
    %35 = arith.extui %34 : i1 to i32
    %c0_i32_24 = arith.constant 0 : i32
    %36 = arith.cmpi ne, %35, %c0_i32_24 : i32
    scf.if %36 {
      %c0_25 = arith.constant 0 : index
      %c0_26 = arith.constant 0 : index
      %37 = vector.load %arg9[%c0_25, %c0_26] : memref<256x1xf32, #tpu.memory_space<vmem>>, vector<256x1xf32>
      %38 = tpu.reciprocal %37 {approx = true} : vector<256x1xf32> -> vector<256x1xf32>
      %c0_27 = arith.constant 0 : index
      %c0_28 = arith.constant 0 : index
      %39 = vector.load %arg10[%c0_27, %c0_28] : memref<256x128xf32, #tpu.memory_space<vmem>>, vector<256x128xf32>
      %40 = vector.broadcast %38 : vector<256x1xf32> to vector<256x128xf32>
      %41 = arith.mulf %39, %40 : vector<256x128xf32>
      %c0_29 = arith.constant 0 : index
      %c0_30 = arith.constant 0 : index
      %c0_31 = arith.constant 0 : index
      %42 = vector.load %arg6[%c0_29, %c0_30, %c0_31] : memref<1x256x128xf32, #tpu.memory_space<vmem>>, vector<1x256x128xf32>
      %43 = vector.shape_cast %42 : vector<1x256x128xf32> to vector<256x128xf32>
      %44 = vector.shape_cast %41 : vector<256x128xf32> to vector<1x256x128xf32>
      tpu.vector_store %arg6[%c0_29, %c0_30, %c0_31], %44 {strides = array<i32>} : memref<1x256x128xf32, #tpu.memory_space<vmem>>, vector<1x256x128xf32>,
    } else {
    }
    return
  }
  func.func @transform_0(%arg0: i32, %arg1: i32, %arg2: i32) -> (i32, i32, i32) {
    %c0_i32 = arith.constant 0 : i32
    %c0_i32_0 = arith.constant 0 : i32
    return %arg0, %arg1, %c0_i32 : i32, i32, i32
  }
  func.func @transform_1(%arg0: i32, %arg1: i32, %arg2: i32) -> (i32, i32, i32) {
    %c0_i32 = arith.constant 0 : i32
    %c0_i32_0 = arith.constant 0 : i32
    return %arg0, %arg2, %c0_i32 : i32, i32, i32
  }
  func.func @transform_2(%arg0: i32, %arg1: i32, %arg2: i32) -> (i32, i32, i32) {
    %c0_i32 = arith.constant 0 : i32
    %c0_i32_0 = arith.constant 0 : i32
    return %arg0, %arg2, %c0_i32 : i32, i32, i32
  }
  func.func @transform_3(%arg0: i32, %arg1: i32, %arg2: i32) -> (i32, i32, i32) {
    %c0_i32 = arith.constant 0 : i32
    %c0_i32_0 = arith.constant 0 : i32
    return %arg0, %arg1, %c0_i32 : i32, i32, i32
  }
}

</mosaic_0001>

<bundles_post_ra>
// kernel: tpu_custom_call.1
= control target key start
LH: loop header
LB: loop body
LE: loop exit
PB: predicated region body
PF: predicated region fallthrough
CT: control target
= control target key end

     0   :  { %s4921_s0 = inlined_call_operand.hbm [shape: f32[8,256,128], index: 0, kind: input, shape index: {}]   ;;  %s4922_s1 = inlined_call_operand.hbm [shape: f32[8,256,128], index: 1, kind: input, shape index: {}]   ;;  %s4923_s2 = inlined_call_operand.hbm [shape: f32[8,256,128], index: 2, kind: input, shape index: {}]   ;;  %s4924_s3 = inlined_call_operand.hbm [shape: f32[8,256,128], index: 3, kind: output, shape index: {}]  }
   0x1   :  { %5007 = sst [smem:[#allocation85_spill]] %s4922_s1 }
   0x2   :  { %8 = vsyncpa [#allocation7], 0 }
   0x3   :  { %10 = vsyncpa [#allocation7 + $0x1], 0 }
   0x4   :  { %11 = vsyncpa [#allocation10], 0 }
   0x5   :  { %13 = vsyncpa [#allocation10 + $0x1], 0 }
   0x6   :  { %14 = vsyncpa [#allocation8], 0 }
   0x7   :  { %16 = vsyncpa [#allocation8 + $0x1], 0  ;;  %s3363_s12 = smov 0   ;;  %s3365_s13 = smov 0  }
   0x8   :  { %s3367_s14 = smov 0   ;;  %s3369_s15 = smov 0  }
   0x9   :  { %s3371_s16 = smov 0   ;;  %s3373_s17 = smov 0  }
   0xa LB: > { %5008 = sst [smem:[#allocation16_spill]] %s3326_s16  ;;  %s3394_s18 = sadd.s32 4294967295, %s3330_s17   ;;  %s3330_s17 = sphi %s3373_s17, %s22_s17   ;;  %s3326_s16 = sphi %s3371_s16, %s5217_s16   ;;  %s3322_s15 = sphi %s3369_s15, %s5216_s15   ;;  %s3318_s14 = sphi %s3367_s14, %s5220_s14   ;;  %s3314_s13 = sphi %s3365_s13, %s5219_s13   ;;  %s3310_s12 = sphi %s3363_s12, %s5218_s12  }
   0xb   : > { %s2631_s19 = sadd.s32 4294967294, %s3330_s17   ;;  %s41_s20 = sadd.s32 1, %s3326_s16 }
   0xc   : > { %s50_s21 = sadd.s32 1, %s3318_s14  ;;  %p43_p0 = scmp.ge.s32.totalorder %s41_s20, 8 }
   0xd   : > { %p57_p1 = scmp.ne.s32.totalorder %s3318_s14, %s3314_s13  ;;  %p58_p2 = scmp.eq.s32.totalorder %s3330_s17, 0 }
   0xe   : > { %p63_p3 = scmp.ne.s32.totalorder %s3314_s13, %s3310_s12  ;;  %s5222_s20 = smov (%p43_p0, %s41_s20), 0 }
   0xf   : > { %5009 = sst [smem:[#allocation17_spill]] %s5222_s20  ;;  %p3406_p4 = por %p58_p2, %p57_p1 }
  0x10   : > { %p64_p5 = scmp.eq.s32.totalorder %s3394_s18, 0  ;;  %s45_s23 = ssub.s32 %s3326_s16, %s5222_s20 }
  0x11   : > { %p145_p6 = scmp.eq.s32.totalorder %s3394_s18, 7  ;;  %p48_p7 = scmp.eq.s32.totalorder %s45_s23, 0 }
  0x12   : > { %p3414_p8 = por %p64_p5, %p63_p3  ;;  %p151_p10 = scmp.eq.s32.totalorder %s2631_s19, 7 }
  0x13   : > { %p3418_p9 = por %p145_p6, %p57_p1  ;;  %p2839_p12 = scmp.lt.s32.totalorder %s3330_s17, 8 }
  0x14   : > { %s5011_s24 = scalar_select %p3414_p8, 1, 0 }
  0x15   : > { %s5012_s25 = scalar_select %p3418_p9, 1, 0 }
  0x16   : > { %s3423_s26 = scalar_select %p48_p7, %s3318_s14, %s50_s21  }
  0x17   : > { %p3425_p11 = por %p151_p10, %p63_p3  ;;  %s4927_s28 = sand.u32 1, %s3318_s14  }
  0x18   : > { %5013 = sst [smem:[#allocation18_spill]] %s3423_s26  ;;  %s3433_s29 = sshll.u32 %s4927_s28, 8 }
  0x19   : > { %s5014_s27 = scalar_select %p3425_p11, 1, 0 }
  0x1a   : > { %s3436_s30 = sshll.u32 %s3326_s16, 12  ;;  %p3440_p13 = pnand %p2839_p12, %p3406_p4 }
  0x1b   : > { %s194_s5 = sand.u32 1, %s3330_s17   ;;  %s5016_s1 = sld [smem:[#allocation85_spill]] }
  0x1c   : > { %s198_s9 = scalar_lea.vmem [#allocation9], %s3433_s29  ;;  %s3456_s11 = scalar_lea.sflag [#allocation10], %s194_s5 }
  0x1d   : > { %s207_s10 = sshll.u32 %s198_s9, 4  ;;  %p3462_p3 = pneg %p3440_p13  ;;  %s3453_s10 = int_to_ptr.vmem [resolvable:$true] %s207_s10 }
  0x21   : > { %s3449_s8 = scalar_lea.hbm %s5016_s1, %s3436_s30  ;;  %s3159_s6 = scalar_lea.hbm %s5016_s1, 32768 }
  0x22   : > { %s3154_s19 = scalar_lea.hbm %s3449_s8, 4096  ;;  %p3160_p6 = scmp.lt.u32.totalorder %s3449_s8, %s5016_s1 }
  0x23   : > { %p3155_p2 = scmp.ne.s32.totalorder %s3449_s8, %s3154_s19  ;;  %p3161_p7 = scmp.lt.u32.totalorder %s3159_s6, %s3154_s19 }
  0x24   : > { %p3163_p12 = scmp.lt.u32.totalorder %s3154_s19, %s3449_s8 }
  0x25   : > { %p3157_p4 = pnand %p3462_p3, %p3155_p2  ;;  %p3162_p10 = por %p3161_p7, %p3160_p6 }
  0x27   : > { %p3158_p5 = pneg %p3157_p4  ;;  %p3164_p0 = por %p3163_p12, %p3162_p10 }
  0x29   : > { %p3165_p1 = pnand %p3164_p0, %p3158_p5 }
  0x2b   : > { %3168 = shalt.err (!%p3165_p1)
}
  0x2c   : > { %s3169_s5 = scalar_lea.vmem %s3453_s10, 4096  ;;  %s3332_s22 = smov [#allocation9]  }
  0x2d   : > { %p3170_p2 = scmp.ne.s32.totalorder %s3453_s10, %s3169_s5  ;;  %s3174_s23 = sshll.u32 %s3332_s22, 4  ;;  %s3175_s23 = int_to_ptr.vmem [resolvable:$false] %s3174_s23 }
  0x2e   : > { %s3176_s7 = scalar_lea.vmem %s3175_s23, 8192  ;;  %p3177_p9 = scmp.lt.s32.totalorder %s3453_s10, %s3175_s23 }
  0x2f   : > { %p3172_p4 = pnand %p3170_p2, %p3462_p3  ;;  %p3178_p8 = scmp.lt.s32.totalorder %s3176_s7, %s3169_s5 }
  0x31   : > { %p3173_p11 = pneg %p3172_p4  ;;  %p3179_p6 = por %p3178_p8, %p3177_p9 }
  0x33   : > { %p3180_p7 = pnand %p3179_p6, %p3173_p11 }
  0x35   : > { %3183 = shalt.err (!%p3180_p7)
}
  0x36   : > { %s4928_s19 = smov 128   ;;  %s4930_s6 = smov 8  }
  0x37   : > { %2831 = dma.hbm_to_vmem [thread:$0]  (!%p3440_p13), %s3449_s8, 4096, %s3453_s10, %s3456_s11, %s4928_s19, %s4928_s19, %s4930_s6  }
  0x38   : > { %p5018_p8 = scmp.lt.s32.totalorder %s3330_s17, 9  ;;  %p5019_p9 = scmp.ge.s32.totalorder %s3330_s17, 1 }
  0x39   : > { %s3501_s23 = scalar_lea.hbm %s4921_s0, %s3436_s30  ;;  %s175_s7 = scalar_lea.vmem [#allocation6], %s3433_s29 }
  0x3a   : > { %p3493_p11 = pnand %p5019_p9, %p5018_p8  ;;  %s184_s28 = sshll.u32 %s175_s7, 4  ;;  %s3504_s28 = int_to_ptr.vmem [resolvable:$true] %s184_s28 }
  0x3b   : > { %s3510_s19 = scalar_lea.hbm %s4923_s2, %s3436_s30  ;;  %s5021_s6 = sand.u32 1, %s3318_s14  }
  0x3c   : > { %s5020_s9 = scalar_select %p3493_p11, 1, 0 }
  0x3d   : > { %s3514_s1 = scalar_lea.sflag [#allocation7], %s5021_s6  ;;  %s3184_s20 = scalar_lea.hbm %s3501_s23, 4096 }
  0x3e   : > { %p3185_p0 = scmp.ne.s32.totalorder %s3501_s23, %s3184_s20  ;;  %s3189_s16 = scalar_lea.hbm %s4921_s0, 32768 }
  0x3f   : > { %p3190_p10 = scmp.lt.u32.totalorder %s3501_s23, %s4921_s0  ;;  %p3191_p12 = scmp.lt.u32.totalorder %s3189_s16, %s3184_s20 }
  0x40   : > { %p3187_p1 = pnand %p3185_p0, %p3462_p3  ;;  %p3193_p4 = scmp.lt.u32.totalorder %s3184_s20, %s3501_s23 }
  0x41   : > { %p3192_p2 = por %p3191_p12, %p3190_p10 }
  0x42   : > { %p3188_p5 = pneg %p3187_p1 }
  0x43   : > { %p3194_p6 = por %p3193_p4, %p3192_p2 }
  0x45   : > { %p3195_p7 = pnand %p3194_p6, %p3188_p5 }
  0x47   : > { %3198 = shalt.err (!%p3195_p7)
}
  0x48   : > { %s3199_s30 = scalar_lea.vmem %s3504_s28, 4096  ;;  %s3335_s6 = smov [#allocation6]  }
  0x49   : > { %p3200_p8 = scmp.ne.s32.totalorder %s3504_s28, %s3199_s30  ;;  %s3204_s8 = sshll.u32 %s3335_s6, 4  ;;  %s3205_s8 = int_to_ptr.vmem [resolvable:$false] %s3204_s8 }
  0x4a   : > { %s3206_s26 = scalar_lea.vmem %s3205_s8, 8192  ;;  %p3207_p1 = scmp.lt.s32.totalorder %s3504_s28, %s3205_s8 }
  0x4b   : > { %p3202_p9 = pnand %p3200_p8, %p3462_p3  ;;  %p3208_p11 = scmp.lt.s32.totalorder %s3206_s26, %s3199_s30 }
  0x4d   : > { %p3203_p0 = pneg %p3202_p9  ;;  %p3209_p10 = por %p3208_p11, %p3207_p1 }
  0x4f   : > { %p3210_p12 = pnand %p3209_p10, %p3203_p0 }
  0x51   : > { %3213 = shalt.err (!%p3210_p12)
}
  0x52   : > { %s5022_s16 = smov 8   ;;  %s5023_s20 = smov 128  }
  0x53   : > { %2828 = dma.hbm_to_vmem [thread:$0]  (!%p3440_p13), %s3501_s23, 4096, %s3504_s28, %s3514_s1, %s5023_s20, %s5023_s20, %s5022_s16  }
  0x54   : > { %s221_s10 = scalar_lea.vmem [#allocation11], %s3433_s29  ;;  %s3214_s22 = scalar_lea.hbm %s3510_s19, 4096 }
  0x55   : > { %s230_s5 = sshll.u32 %s221_s10, 4  ;;  %p3215_p11 = scmp.ne.s32.totalorder %s3510_s19, %s3214_s22  ;;  %s3542_s5 = int_to_ptr.vmem [resolvable:$true] %s230_s5 }
  0x56   : > { %s3219_s6 = scalar_lea.hbm %s4923_s2, 32768  ;;  %p3220_p4 = scmp.lt.u32.totalorder %s3510_s19, %s4923_s2 }
  0x57   : > { %p3217_p5 = pnand %p3215_p11, %p3462_p3  ;;  %p3221_p6 = scmp.lt.u32.totalorder %s3219_s6, %s3214_s22 }
  0x58   : > { %p3223_p8 = scmp.lt.u32.totalorder %s3214_s22, %s3510_s19 }
  0x59   : > { %p3218_p2 = pneg %p3217_p5  ;;  %p3222_p7 = por %p3221_p6, %p3220_p4 }
  0x5b   : > { %p3224_p9 = por %p3223_p8, %p3222_p7 }
  0x5d   : > { %p3225_p0 = pnand %p3224_p9, %p3218_p2 }
  0x5f   : > { %3228 = shalt.err (!%p3225_p0)
}
  0x60   : > { %s3229_s1 = scalar_lea.vmem %s3542_s5, 4096  ;;  %s3336_s28 = smov [#allocation11]  }
  0x61   : > { %p3230_p1 = scmp.ne.s32.totalorder %s3542_s5, %s3229_s1  ;;  %s3234_s29 = sshll.u32 %s3336_s28, 4  ;;  %s3235_s29 = int_to_ptr.vmem [resolvable:$false] %s3234_s29 }
  0x62   : > { %s3236_s23 = scalar_lea.vmem %s3235_s29, 8192  ;;  %p3237_p11 = scmp.lt.s32.totalorder %s3542_s5, %s3235_s29 }
  0x63   : > { %p3232_p10 = pnand %p3230_p1, %p3462_p3  ;;  %p3238_p5 = scmp.lt.s32.totalorder %s3236_s23, %s3229_s1 }
  0x65   : > { %p3233_p12 = pneg %p3232_p10  ;;  %p3239_p4 = por %p3238_p5, %p3237_p11 }
  0x67   : > { %p3240_p6 = pnand %p3239_p4, %p3233_p12 }
  0x69   : > { %3243 = shalt.err (!%p3240_p6)
}
  0x6a   : > { %2834 = dma.hbm_to_vmem [thread:$0]  (!%p3440_p13), %s3510_s19, 4096, %s3542_s5, %s3456_s11, %s5023_s20, %s5023_s20, %s5022_s16  }
  0x6b   : > { %p5024_p3 = scmp.ne.s32.totalorder %s5020_s9, 0 }
  0x6d   : > { %242 = sbr.rel (%p5024_p3) target bundleno = 1137 (0x471), region = 32 }
  0x74   : > { %s3572_s21 = sand.u32 1, %s3314_s13   ;;  %p5025_p2 = scmp.ne.s32.totalorder %s5011_s24, 0 }
  0x75   : > { %s3575_s10 = sshll.u32 %s3572_s21, 8  ;;  %s245_s4 = scalar_lea.sflag [#allocation7], %s3572_s21 }
  0x76   : > { %s3579_s22 = scalar_lea.vmem [#allocation6], %s3575_s10 }
  0x77   : > { %3297 = dma.done.wait (%p5025_p2), %s245_s4, 4096  }
  0x78   : > { %3299 = vsyncadd (%p5025_p2), %s245_s4, 4294963200  ;;  %s253_s11 = sand.u32 1, %s3394_s18   ;;  %s3587_s9 = scalar_lea.vmem [#allocation9], %s3575_s10 }
  0x79   : > { %s254_s19 = scalar_lea.sflag [#allocation10], %s253_s11 }
  0x7a   : > { %3301 = dma.done.wait (%p5025_p2), %s254_s19, 8192  }
  0x7b   : > { %3303 = vsyncadd (%p5025_p2), %s254_s19, 4294959104  ;;  %v533_v0 = vld [vmem:[%s3587_s9 + $0x80] sm:$0xff]  ;;  %v534_v1 = vld [vmem:[%s3587_s9 + $0x88] sm:$0xff]  ;;  %vm404_vm0 = vcmask 7168   ;;  %s3914_s18 = scalar_lea.vmem [#allocation11], %s3575_s10  ;;  %s4801_s24 = scalar_lea.vmem [#allocation12], %s3575_s10 }
  0x7c   : > { %v517_v2 = vld [vmem:[%s3587_s9] sm:$0xff]  ;;  %v557_v3 = vpack.c.bf16 %v534_v1, %v533_v0  ;;  %v518_v4 = vld [vmem:[%s3587_s9 + $0x8] sm:$0xff]  ;;  %v535_v5 = vld [vmem:[%s3587_s9 + $0x90] sm:$0xff]  ;;  %s2656_s16 = sshll.u32 %s3322_s15, 12  ;;  %s2491_s20 = sshll.u32 %s4801_s24, 4  ;;  %s4869_s20 = int_to_ptr.vmem [resolvable:$true] %s2491_s20 }
  0x7d   : > { %v536_v6 = vld [vmem:[%s3587_s9 + $0x98] sm:$0xff]  ;;  %v549_v7 = vpack.c.bf16 %v518_v4, %v517_v2  ;;  %v519_v9 = vld [vmem:[%s3587_s9 + $0x10] sm:$0xff]  ;;  %v537_v11 = vld [vmem:[%s3587_s9 + $0xa0] sm:$0xff]  ;;  %s4867_s30 = scalar_lea.hbm %s4924_s3, %s2656_s16  ;;  %s2476_s15 = scalar_lea.sflag [#allocation8], %s3572_s21 }
  0x7e   : > { %v558_v8 = vpack.c.bf16 %v536_v6, %v535_v5  ;;  %2657 = vmatprep.subr.bf16.mxu0 %v557_v3  ;;  %v520_v10 = vld [vmem:[%s3587_s9 + $0x18] sm:$0xff]  ;;  %v538_v12 = vld [vmem:[%s3587_s9 + $0xa8] sm:$0xff]  ;;  %v308_v15 = vld [vmem:[%s3579_s22] sm:$0xff]  ;;  %s3244_s6 = scalar_lea.vmem %s4869_s20, 4096  ;;  %p5213_p7 = scmp.ne.s32.totalorder %s5012_s25, 0 }
  0x7f   : > { %2658 = vmatpush3.bf16.xpose.msra.mxu0 %v549_v7  ;;  %v550_v13 = vpack.c.bf16 %v520_v10, %v519_v9  ;;  %v559_v14 = vpack.c.bf16 %v538_v12, %v537_v11  ;;  %v309_v16 = vld [vmem:[%s3579_s22 + $0x8] sm:$0xff]  ;;  %v340_v17 = vmul.f32 0.125, %v308_v15  ;;  %v521_v19 = vld [vmem:[%s3587_s9 + $0x20] sm:$0xff]  ;;  %v539_v21 = vld [vmem:[%s3587_s9 + $0xb0] sm:$0xff]  ;;  %p3245_p13 = scmp.ne.s32.totalorder %s4869_s20, %s3244_s6  ;;  %s3340_s8 = smov [#allocation12]  }
  0x80   : > { %2659 = vmatprep.subr.bf16.mxu0 %v558_v8  ;;  %v341_v18 = vmul.f32 0.125, %v309_v16  ;;  %v522_v20 = vld [vmem:[%s3587_s9 + $0x28] sm:$0xff]  ;;  %v540_v22 = vld [vmem:[%s3587_s9 + $0xb8] sm:$0xff]  ;;  %v523_v26 = vld [vmem:[%s3587_s9 + $0x30] sm:$0xff]  ;;  %s3248_s26 = sshll.u32 %s3340_s8, 4  ;;  %s3249_s26 = int_to_ptr.vmem [resolvable:$false] %s3248_s26 }
  0x81   : > { %v551_v24 = vpack.c.bf16 %v522_v20, %v521_v19  ;;  %v560_v25 = vpack.c.bf16 %v540_v22, %v539_v21  ;;  %v524_v27 = vld [vmem:[%s3587_s9 + $0x38] sm:$0xff]  ;;  %v541_v28 = vld [vmem:[%s3587_s9 + $0xc0] sm:$0xff]  ;;  %v542_v29 = vld [vmem:[%s3587_s9 + $0xc8] sm:$0xff]  ;;  %p3246_p8 = pnand %p3245_p13, %p5213_p7  ;;  %s3250_s1 = scalar_lea.vmem %s3249_s26, 8192 }
  0x82   : > { %v372_v23 = vpack.c.bf16 %v341_v18, %v340_v17  ;;  %v552_v30 = vpack.c.bf16 %v524_v27, %v523_v26  ;;  %v561_v31 = vpack.c.bf16 %v542_v29, %v541_v28  ;;  %v525_v32 = vld [vmem:[%s3587_s9 + $0x40] sm:$0xff]  ;;  %v526_v33 = vld [vmem:[%s3587_s9 + $0x48] sm:$0xff]  ;;  %v543_v34 = vld [vmem:[%s3587_s9 + $0xd0] sm:$0xff]  ;;  %p3251_p0 = scmp.lt.s32.totalorder %s4869_s20, %s3249_s26  ;;  %p3252_p1 = scmp.lt.s32.totalorder %s3250_s1, %s3244_s6 }
  0x83   : > { %v544_v35 = vld [vmem:[%s3587_s9 + $0xd8] sm:$0xff]  ;;  %v553_v36 = vpack.c.bf16 %v526_v33, %v525_v32  ;;  %v527_v38 = vld [vmem:[%s3587_s9 + $0x50] sm:$0xff]  ;;  %v545_v40 = vld [vmem:[%s3587_s9 + $0xe0] sm:$0xff]  ;;  %p3247_p9 = pneg %p3246_p8 }
  0x84   : > { %2673 = vmatprep.mubr.bf16.mxu0 %v372_v23  ;;  %v562_v37 = vpack.c.bf16 %v544_v35, %v543_v34  ;;  %v528_v39 = vld [vmem:[%s3587_s9 + $0x58] sm:$0xff]  ;;  %v546_v41 = vld [vmem:[%s3587_s9 + $0xe8] sm:$0xff]  ;;  %v529_v44 = vld [vmem:[%s3587_s9 + $0x60] sm:$0xff]  ;;  %p3253_p10 = por %p3252_p1, %p3251_p0 }
  0x85   : > { %v554_v42 = vpack.c.bf16 %v528_v39, %v527_v38  ;;  %v563_v43 = vpack.c.bf16 %v546_v41, %v545_v40  ;;  %v530_v45 = vld [vmem:[%s3587_s9 + $0x68] sm:$0xff]  ;;  %v547_v46 = vld [vmem:[%s3587_s9 + $0xf0] sm:$0xff]  ;;  %v548_v47 = vld [vmem:[%s3587_s9 + $0xf8] sm:$0xff] }
  0x86   : > { %v555_v48 = vpack.c.bf16 %v530_v45, %v529_v44  ;;  %v564_v49 = vpack.c.bf16 %v548_v47, %v547_v46  ;;  %v531_v50 = vld [vmem:[%s3587_s9 + $0x70] sm:$0xff]  ;;  %v532_v51 = vld [vmem:[%s3587_s9 + $0x78] sm:$0xff]  ;;  %v312_v58 = vld [vmem:[%s3579_s22 + $0x20] sm:$0xff]  ;;  %p3254_p12 = pnand %p3253_p10, %p3247_p9 }
  0x87   : > { %2660 = vmatpush3.bf16.xpose.msra.mxu0 %v550_v13  ;;  %v556_v52 = vpack.c.bf16 %v532_v51, %v531_v50  ;;  %v310_v53 = vld [vmem:[%s3579_s22 + $0x10] sm:$0xff]  ;;  %v311_v54 = vld [vmem:[%s3579_s22 + $0x18] sm:$0xff]  ;;  %v313_v59 = vld [vmem:[%s3579_s22 + $0x28] sm:$0xff]  ;;  %v344_v60 = vmul.f32 0.125, %v312_v58 }
  0x88   : > { %2661 = vmatprep.subr.bf16.mxu0 %v559_v14  ;;  %v342_v55 = vmul.f32 0.125, %v310_v53  ;;  %v343_v56 = vmul.f32 0.125, %v311_v54  ;;  %v345_v61 = vmul.f32 0.125, %v313_v59  ;;  %v314_v63 = vld [vmem:[%s3579_s22 + $0x30] sm:$0xff]  ;;  %v315_v0 = vld [vmem:[%s3579_s22 + $0x38] sm:$0xff]  ;;  %v316_v4 = vld [vmem:[%s3579_s22 + $0x40] sm:$0xff] }
  0x89   : > { %v346_v1 = vmul.f32 0.125, %v314_v63  ;;  %v347_v2 = vmul.f32 0.125, %v315_v0  ;;  %v317_v5 = vld [vmem:[%s3579_s22 + $0x48] sm:$0xff]  ;;  %v348_v6 = vmul.f32 0.125, %v316_v4  ;;  %v318_v9 = vld [vmem:[%s3579_s22 + $0x50] sm:$0xff]  ;;  %v319_v10 = vld [vmem:[%s3579_s22 + $0x58] sm:$0xff] }
  0x8a   : > { %v373_v57 = vpack.c.bf16 %v343_v56, %v342_v55  ;;  %v374_v62 = vpack.c.bf16 %v345_v61, %v344_v60  ;;  %v349_v7 = vmul.f32 0.125, %v317_v5  ;;  %v350_v11 = vmul.f32 0.125, %v318_v9  ;;  %v320_v14 = vld [vmem:[%s3579_s22 + $0x60] sm:$0xff]  ;;  %v321_v15 = vld [vmem:[%s3579_s22 + $0x68] sm:$0xff]  ;;  %v322_v19 = vld [vmem:[%s3579_s22 + $0x70] sm:$0xff] }
  0x8b   : > { %v375_v3 = vpack.c.bf16 %v347_v2, %v346_v1  ;;  %v351_v12 = vmul.f32 0.125, %v319_v10  ;;  %v352_v16 = vmul.f32 0.125, %v320_v14  ;;  %v353_v17 = vmul.f32 0.125, %v321_v15  ;;  %v323_v20 = vld [vmem:[%s3579_s22 + $0x78] sm:$0xff]  ;;  %v326_v29 = vld [vmem:[%s3579_s22 + $0x90] sm:$0xff]  ;;  %v328_v34 = vld [vmem:[%s3579_s22 + $0xa0] sm:$0xff] }
  0x8c   : > { %v376_v8 = vpack.c.bf16 %v349_v7, %v348_v6  ;;  %v354_v21 = vmul.f32 0.125, %v322_v19  ;;  %v355_v22 = vmul.f32 0.125, %v323_v20  ;;  %v329_v35 = vld [vmem:[%s3579_s22 + $0xa8] sm:$0xff]  ;;  %v330_v39 = vld [vmem:[%s3579_s22 + $0xb0] sm:$0xff]  ;;  %v331_v40 = vld [vmem:[%s3579_s22 + $0xb8] sm:$0xff]  ;;  %v3337_v0 = vmov -inf  }
  0x8d   : > { %v377_v13 = vpack.c.bf16 %v351_v12, %v350_v11  ;;  %v378_v18 = vpack.c.bf16 %v353_v17, %v352_v16  ;;  %v362_v41 = vmul.f32 0.125, %v330_v39  ;;  %v332_v44 = vld [vmem:[%s3579_s22 + $0xc0] sm:$0xff]  ;;  %v333_v45 = vld [vmem:[%s3579_s22 + $0xc8] sm:$0xff]  ;;  %v335_v50 = vld [vmem:[%s3579_s22 + $0xd8] sm:$0xff]  ;;  %405 = vst.msk [vmem:[#allocation3] sm:$0xff] %vm404_vm0, %v3337_v0 }
  0x8e   : > { %v364_v46 = vmul.f32 0.125, %v332_v44  ;;  %v365_v47 = vmul.f32 0.125, %v333_v45  ;;  %v336_v54 = vld [vmem:[%s3579_s22 + $0xe0] sm:$0xff]  ;;  %v337_v55 = vld [vmem:[%s3579_s22 + $0xe8] sm:$0xff]  ;;  %v338_v59 = vld [vmem:[%s3579_s22 + $0xf0] sm:$0xff]  ;;  %406 = vst.msk [vmem:[#allocation3 + $0x8] sm:$0xff] %vm404_vm0, %v3337_v0 }
  0x8f   : > { %2662 = vmatpush3.bf16.xpose.msra.mxu0 %v551_v24  ;;  %v324_v24 = vld [vmem:[%s3579_s22 + $0x80] sm:$0xff]  ;;  %v368_v56 = vmul.f32 0.125, %v336_v54  ;;  %v339_v60 = vld [vmem:[%s3579_s22 + $0xf8] sm:$0xff]  ;;  %v370_v61 = vmul.f32 0.125, %v338_v59  ;;  %407 = vst.msk [vmem:[#allocation3 + $0x10] sm:$0xff] %vm404_vm0, %v3337_v0  ;;  %408 = vst.msk [vmem:[#allocation3 + $0x18] sm:$0xff] %vm404_vm0, %v3337_v0 }
  0x90   : > { %2663 = vmatprep.subr.bf16.mxu0 %v560_v25  ;;  %v325_v25 = vld [vmem:[%s3579_s22 + $0x88] sm:$0xff]  ;;  %v356_v26 = vmul.f32 0.125, %v324_v24  ;;  %409 = vst.msk [vmem:[#allocation3 + $0x20] sm:$0xff] %vm404_vm0, %v3337_v0  ;;  %410 = vst.msk [vmem:[#allocation3 + $0x28] sm:$0xff] %vm404_vm0, %v3337_v0 }
  0x91   : > { %v357_v27 = vmul.f32 0.125, %v325_v25  ;;  %411 = vst.msk [vmem:[#allocation3 + $0x30] sm:$0xff] %vm404_vm0, %v3337_v0  ;;  %412 = vst.msk [vmem:[#allocation3 + $0x38] sm:$0xff] %vm404_vm0, %v3337_v0 }
  0x92   : > { %413 = vst.msk [vmem:[#allocation3 + $0x40] sm:$0xff] %vm404_vm0, %v3337_v0  ;;  %414 = vst.msk [vmem:[#allocation3 + $0x48] sm:$0xff] %vm404_vm0, %v3337_v0 }
  0x93   : > { %v380_v28 = vpack.c.bf16 %v357_v27, %v356_v26  ;;  %415 = vst.msk [vmem:[#allocation3 + $0x50] sm:$0xff] %vm404_vm0, %v3337_v0  ;;  %416 = vst.msk [vmem:[#allocation3 + $0x58] sm:$0xff] %vm404_vm0, %v3337_v0  ;;  %v3339_v26 = vmov 0.0  }
  0x94   : > { %417 = vst.msk [vmem:[#allocation3 + $0x60] sm:$0xff] %vm404_vm0, %v3337_v0  ;;  %418 = vst.msk [vmem:[#allocation3 + $0x68] sm:$0xff] %vm404_vm0, %v3337_v0 }
  0x95   : > { %419 = vst.msk [vmem:[#allocation3 + $0x70] sm:$0xff] %vm404_vm0, %v3337_v0  ;;  %420 = vst.msk [vmem:[#allocation3 + $0x78] sm:$0xff] %vm404_vm0, %v3337_v0 }
  0x96   : > { %421 = vst.msk [vmem:[#allocation3 + $0x80] sm:$0xff] %vm404_vm0, %v3337_v0  ;;  %422 = vst.msk [vmem:[#allocation3 + $0x88] sm:$0xff] %vm404_vm0, %v3337_v0 }
  0x97   : > { %2664 = vmatpush3.bf16.xpose.msra.mxu0 %v552_v30  ;;  %v327_v30 = vld [vmem:[%s3579_s22 + $0x98] sm:$0xff]  ;;  %423 = vst.msk [vmem:[#allocation3 + $0x90] sm:$0xff] %vm404_vm0, %v3337_v0  ;;  %424 = vst.msk [vmem:[#allocation3 + $0x98] sm:$0xff] %vm404_vm0, %v3337_v0 }
  0x98   : > { %2665 = vmatprep.subr.bf16.mxu0 %v561_v31  ;;  %v358_v31 = vmul.f32 0.125, %v326_v29  ;;  %v359_v32 = vmul.f32 0.125, %v327_v30  ;;  %425 = vst.msk [vmem:[#allocation3 + $0xa0] sm:$0xff] %vm404_vm0, %v3337_v0  ;;  %426 = vst.msk [vmem:[#allocation3 + $0xa8] sm:$0xff] %vm404_vm0, %v3337_v0 }
  0x99   : > { %427 = vst.msk [vmem:[#allocation3 + $0xb0] sm:$0xff] %vm404_vm0, %v3337_v0  ;;  %428 = vst.msk [vmem:[#allocation3 + $0xb8] sm:$0xff] %vm404_vm0, %v3337_v0 }
  0x9a   : > { %v381_v33 = vpack.c.bf16 %v359_v32, %v358_v31  ;;  %429 = vst.msk [vmem:[#allocation3 + $0xc0] sm:$0xff] %vm404_vm0, %v3337_v0  ;;  %430 = vst.msk [vmem:[#allocation3 + $0xc8] sm:$0xff] %vm404_vm0, %v3337_v0 }
  0x9b   : > { %431 = vst.msk [vmem:[#allocation3 + $0xd0] sm:$0xff] %vm404_vm0, %v3337_v0  ;;  %432 = vst.msk [vmem:[#allocation3 + $0xd8] sm:$0xff] %vm404_vm0, %v3337_v0 }
  0x9c   : > { %433 = vst.msk [vmem:[#allocation3 + $0xe0] sm:$0xff] %vm404_vm0, %v3337_v0  ;;  %434 = vst.msk [vmem:[#allocation3 + $0xe8] sm:$0xff] %vm404_vm0, %v3337_v0 }
  0x9d   : > { %435 = vst.msk [vmem:[#allocation3 + $0xf0] sm:$0xff] %vm404_vm0, %v3337_v0  ;;  %436 = vst.msk [vmem:[#allocation3 + $0xf8] sm:$0xff] %vm404_vm0, %v3337_v0 }
  0x9e   : > { %438 = vst.msk [vmem:[#allocation4 + $0x8] sm:$0xff] %vm404_vm0, %v3339_v26  ;;  %437 = vst.msk [vmem:[#allocation4] sm:$0xff] %vm404_vm0, %v3339_v26 }
  0x9f   : > { %2666 = vmatpush3.bf16.xpose.msra.mxu0 %v553_v36  ;;  %v360_v36 = vmul.f32 0.125, %v328_v34  ;;  %439 = vst.msk [vmem:[#allocation4 + $0x10] sm:$0xff] %vm404_vm0, %v3339_v26  ;;  %440 = vst.msk [vmem:[#allocation4 + $0x18] sm:$0xff] %vm404_vm0, %v3339_v26 }
  0xa0   : > { %2667 = vmatprep.subr.bf16.mxu0 %v562_v37  ;;  %v361_v37 = vmul.f32 0.125, %v329_v35  ;;  %441 = vst.msk [vmem:[#allocation4 + $0x20] sm:$0xff] %vm404_vm0, %v3339_v26  ;;  %442 = vst.msk [vmem:[#allocation4 + $0x28] sm:$0xff] %vm404_vm0, %v3339_v26 }
  0xa1   : > { %443 = vst.msk [vmem:[#allocation4 + $0x30] sm:$0xff] %vm404_vm0, %v3339_v26  ;;  %444 = vst.msk [vmem:[#allocation4 + $0x38] sm:$0xff] %vm404_vm0, %v3339_v26 }
  0xa2   : > { %v382_v38 = vpack.c.bf16 %v361_v37, %v360_v36  ;;  %445 = vst.msk [vmem:[#allocation4 + $0x40] sm:$0xff] %vm404_vm0, %v3339_v26  ;;  %446 = vst.msk [vmem:[#allocation4 + $0x48] sm:$0xff] %vm404_vm0, %v3339_v26 }
  0xa3   : > { %447 = vst.msk [vmem:[#allocation4 + $0x50] sm:$0xff] %vm404_vm0, %v3339_v26  ;;  %448 = vst.msk [vmem:[#allocation4 + $0x58] sm:$0xff] %vm404_vm0, %v3339_v26 }
  0xa4   : > { %449 = vst.msk [vmem:[#allocation4 + $0x60] sm:$0xff] %vm404_vm0, %v3339_v26  ;;  %450 = vst.msk [vmem:[#allocation4 + $0x68] sm:$0xff] %vm404_vm0, %v3339_v26 }
  0xa5   : > { %451 = vst.msk [vmem:[#allocation4 + $0x70] sm:$0xff] %vm404_vm0, %v3339_v26  ;;  %452 = vst.msk [vmem:[#allocation4 + $0x78] sm:$0xff] %vm404_vm0, %v3339_v26 }
  0xa6   : > { %453 = vst.msk [vmem:[#allocation4 + $0x80] sm:$0xff] %vm404_vm0, %v3339_v26  ;;  %454 = vst.msk [vmem:[#allocation4 + $0x88] sm:$0xff] %vm404_vm0, %v3339_v26 }
  0xa7   : > { %2668 = vmatpush3.bf16.xpose.msra.mxu0 %v554_v42  ;;  %v363_v42 = vmul.f32 0.125, %v331_v40  ;;  %455 = vst.msk [vmem:[#allocation4 + $0x90] sm:$0xff] %vm404_vm0, %v3339_v26  ;;  %456 = vst.msk [vmem:[#allocation4 + $0x98] sm:$0xff] %vm404_vm0, %v3339_v26 }
  0xa8   : > { %2669 = vmatprep.subr.bf16.mxu0 %v563_v43  ;;  %457 = vst.msk [vmem:[#allocation4 + $0xa0] sm:$0xff] %vm404_vm0, %v3339_v26  ;;  %458 = vst.msk [vmem:[#allocation4 + $0xa8] sm:$0xff] %vm404_vm0, %v3339_v26 }
  0xa9   : > { %v383_v43 = vpack.c.bf16 %v363_v42, %v362_v41  ;;  %459 = vst.msk [vmem:[#allocation4 + $0xb0] sm:$0xff] %vm404_vm0, %v3339_v26  ;;  %460 = vst.msk [vmem:[#allocation4 + $0xb8] sm:$0xff] %vm404_vm0, %v3339_v26 }
  0xaa   : > { %461 = vst.msk [vmem:[#allocation4 + $0xc0] sm:$0xff] %vm404_vm0, %v3339_v26  ;;  %462 = vst.msk [vmem:[#allocation4 + $0xc8] sm:$0xff] %vm404_vm0, %v3339_v26 }
  0xab   : > { %463 = vst.msk [vmem:[#allocation4 + $0xd0] sm:$0xff] %vm404_vm0, %v3339_v26  ;;  %464 = vst.msk [vmem:[#allocation4 + $0xd8] sm:$0xff] %vm404_vm0, %v3339_v26 }
  0xac   : > { %465 = vst.msk [vmem:[#allocation4 + $0xe0] sm:$0xff] %vm404_vm0, %v3339_v26  ;;  %466 = vst.msk [vmem:[#allocation4 + $0xe8] sm:$0xff] %vm404_vm0, %v3339_v26 }
  0xad   : > { %467 = vst.msk [vmem:[#allocation4 + $0xf0] sm:$0xff] %vm404_vm0, %v3339_v26  ;;  %468 = vst.msk [vmem:[#allocation4 + $0xf8] sm:$0xff] %vm404_vm0, %v3339_v26 }
  0xaf   : > { %2670 = vmatpush3.bf16.xpose.msra.mxu0 %v555_v48  ;;  %v384_v48 = vpack.c.bf16 %v365_v47, %v364_v46 }
  0xb0   : > { %2671 = vmatprep.subr.bf16.mxu0 %v564_v49  ;;  %v334_v49 = vld [vmem:[%s3579_s22 + $0xd0] sm:$0xff] }
  0xb1   : > { %v366_v51 = vmul.f32 0.125, %v334_v49 }
  0xb7   : > { %2672 = vmatpush3.bf16.xpose.msra.mxu0 %v556_v52  ;;  %v367_v52 = vmul.f32 0.125, %v335_v50 }
  0xb9   : > { %v385_v53 = vpack.c.bf16 %v367_v52, %v366_v51 }
  0xbe   : > { %2674 = vmatmul.mubr.bf16.vlgmr.msra.gmra.mrb[0].mxu0 %v372_v23  ;;  %v379_v23 = vpack.c.bf16 %v355_v22, %v354_v21 }
  0xbf   : > { %2675 = vmatprep.mubr.bf16.mxu0 %v373_v57 }
  0xc6   : > { %2676 = vmatmul.mubr.bf16.gmra.mrb[4].mxu0 %v373_v57  ;;  %v369_v57 = vmul.f32 0.125, %v337_v55 }
  0xc7   : > { %2677 = vmatprep.mubr.bf16.mxu0 %v374_v62 }
  0xc8   : > { %v386_v58 = vpack.c.bf16 %v369_v57, %v368_v56 }
  0xce   : > { %2678 = vmatmul.mubr.bf16.gmra.mrb[8].mxu0 %v374_v62  ;;  %v371_v62 = vmul.f32 0.125, %v339_v60 }
  0xcf   : > { %2679 = vmatprep.mubr.bf16.mxu0 %v375_v3 }
  0xd0   : > { %v387_v63 = vpack.c.bf16 %v371_v62, %v370_v61 }
  0xd6   : > { %2680 = vmatmul.mubr.bf16.gmra.mrb[12].mxu0 %v375_v3 }
  0xd7   : > { %2681 = vmatprep.mubr.bf16.mxu0 %v376_v8 }
  0xde   : > { %2682 = vmatmul.mubr.bf16.gmra.mrb[16].mxu0 %v376_v8 }
  0xdf   : > { %2683 = vmatprep.mubr.bf16.mxu0 %v377_v13 }
  0xe6   : > { %2684 = vmatmul.mubr.bf16.gmra.mrb[20].mxu0 %v377_v13 }
  0xe7   : > { %2685 = vmatprep.mubr.bf16.mxu0 %v378_v18 }
  0xee   : > { %2686 = vmatmul.mubr.bf16.gmra.mrb[24].mxu0 %v378_v18  ;;  %v3338_v18 = vmov 0  }
  0xef   : > { %2687 = vmatprep.mubr.bf16.mxu0 %v379_v23  ;;  %2896 = vset.pattern.permute.xlu0 %v3338_v18 }
  0xf0   : > { %2897 = vset.pattern.permute.xlu1 %v3338_v18 }
  0xf6   : > { %2688 = vmatmul.mubr.bf16.gmra.mrb[28].mxu0 %v379_v23 }
  0xf7   : > { %2689 = vmatprep.mubr.bf16.mxu0 %v380_v28 }
  0xfe   : > { %2690 = vmatmul.mubr.bf16.gmra.mrb[32].mxu0 %v380_v28 }
  0xff   : > { %2691 = vmatprep.mubr.bf16.mxu0 %v381_v33 }
 0x106   : > { %2692 = vmatmul.mubr.bf16.gmra.mrb[36].mxu0 %v381_v33 }
 0x107   : > { %2693 = vmatprep.mubr.bf16.mxu0 %v382_v38 }
 0x10e   : > { %2694 = vmatmul.mubr.bf16.gmra.mrb[40].mxu0 %v382_v38 }
 0x10f   : > { %2695 = vmatprep.mubr.bf16.mxu0 %v383_v43 }
 0x116   : > { %2696 = vmatmul.mubr.bf16.gmra.mrb[44].mxu0 %v383_v43 }
 0x117   : > { %2697 = vmatprep.mubr.bf16.mxu0 %v384_v48 }
 0x11e   : > { %2698 = vmatmul.mubr.bf16.gmra.mrb[48].mxu0 %v384_v48 }
 0x11f   : > { %2699 = vmatprep.mubr.bf16.mxu0 %v385_v53 }
 0x126   : > { %2700 = vmatmul.mubr.bf16.gmra.mrb[52].mxu0 %v385_v53 }
 0x127   : > { %2701 = vmatprep.mubr.bf16.mxu0 %v386_v58 }
 0x12e   : > { %2702 = vmatmul.mubr.bf16.gmra.mrb[56].mxu0 %v386_v58 }
 0x12f   : > { %2703 = vmatprep.mubr.bf16.mxu0 %v387_v63 }
 0x136   : > { %2704 = vmatmul.mubr.bf16.gmra.mrb[60].mxu0 %v387_v63 }
 0x191   : > { %v3689_v1 = vpop.f32.mrb[0].mxu0 }
 0x192   : > { %v3691_v2 = vpop.f32.mrb[1].mxu0 }
 0x193   : > { %v3693_v3 = vpop.f32.mrb[2].mxu0  ;;  %v790_v4 = vmax.f32 %v3689_v1, %v3691_v2 }
 0x194   : > { %v3697_v5 = vpop.f32.mrb[3].mxu0 }
 0x195   : > { %791 = vmax.xlane.f32.xlu0 %v790_v4  ;;  %v793_v6 = vmax.f32 %v3693_v3, %v3697_v5 }
 0x199   : > { %794 = vmax.xlane.f32.xlu0 %v793_v6  ;;  %v3701_v7 = vpop.f32.mrb[4].mxu0 }
 0x19a   : > { %v3703_v8 = vpop.f32.mrb[5].mxu0 }
 0x19b   : > { %v3705_v9 = vpop.f32.mrb[6].mxu0  ;;  %v796_v10 = vmax.f32 %v3701_v7, %v3703_v8 }
 0x19c   : > { %v3709_v11 = vpop.f32.mrb[7].mxu0 }
 0x19d   : > { %797 = vmax.xlane.f32.xlu1 %v796_v10  ;;  %v799_v12 = vmax.f32 %v3705_v9, %v3709_v11 }
 0x1a1   : > { %800 = vmax.xlane.f32.xlu1 %v799_v12  ;;  %v3713_v13 = vpop.f32.mrb[8].mxu0 }
 0x1a2   : > { %v3715_v14 = vpop.f32.mrb[9].mxu0 }
 0x1a3   : > { %v3717_v15 = vpop.f32.mrb[10].mxu0  ;;  %v802_v16 = vmax.f32 %v3713_v13, %v3715_v14 }
 0x1a4   : > { %5026 = vst [vmem:[#allocation19_spill] sm:$0xff] %v3717_v15  ;;  %v3721_v17 = vpop.f32.mrb[11].mxu0 }
 0x1a5   : > { %5027 = vst [vmem:[#allocation20_spill] sm:$0xff] %v3721_v17  ;;  %803 = vmax.xlane.f32.xlu0 %v802_v16  ;;  %v805_v19 = vmax.f32 %v3717_v15, %v3721_v17 }
 0x1a7   : > { %806 = vmax.xlane.f32.xlu1 %v805_v19 }
 0x1a9   : > { %v3725_v20 = vpop.f32.mrb[12].mxu0 }
 0x1aa   : > { %5028 = vst [vmem:[#allocation21_spill] sm:$0xff] %v3725_v20  ;;  %v3727_v21 = vpop.f32.mrb[13].mxu0 }
 0x1ab   : > { %5029 = vst [vmem:[#allocation22_spill] sm:$0xff] %v3727_v21  ;;  %v3729_v22 = vpop.f32.mrb[14].mxu0  ;;  %v808_v23 = vmax.f32 %v3725_v20, %v3727_v21  ;;  %v4190_v21 = vld [vmem:[#allocation3 + $0xc8] sm:$0xff]  ;;  %v4204_v20 = vld [vmem:[#allocation3 + $0xd0] sm:$0xff] }
 0x1ac   : > { %5030 = vst [vmem:[#allocation23_spill] sm:$0xff] %v3729_v22  ;;  %v3733_v24 = vpop.f32.mrb[15].mxu0  ;;  %5085 = vst [vmem:[#allocation78_spill] sm:$0xff] %v4190_v21 }
 0x1ad   : > { %5031 = vst [vmem:[#allocation24_spill] sm:$0xff] %v3733_v24  ;;  %809 = vmax.xlane.f32.xlu0 %v808_v23  ;;  %v811_v25 = vmax.f32 %v3729_v22, %v3733_v24  ;;  %5088 = vst [vmem:[#allocation81_spill] sm:$0xff] %v4204_v20 }
 0x1af   : > { %812 = vmax.xlane.f32.xlu1 %v811_v25 }
 0x1b1   : > { %v3769_v27 = vpop.f32.mrb[16].mxu0 }
 0x1b2   : > { %5032 = vst [vmem:[#allocation25_spill] sm:$0xff] %v3769_v27  ;;  %v3771_v28 = vpop.f32.mrb[17].mxu0 }
 0x1b3   : > { %5033 = vst [vmem:[#allocation26_spill] sm:$0xff] %v3771_v28  ;;  %v3773_v29 = vpop.f32.mrb[18].mxu0  ;;  %v814_v30 = vmax.f32 %v3769_v27, %v3771_v28  ;;  %v4170_v28 = vld [vmem:[#allocation3 + $0xb8] sm:$0xff] }
 0x1b4   : > { %5034 = vst [vmem:[#allocation27_spill] sm:$0xff] %v3773_v29  ;;  %v3777_v31 = vpop.f32.mrb[19].mxu0  ;;  %5081 = vst [vmem:[#allocation74_spill] sm:$0xff] %v4170_v28 }
 0x1b5   : > { %5035 = vst [vmem:[#allocation28_spill] sm:$0xff] %v3777_v31  ;;  %815 = vmax.xlane.f32.xlu0 %v814_v30  ;;  %v817_v32 = vmax.f32 %v3773_v29, %v3777_v31 }
 0x1b7   : > { %818 = vmax.xlane.f32.xlu1 %v817_v32 }
 0x1b9   : > { %v3781_v33 = vpop.f32.mrb[20].mxu0 }
 0x1ba   : > { %5036 = vst [vmem:[#allocation29_spill] sm:$0xff] %v3781_v33  ;;  %v3783_v34 = vpop.f32.mrb[21].mxu0 }
 0x1bb   : > { %5037 = vst [vmem:[#allocation30_spill] sm:$0xff] %v3783_v34  ;;  %v3785_v35 = vpop.f32.mrb[22].mxu0  ;;  %v820_v36 = vmax.f32 %v3781_v33, %v3783_v34  ;;  %v4150_v34 = vld [vmem:[#allocation3 + $0xa8] sm:$0xff] }
 0x1bc   : > { %5038 = vst [vmem:[#allocation31_spill] sm:$0xff] %v3785_v35  ;;  %v3789_v37 = vpop.f32.mrb[23].mxu0 }
 0x1bd   : > { %5039 = vst [vmem:[#allocation32_spill] sm:$0xff] %v3789_v37  ;;  %821 = vmax.xlane.f32.xlu0 %v820_v36  ;;  %v823_v38 = vmax.f32 %v3785_v35, %v3789_v37 }
 0x1bf   : > { %824 = vmax.xlane.f32.xlu1 %v823_v38 }
 0x1c1   : > { %v3793_v39 = vpop.f32.mrb[24].mxu0 }
 0x1c2   : > { %5040 = vst [vmem:[#allocation33_spill] sm:$0xff] %v3793_v39  ;;  %v3795_v40 = vpop.f32.mrb[25].mxu0 }
 0x1c3   : > { %5041 = vst [vmem:[#allocation34_spill] sm:$0xff] %v3795_v40  ;;  %v3797_v41 = vpop.f32.mrb[26].mxu0  ;;  %v826_v42 = vmax.f32 %v3793_v39, %v3795_v40  ;;  %v4130_v40 = vld [vmem:[#allocation3 + $0x98] sm:$0xff] }
 0x1c4   : > { %5042 = vst [vmem:[#allocation35_spill] sm:$0xff] %v3797_v41  ;;  %v3801_v43 = vpop.f32.mrb[27].mxu0 }
 0x1c5   : > { %5043 = vst [vmem:[#allocation36_spill] sm:$0xff] %v3801_v43  ;;  %827 = vmax.xlane.f32.xlu0 %v826_v42  ;;  %v829_v44 = vmax.f32 %v3797_v41, %v3801_v43 }
 0x1c7   : > { %830 = vmax.xlane.f32.xlu1 %v829_v44 }
 0x1c9   : > { %v3805_v45 = vpop.f32.mrb[28].mxu0 }
 0x1ca   : > { %5044 = vst [vmem:[#allocation37_spill] sm:$0xff] %v3805_v45  ;;  %v3807_v46 = vpop.f32.mrb[29].mxu0 }
 0x1cb   : > { %5045 = vst [vmem:[#allocation38_spill] sm:$0xff] %v3807_v46  ;;  %v3809_v47 = vpop.f32.mrb[30].mxu0  ;;  %v832_v48 = vmax.f32 %v3805_v45, %v3807_v46  ;;  %v4110_v46 = vld [vmem:[#allocation3 + $0x88] sm:$0xff] }
 0x1cc   : > { %5046 = vst [vmem:[#allocation39_spill] sm:$0xff] %v3809_v47  ;;  %v3813_v49 = vpop.f32.mrb[31].mxu0 }
 0x1cd   : > { %5047 = vst [vmem:[#allocation40_spill] sm:$0xff] %v3813_v49  ;;  %833 = vmax.xlane.f32.xlu0 %v832_v48  ;;  %v835_v50 = vmax.f32 %v3809_v47, %v3813_v49 }
 0x1cf   : > { %836 = vmax.xlane.f32.xlu1 %v835_v50 }
 0x1d1   : > { %v3817_v51 = vpop.f32.mrb[32].mxu0 }
 0x1d2   : > { %5048 = vst [vmem:[#allocation41_spill] sm:$0xff] %v3817_v51  ;;  %v3819_v52 = vpop.f32.mrb[33].mxu0 }
 0x1d3   : > { %5049 = vst [vmem:[#allocation42_spill] sm:$0xff] %v3819_v52  ;;  %v3821_v53 = vpop.f32.mrb[34].mxu0  ;;  %v838_v54 = vmax.f32 %v3817_v51, %v3819_v52  ;;  %v4090_v52 = vld [vmem:[#allocation3 + $0x78] sm:$0xff] }
 0x1d4   : > { %5050 = vst [vmem:[#allocation43_spill] sm:$0xff] %v3821_v53  ;;  %v3825_v55 = vpop.f32.mrb[35].mxu0 }
 0x1d5   : > { %5051 = vst [vmem:[#allocation44_spill] sm:$0xff] %v3825_v55  ;;  %839 = vmax.xlane.f32.xlu0 %v838_v54  ;;  %v841_v56 = vmax.f32 %v3821_v53, %v3825_v55 }
 0x1d7   : > { %842 = vmax.xlane.f32.xlu1 %v841_v56 }
 0x1d9   : > { %v3829_v57 = vpop.f32.mrb[36].mxu0 }
 0x1da   : > { %5052 = vst [vmem:[#allocation45_spill] sm:$0xff] %v3829_v57  ;;  %v3831_v58 = vpop.f32.mrb[37].mxu0 }
 0x1db   : > { %5053 = vst [vmem:[#allocation46_spill] sm:$0xff] %v3831_v58  ;;  %v3833_v59 = vpop.f32.mrb[38].mxu0  ;;  %v844_v60 = vmax.f32 %v3829_v57, %v3831_v58  ;;  %v4070_v58 = vld [vmem:[#allocation3 + $0x68] sm:$0xff] }
 0x1dc   : > { %5054 = vst [vmem:[#allocation47_spill] sm:$0xff] %v3833_v59  ;;  %v3837_v61 = vpop.f32.mrb[39].mxu0 }
 0x1dd   : > { %5055 = vst [vmem:[#allocation48_spill] sm:$0xff] %v3837_v61  ;;  %845 = vmax.xlane.f32.xlu0 %v844_v60  ;;  %v847_v62 = vmax.f32 %v3833_v59, %v3837_v61 }
 0x1df   : > { %848 = vmax.xlane.f32.xlu1 %v847_v62 }
 0x1e1   : > { %v3841_v63 = vpop.f32.mrb[40].mxu0 }
 0x1e2   : > { %5056 = vst [vmem:[#allocation49_spill] sm:$0xff] %v3841_v63  ;;  %v3843_v0 = vpop.f32.mrb[41].mxu0 }
 0x1e3   : > { %5057 = vst [vmem:[#allocation50_spill] sm:$0xff] %v3843_v0  ;;  %v3845_v4 = vpop.f32.mrb[42].mxu0  ;;  %v850_v6 = vmax.f32 %v3841_v63, %v3843_v0  ;;  %v1862_v0 = vld [vmem:[%s3914_s18 + $0x78] sm:$0xff] }
 0x1e4   : > { %5058 = vst [vmem:[#allocation51_spill] sm:$0xff] %v3845_v4  ;;  %v3849_v10 = vpop.f32.mrb[43].mxu0 }
 0x1e5   : > { %5059 = vst [vmem:[#allocation52_spill] sm:$0xff] %v3849_v10  ;;  %851 = vmax.xlane.f32.xlu0 %v850_v6  ;;  %v853_v12 = vmax.f32 %v3845_v4, %v3849_v10 }
 0x1e7   : > { %854 = vmax.xlane.f32.xlu1 %v853_v12 }
 0x1e9   : > { %v3853_v16 = vpop.f32.mrb[44].mxu0 }
 0x1ea   : > { %5060 = vst [vmem:[#allocation53_spill] sm:$0xff] %v3853_v16  ;;  %v3855_v18 = vpop.f32.mrb[45].mxu0 }
 0x1eb   : > { %5061 = vst [vmem:[#allocation54_spill] sm:$0xff] %v3855_v18  ;;  %v3857_v19 = vpop.f32.mrb[46].mxu0  ;;  %v856_v23 = vmax.f32 %v3853_v16, %v3855_v18 }
 0x1ec   : > { %5062 = vst [vmem:[#allocation55_spill] sm:$0xff] %v3857_v19  ;;  %v3861_v25 = vpop.f32.mrb[47].mxu0 }
 0x1ed   : > { %5063 = vst [vmem:[#allocation56_spill] sm:$0xff] %v3861_v25  ;;  %857 = vmax.xlane.f32.xlu0 %v856_v23  ;;  %v859_v26 = vmax.f32 %v3857_v19, %v3861_v25  ;;  %v3975_v25 = vld [vmem:[#allocation3 + $0x20] sm:$0xff] }
 0x1ef   : > { %860 = vmax.xlane.f32.xlu1 %v859_v26 }
 0x1f1   : > { %v3865_v30 = vpop.f32.mrb[48].mxu0 }
 0x1f2   : > { %5064 = vst [vmem:[#allocation57_spill] sm:$0xff] %v3865_v30  ;;  %v3867_v32 = vpop.f32.mrb[49].mxu0 }
 0x1f3   : > { %5065 = vst [vmem:[#allocation58_spill] sm:$0xff] %v3867_v32  ;;  %v3869_v36 = vpop.f32.mrb[50].mxu0  ;;  %v862_v38 = vmax.f32 %v3865_v30, %v3867_v32  ;;  %v3961_v32 = vld [vmem:[#allocation3 + $0x18] sm:$0xff] }
 0x1f4   : > { %5066 = vst [vmem:[#allocation59_spill] sm:$0xff] %v3869_v36  ;;  %v3873_v42 = vpop.f32.mrb[51].mxu0 }
 0x1f5   : > { %5067 = vst [vmem:[#allocation60_spill] sm:$0xff] %v3873_v42  ;;  %863 = vmax.xlane.f32.xlu0 %v862_v38  ;;  %v865_v44 = vmax.f32 %v3869_v36, %v3873_v42  ;;  %v3924_v42 = vld [vmem:[#allocation3] sm:$0xff] }
 0x1f7   : > { %866 = vmax.xlane.f32.xlu1 %v865_v44 }
 0x1f9   : > { %v3877_v48 = vpop.f32.mrb[52].mxu0 }
 0x1fa   : > { %5068 = vst [vmem:[#allocation61_spill] sm:$0xff] %v3877_v48  ;;  %v3879_v50 = vpop.f32.mrb[53].mxu0 }
 0x1fb   : > { %5069 = vst [vmem:[#allocation62_spill] sm:$0xff] %v3879_v50  ;;  %v3881_v54 = vpop.f32.mrb[54].mxu0  ;;  %v868_v56 = vmax.f32 %v3877_v48, %v3879_v50 }
 0x1fc   : > { %5070 = vst [vmem:[#allocation63_spill] sm:$0xff] %v3881_v54  ;;  %v3885_v60 = vpop.f32.mrb[55].mxu0 }
 0x1fd   : > { %5071 = vst [vmem:[#allocation64_spill] sm:$0xff] %v3885_v60  ;;  %869 = vmax.xlane.f32.xlu0 %v868_v56  ;;  %v871_v62 = vmax.f32 %v3881_v54, %v3885_v60 }
 0x1ff   : > { %872 = vmax.xlane.f32.xlu1 %v871_v62 }
 0x201   : > { %v3889_v6 = vpop.f32.mrb[56].mxu0 }
 0x202   : > { %5072 = vst [vmem:[#allocation65_spill] sm:$0xff] %v3889_v6  ;;  %v3891_v12 = vpop.f32.mrb[57].mxu0 }
 0x203   : > { %5073 = vst [vmem:[#allocation66_spill] sm:$0xff] %v3891_v12  ;;  %v3893_v23 = vpop.f32.mrb[58].mxu0  ;;  %v874_v26 = vmax.f32 %v3889_v6, %v3891_v12  ;;  %v1850_v6 = vld [vmem:[%s3914_s18 + $0x18] sm:$0xff] }
 0x204   : > { %5074 = vst [vmem:[#allocation67_spill] sm:$0xff] %v3893_v23  ;;  %v3897_v38 = vpop.f32.mrb[59].mxu0 }
 0x205   : > { %5075 = vst [vmem:[#allocation68_spill] sm:$0xff] %v3897_v38  ;;  %875 = vmax.xlane.f32.xlu0 %v874_v26  ;;  %v877_v44 = vmax.f32 %v3893_v23, %v3897_v38  ;;  %v1863_v26 = vld [vmem:[%s3914_s18 + $0x80] sm:$0xff]  ;;  %v1848_v38 = vld [vmem:[%s3914_s18 + $0x8] sm:$0xff]  ;;  %v1849_v23 = vld [vmem:[%s3914_s18 + $0x10] sm:$0xff] }
 0x206   : > { %v1880_v48 = vpack.c.bf16 %v1850_v6, %v1849_v23  ;;  %v3933_v6 = vld [vmem:[#allocation3 + $0x8] sm:$0xff]  ;;  %v1870_v23 = vld [vmem:[%s3914_s18 + $0xb8] sm:$0xff] }
 0x207   : > { %878 = vmax.xlane.f32.xlu1 %v877_v44  ;;  %v1864_v44 = vld [vmem:[%s3914_s18 + $0x88] sm:$0xff] }
 0x209   : > { %v3901_v56 = vpop.f32.mrb[60].mxu0 }
 0x20a   : > { %5076 = vst [vmem:[#allocation69_spill] sm:$0xff] %v3901_v56  ;;  %v3903_v62 = vpop.f32.mrb[61].mxu0 }
 0x20b   : > { %5077 = vst [vmem:[#allocation70_spill] sm:$0xff] %v3903_v62  ;;  %v3905_v60 = vpop.f32.mrb[62].mxu0  ;;  %v880_v54 = vmax.f32 %v3901_v56, %v3903_v62  ;;  %v1887_v62 = vpack.c.bf16 %v1864_v44, %v1863_v26  ;;  %v1847_v56 = vld [vmem:[%s3914_s18] sm:$0xff]  ;;  %v1868_v44 = vld [vmem:[%s3914_s18 + $0xa8] sm:$0xff] }
 0x20c   : > { %5078 = vst [vmem:[#allocation71_spill] sm:$0xff] %v3905_v60  ;;  %v3909_v50 = vpop.f32.mrb[63].mxu0  ;;  %v1867_v26 = vld [vmem:[%s3914_s18 + $0xa0] sm:$0xff] }
 0x20d   : > { %5079 = vst [vmem:[#allocation72_spill] sm:$0xff] %v3909_v50  ;;  %v883_v12 = vmax.f32 %v3905_v60, %v3909_v50  ;;  %881 = vmax.xlane.f32.xlu0 %v880_v54  ;;  %v1879_v54 = vpack.c.bf16 %v1848_v38, %v1847_v56  ;;  %2705 = vmatprep.subr.bf16.mxu1 %v1887_v62  ;;  %v1866_v50 = vld [vmem:[%s3914_s18 + $0x98] sm:$0xff]  ;;  %v1851_v38 = vld [vmem:[%s3914_s18 + $0x20] sm:$0xff]  ;;  %v1852_v56 = vld [vmem:[%s3914_s18 + $0x28] sm:$0xff] }
 0x20e   : > { %v1889_v36 = vpack.c.bf16 %v1868_v44, %v1867_v26  ;;  %v1854_v44 = vld [vmem:[%s3914_s18 + $0x38] sm:$0xff] }
 0x20f   : > { %884 = vmax.xlane.f32.xlu1 %v883_v12  ;;  %2706 = vmatpush3.bf16.msra.mxu1 %v1879_v54  ;;  %v1865_v12 = vld [vmem:[%s3914_s18 + $0x90] sm:$0xff]  ;;  %v1881_v54 = vpack.c.bf16 %v1852_v56, %v1851_v38 }
 0x210   : > { %v1888_v60 = vpack.c.bf16 %v1866_v50, %v1865_v12 }
 0x212   : > { %2707 = vmatprep.subr.bf16.mxu1 %v1888_v60  ;;  %v1869_v60 = vld [vmem:[%s3914_s18 + $0xb0] sm:$0xff] }
 0x213   : > { %2708 = vmatpush3.bf16.msra.mxu1 %v1880_v48  ;;  %v1890_v26 = vpack.c.bf16 %v1870_v23, %v1869_v60  ;;  %v1871_v60 = vld [vmem:[%s3914_s18 + $0xc0] sm:$0xff]  ;;  %v1872_v23 = vld [vmem:[%s3914_s18 + $0xc8] sm:$0xff] }
 0x214   : > { %2709 = vmatprep.subr.bf16.mxu1 %v1889_v36  ;;  %v1853_v36 = vld [vmem:[%s3914_s18 + $0x30] sm:$0xff] }
 0x215   : > { %v1882_v56 = vpack.c.bf16 %v1854_v44, %v1853_v36  ;;  %v1855_v36 = vld [vmem:[%s3914_s18 + $0x40] sm:$0xff]  ;;  %v1856_v44 = vld [vmem:[%s3914_s18 + $0x48] sm:$0xff] }
 0x217   : > { %2710 = vmatpush3.bf16.msra.mxu1 %v1881_v54  ;;  %v1883_v54 = vpack.c.bf16 %v1856_v44, %v1855_v36  ;;  %v1857_v36 = vld [vmem:[%s3914_s18 + $0x50] sm:$0xff]  ;;  %v1858_v44 = vld [vmem:[%s3914_s18 + $0x58] sm:$0xff] }
 0x218   : > { %2711 = vmatprep.subr.bf16.mxu1 %v1890_v26  ;;  %v1884_v30 = vpack.c.bf16 %v1858_v44, %v1857_v36  ;;  %v1860_v44 = vld [vmem:[%s3914_s18 + $0x68] sm:$0xff] }
 0x21b   : > { %2712 = vmatpush3.bf16.msra.mxu1 %v1882_v56  ;;  %v1873_v56 = vld [vmem:[%s3914_s18 + $0xd0] sm:$0xff] }
 0x222   : > { %v792_v62 = vpop.xlane.xlu0 %791 }
 0x223   : > { %v3931_v50 = vmax.f32 %v3924_v42, %v792_v62  ;;  %v3947_v62 = vld [vmem:[#allocation3 + $0x10] sm:$0xff] }
 0x225   : > { %2120 = vst.msk [vmem:[#allocation3] sm:$0xff] %vm404_vm0, %v3931_v50  ;;  %1016 = vperm.xlu0 %2896, %v3931_v50  }
 0x226   : > { %v795_v12 = vpop.xlane.xlu0 %794 }
 0x227   : > { %v3945_v38 = vmax.f32 %v3933_v6, %v795_v12  ;;  %v1891_v12 = vpack.c.bf16 %v1872_v23, %v1871_v60  ;;  %v1874_v60 = vld [vmem:[%s3914_s18 + $0xd8] sm:$0xff] }
 0x229   : > { %2121 = vst.msk [vmem:[#allocation3 + $0x8] sm:$0xff] %vm404_vm0, %v3945_v38  ;;  %1021 = vperm.xlu1 %2897, %v3945_v38   ;;  %2713 = vmatprep.subr.bf16.mxu1 %v1891_v12 }
 0x22a   : > { %v798_v48 = vpop.xlane.xlu1 %797  ;;  %2714 = vmatpush3.bf16.msra.mxu1 %v1883_v54  ;;  %v1875_v54 = vld [vmem:[%s3914_s18 + $0xe0] sm:$0xff] }
 0x22b   : > { %v3959_v26 = vmax.f32 %v3947_v62, %v798_v48  ;;  %v1892_v48 = vpack.c.bf16 %v1874_v60, %v1873_v56  ;;  %v1876_v56 = vld [vmem:[%s3914_s18 + $0xe8] sm:$0xff] }
 0x22c   : > { %v1893_v36 = vpack.c.bf16 %v1876_v56, %v1875_v54  ;;  %v1877_v54 = vld [vmem:[%s3914_s18 + $0xf0] sm:$0xff]  ;;  %v1878_v56 = vld [vmem:[%s3914_s18 + $0xf8] sm:$0xff] }
 0x22d   : > { %2122 = vst.msk [vmem:[#allocation3 + $0x10] sm:$0xff] %vm404_vm0, %v3959_v26  ;;  %1026 = vperm.xlu1 %2897, %v3959_v26   ;;  %2715 = vmatprep.subr.bf16.mxu1 %v1892_v48  ;;  %v1859_v48 = vld [vmem:[%s3914_s18 + $0x60] sm:$0xff]  ;;  %v1894_v4 = vpack.c.bf16 %v1878_v56, %v1877_v54 }
 0x22e   : > { %v801_v23 = vpop.xlane.xlu1 %800  ;;  %2716 = vmatpush3.bf16.msra.mxu1 %v1884_v30  ;;  %v1885_v18 = vpack.c.bf16 %v1860_v44, %v1859_v48  ;;  %v4007_v44 = vld [vmem:[#allocation3 + $0x30] sm:$0xff]  ;;  %v4050_v30 = vld [vmem:[#allocation3 + $0x58] sm:$0xff] }
 0x22f   : > { %v3973_v12 = vmax.f32 %v3961_v32, %v801_v23  ;;  %v3984_v23 = vld [vmem:[#allocation3 + $0x28] sm:$0xff]  ;;  %2717 = vmatprep.subr.bf16.mxu1 %v1893_v36 }
 0x231   : > { %2123 = vst.msk [vmem:[#allocation3 + $0x18] sm:$0xff] %vm404_vm0, %v3973_v12  ;;  %1031 = vperm.xlu1 %2897, %v3973_v12  }
 0x232   : > { %v804_v60 = vpop.xlane.xlu0 %803  ;;  %2718 = vmatpush3.bf16.msra.mxu1 %v1885_v18  ;;  %v4010_v18 = vld [vmem:[#allocation3 + $0x38] sm:$0xff] }
 0x233   : > { %v3989_v19 = vmax.f32 %v3975_v25, %v804_v60  ;;  %v1861_v60 = vld [vmem:[%s3914_s18 + $0x70] sm:$0xff]  ;;  %2719 = vmatprep.subr.bf16.mxu1 %v1894_v4 }
 0x234   : > { %v807_v16 = vpop.xlane.xlu1 %806  ;;  %v1886_v48 = vpack.c.bf16 %v1862_v0, %v1861_v60  ;;  %v4027_v60 = vld [vmem:[#allocation3 + $0x40] sm:$0xff] }
 0x235   : > { %2124 = vst.msk [vmem:[#allocation3 + $0x20] sm:$0xff] %vm404_vm0, %v3989_v19  ;;  %v3996_v10 = vmax.f32 %v3984_v23, %v807_v16  ;;  %1036 = vperm.xlu1 %2897, %v3989_v19  }
 0x236   : > { %2720 = vmatpush3.bf16.msra.mxu1 %v1886_v48 }
 0x237   : > { %2125 = vst.msk [vmem:[#allocation3 + $0x28] sm:$0xff] %vm404_vm0, %v3996_v10 }
 0x239   : > { %1041 = vperm.xlu1 %2897, %v3996_v10  }
 0x23a   : > { %v810_v16 = vpop.xlane.xlu0 %809 }
 0x23b   : > { %v4013_v54 = vmax.f32 %v4007_v44, %v810_v16  ;;  %v4030_v16 = vld [vmem:[#allocation3 + $0x48] sm:$0xff] }
 0x23c   : > { %v813_v56 = vpop.xlane.xlu1 %812 }
 0x23d   : > { %2126 = vst.msk [vmem:[#allocation3 + $0x30] sm:$0xff] %vm404_vm0, %v4013_v54  ;;  %v4020_v0 = vmax.f32 %v4010_v18, %v813_v56  ;;  %1046 = vperm.xlu1 %2897, %v4013_v54  }
 0x23f   : > { %2127 = vst.msk [vmem:[#allocation3 + $0x38] sm:$0xff] %vm404_vm0, %v4020_v0 }
 0x241   : > { %1051 = vperm.xlu1 %2897, %v4020_v0  }
 0x242   : > { %v816_v48 = vpop.xlane.xlu0 %815 }
 0x243   : > { %v4033_v36 = vmax.f32 %v4027_v60, %v816_v48  ;;  %v4048_v48 = vld [vmem:[#allocation3 + $0x50] sm:$0xff] }
 0x244   : > { %v819_v56 = vpop.xlane.xlu1 %818 }
 0x245   : > { %2128 = vst.msk [vmem:[#allocation3 + $0x40] sm:$0xff] %vm404_vm0, %v4033_v36  ;;  %v4040_v4 = vmax.f32 %v4030_v16, %v819_v56  ;;  %1056 = vperm.xlu1 %2897, %v4033_v36  }
 0x247   : > { %2129 = vst.msk [vmem:[#allocation3 + $0x48] sm:$0xff] %vm404_vm0, %v4040_v4  ;;  %1061 = vperm.xlu0 %2896, %v4040_v4  }
 0x24a   : > { %v822_v61 = vpop.xlane.xlu0 %821 }
 0x24b   : > { %v4053_v59 = vmax.f32 %v4048_v48, %v822_v61  ;;  %v4068_v61 = vld [vmem:[#allocation3 + $0x60] sm:$0xff] }
 0x24c   : > { %v825_v56 = vpop.xlane.xlu1 %824 }
 0x24d   : > { %2130 = vst.msk [vmem:[#allocation3 + $0x50] sm:$0xff] %vm404_vm0, %v4053_v59  ;;  %v4060_v63 = vmax.f32 %v4050_v30, %v825_v56  ;;  %1066 = vperm.xlu1 %2897, %v4053_v59  }
 0x24f   : > { %2131 = vst.msk [vmem:[#allocation3 + $0x58] sm:$0xff] %vm404_vm0, %v4060_v63  ;;  %1071 = vperm.xlu0 %2896, %v4060_v63  }
 0x252   : > { %v828_v55 = vpop.xlane.xlu0 %827 }
 0x253   : > { %v4073_v53 = vmax.f32 %v4068_v61, %v828_v55  ;;  %v4088_v55 = vld [vmem:[#allocation3 + $0x70] sm:$0xff] }
 0x254   : > { %v831_v56 = vpop.xlane.xlu1 %830 }
 0x255   : > { %2132 = vst.msk [vmem:[#allocation3 + $0x60] sm:$0xff] %vm404_vm0, %v4073_v53  ;;  %v4080_v57 = vmax.f32 %v4070_v58, %v831_v56  ;;  %1076 = vperm.xlu1 %2897, %v4073_v53  }
 0x257   : > { %2133 = vst.msk [vmem:[#allocation3 + $0x68] sm:$0xff] %vm404_vm0, %v4080_v57  ;;  %1081 = vperm.xlu0 %2896, %v4080_v57  }
 0x25a   : > { %v834_v49 = vpop.xlane.xlu0 %833 }
 0x25b   : > { %v4093_v47 = vmax.f32 %v4088_v55, %v834_v49  ;;  %v4108_v49 = vld [vmem:[#allocation3 + $0x80] sm:$0xff] }
 0x25c   : > { %v837_v56 = vpop.xlane.xlu1 %836 }
 0x25d   : > { %2134 = vst.msk [vmem:[#allocation3 + $0x70] sm:$0xff] %vm404_vm0, %v4093_v47  ;;  %v4100_v51 = vmax.f32 %v4090_v52, %v837_v56  ;;  %1086 = vperm.xlu1 %2897, %v4093_v47  }
 0x25f   : > { %2135 = vst.msk [vmem:[#allocation3 + $0x78] sm:$0xff] %vm404_vm0, %v4100_v51  ;;  %1091 = vperm.xlu0 %2896, %v4100_v51  }
 0x262   : > { %v840_v43 = vpop.xlane.xlu0 %839 }
 0x263   : > { %v4113_v41 = vmax.f32 %v4108_v49, %v840_v43  ;;  %v4128_v43 = vld [vmem:[#allocation3 + $0x90] sm:$0xff] }
 0x264   : > { %v843_v56 = vpop.xlane.xlu1 %842 }
 0x265   : > { %2136 = vst.msk [vmem:[#allocation3 + $0x80] sm:$0xff] %vm404_vm0, %v4113_v41  ;;  %v4120_v45 = vmax.f32 %v4110_v46, %v843_v56  ;;  %1096 = vperm.xlu1 %2897, %v4113_v41  }
 0x267   : > { %2137 = vst.msk [vmem:[#allocation3 + $0x88] sm:$0xff] %vm404_vm0, %v4120_v45  ;;  %1101 = vperm.xlu0 %2896, %v4120_v45  }
 0x26a   : > { %v846_v37 = vpop.xlane.xlu0 %845 }
 0x26b   : > { %v4133_v35 = vmax.f32 %v4128_v43, %v846_v37  ;;  %v4148_v37 = vld [vmem:[#allocation3 + $0xa0] sm:$0xff] }
 0x26c   : > { %v849_v56 = vpop.xlane.xlu1 %848 }
 0x26d   : > { %2138 = vst.msk [vmem:[#allocation3 + $0x90] sm:$0xff] %vm404_vm0, %v4133_v35  ;;  %v4140_v39 = vmax.f32 %v4130_v40, %v849_v56  ;;  %1106 = vperm.xlu1 %2897, %v4133_v35  }
 0x26f   : > { %2139 = vst.msk [vmem:[#allocation3 + $0x98] sm:$0xff] %vm404_vm0, %v4140_v39  ;;  %1111 = vperm.xlu0 %2896, %v4140_v39  }
 0x272   : > { %v852_v31 = vpop.xlane.xlu0 %851 }
 0x273   : > { %v4153_v29 = vmax.f32 %v4148_v37, %v852_v31  ;;  %v4168_v31 = vld [vmem:[#allocation3 + $0xb0] sm:$0xff] }
 0x274   : > { %v855_v56 = vpop.xlane.xlu1 %854  ;;  %5080 = vst [vmem:[#allocation73_spill] sm:$0xff] %v4168_v31 }
 0x275   : > { %2140 = vst.msk [vmem:[#allocation3 + $0xa0] sm:$0xff] %vm404_vm0, %v4153_v29  ;;  %v4160_v33 = vmax.f32 %v4150_v34, %v855_v56  ;;  %1116 = vperm.xlu1 %2897, %v4153_v29  }
 0x277   : > { %2141 = vst.msk [vmem:[#allocation3 + $0xa8] sm:$0xff] %vm404_vm0, %v4160_v33  ;;  %1121 = vperm.xlu0 %2896, %v4160_v33  }
 0x27a   : > { %v858_v24 = vpop.xlane.xlu0 %857 }
 0x27b   : > { %v4173_v22 = vmax.f32 %v4168_v31, %v858_v24  ;;  %v4188_v24 = vld [vmem:[#allocation3 + $0xc0] sm:$0xff] }
 0x27c   : > { %v861_v56 = vpop.xlane.xlu1 %860  ;;  %5084 = vst [vmem:[#allocation77_spill] sm:$0xff] %v4188_v24 }
 0x27d   : > { %5082 = vst [vmem:[#allocation75_spill] sm:$0xff] %v4173_v22  ;;  %2142 = vst.msk [vmem:[#allocation3 + $0xb0] sm:$0xff] %vm404_vm0, %v4173_v22  ;;  %v4180_v27 = vmax.f32 %v4170_v28, %v861_v56  ;;  %1126 = vperm.xlu1 %2897, %v4173_v22   ;;  %v4206_v28 = vld [vmem:[#allocation3 + $0xd8] sm:$0xff] }
 0x27e   : > { %5089 = vst [vmem:[#allocation82_spill] sm:$0xff] %v4206_v28 }
 0x27f   : > { %5083 = vst [vmem:[#allocation76_spill] sm:$0xff] %v4180_v27  ;;  %2143 = vst.msk [vmem:[#allocation3 + $0xb8] sm:$0xff] %vm404_vm0, %v4180_v27  ;;  %1131 = vperm.xlu0 %2896, %v4180_v27  }
 0x282   : > { %v864_v17 = vpop.xlane.xlu0 %863 }
 0x283   : > { %v4193_v15 = vmax.f32 %v4188_v24, %v864_v17 }
 0x284   : > { %v867_v56 = vpop.xlane.xlu1 %866 }
 0x285   : > { %5086 = vst [vmem:[#allocation79_spill] sm:$0xff] %v4193_v15  ;;  %2144 = vst.msk [vmem:[#allocation3 + $0xc0] sm:$0xff] %vm404_vm0, %v4193_v15  ;;  %v4198_v22 = vmax.f32 %v4190_v21, %v867_v56  ;;  %1136 = vperm.xlu1 %2897, %v4193_v15   ;;  %v4220_v21 = vld [vmem:[#allocation3 + $0xe0] sm:$0xff]  ;;  %v4225_v15 = vld [vmem:[#allocation3 + $0xe8] sm:$0xff] }
 0x287   : > { %5087 = vst [vmem:[#allocation80_spill] sm:$0xff] %v4198_v22  ;;  %2145 = vst.msk [vmem:[#allocation3 + $0xc8] sm:$0xff] %vm404_vm0, %v4198_v22  ;;  %1141 = vperm.xlu0 %2896, %v4198_v22  }
 0x28a   : > { %v870_v27 = vpop.xlane.xlu0 %869 }
 0x28b   : > { %v4209_v17 = vmax.f32 %v4204_v20, %v870_v27  ;;  %v5092_v27 = vsub.f32 %v3933_v6, %v3945_v38  ;;  %v5094_v6 = vsub.f32 %v3947_v62, %v3959_v26  ;;  %v4253_v62 = vld [vmem:[#allocation3 + $0xf8] sm:$0xff] }
 0x28c   : > { %v873_v24 = vpop.xlane.xlu1 %872 }
 0x28d   : > { %5090 = vst [vmem:[#allocation83_spill] sm:$0xff] %v4209_v17  ;;  %2146 = vst.msk [vmem:[#allocation3 + $0xd0] sm:$0xff] %vm404_vm0, %v4209_v17  ;;  %v4214_v56 = vmax.f32 %v4206_v28, %v873_v24  ;;  %1146 = vperm.xlu1 %2897, %v4209_v17   ;;  %v952_v20 = vmul.f32 1.442695, %v5092_v27  ;;  %v5093_v24 = vsub.f32 %v3924_v42, %v3931_v50  ;;  %v954_v38 = vmul.f32 1.442695, %v5094_v6 }
 0x28e   : > { %v4248_v50 = vld [vmem:[#allocation3 + $0xf0] sm:$0xff] }
 0x28f   : > { %5091 = vst [vmem:[#allocation84_spill] sm:$0xff] %v4214_v56  ;;  %2147 = vst.msk [vmem:[#allocation3 + $0xd8] sm:$0xff] %vm404_vm0, %v4214_v56  ;;  %1151 = vperm.xlu0 %2896, %v4214_v56   ;;  %v950_v28 = vmul.f32 1.442695, %v5093_v24  ;;  %2898 = vpow2.f32 %v952_v20  ;;  %v5096_v20 = vsub.f32 %v3975_v25, %v3989_v19  ;;  %v5099_v25 = vsub.f32 %v4010_v18, %v4020_v0 }
 0x291   : > { %2900 = vpow2.f32 %v950_v28  ;;  %v5097_v28 = vsub.f32 %v3984_v23, %v3996_v10  ;;  %v5100_v10 = vsub.f32 %v4027_v60, %v4033_v36  ;;  %v5102_v36 = vsub.f32 %v4048_v48, %v4053_v59 }
 0x292   : > { %v876_v22 = vpop.xlane.xlu0 %875  ;;  %2902 = vpow2.f32 %v954_v38  ;;  %v964_v38 = vmul.f32 1.442695, %v5099_v25  ;;  %v5105_v59 = vsub.f32 %v4070_v58, %v4080_v57  ;;  %v5108_v25 = vsub.f32 %v4108_v49, %v4113_v41 }
 0x293   : > { %v4228_v31 = vmax.f32 %v4220_v21, %v876_v22  ;;  %v5095_v22 = vsub.f32 %v3961_v32, %v3973_v12  ;;  %v960_v24 = vmul.f32 1.442695, %v5097_v28  ;;  %v5098_v12 = vsub.f32 %v4007_v44, %v4013_v54 }
 0x294   : > { %v879_v17 = vpop.xlane.xlu1 %878  ;;  %v966_v23 = vmul.f32 1.442695, %v5100_v10  ;;  %v970_v0 = vmul.f32 1.442695, %v5102_v36  ;;  %v976_v48 = vmul.f32 1.442695, %v5105_v59 }
 0x295   : > { %2148 = vst.msk [vmem:[#allocation3 + $0xe0] sm:$0xff] %vm404_vm0, %v4228_v31  ;;  %v4236_v56 = vmax.f32 %v4225_v15, %v879_v17  ;;  %1156 = vperm.xlu1 %2897, %v4228_v31   ;;  %v956_v42 = vmul.f32 1.442695, %v5095_v22  ;;  %v958_v17 = vmul.f32 1.442695, %v5096_v20  ;;  %v5101_v22 = vsub.f32 %v4030_v16, %v4040_v4 }
 0x296   : > { %v962_v6 = vmul.f32 1.442695, %v5098_v12 }
 0x297   : > { %2149 = vst.msk [vmem:[#allocation3 + $0xe8] sm:$0xff] %vm404_vm0, %v4236_v56  ;;  %1161 = vperm.xlu0 %2896, %v4236_v56   ;;  %2904 = vpow2.f32 %v956_v42  ;;  %v968_v18 = vmul.f32 1.442695, %v5101_v22  ;;  %v5103_v42 = vsub.f32 %v4050_v30, %v4060_v63 }
 0x298   : > { %2906 = vpow2.f32 %v958_v17  ;;  %v5104_v17 = vsub.f32 %v4068_v61, %v4073_v53  ;;  %v5106_v53 = vsub.f32 %v4088_v55, %v4093_v47 }
 0x299   : > { %v4281_v54 = vpop.eup %2898  ;;  %2908 = vpow2.f32 %v960_v24  ;;  %v972_v20 = vmul.f32 1.442695, %v5103_v42 }
 0x29a   : > { %v882_v27 = vpop.xlane.xlu0 %881  ;;  %2910 = vpow2.f32 %v962_v6  ;;  %v974_v4 = vmul.f32 1.442695, %v5104_v17  ;;  %v978_v61 = vmul.f32 1.442695, %v5106_v53 }
 0x29b   : > { %v4256_v26 = vmax.f32 %v4248_v50, %v882_v27  ;;  %v4290_v60 = vpop.eup %2900  ;;  %2912 = vpow2.f32 %v964_v38  ;;  %v982_v38 = vmul.f32 1.442695, %v5108_v25  ;;  %v5118_v25 = vld [vmem:[#allocation77_spill] sm:$0xff] }
 0x29c   : > { %v885_v32 = vpop.xlane.xlu1 %884  ;;  %2914 = vpow2.f32 %v966_v23  ;;  %v4299_v16 = vpop.eup %2902 }
 0x29d   : > { %2150 = vst.msk [vmem:[#allocation3 + $0xf0] sm:$0xff] %vm404_vm0, %v4256_v26  ;;  %v4267_v19 = vmax.f32 %v4253_v62, %v885_v32  ;;  %1166 = vperm.xlu1 %2897, %v4256_v26   ;;  %2916 = vpow2.f32 %v968_v18 }
 0x29e   : > { %2918 = vpow2.f32 %v970_v0 }
 0x29f   : > { %2151 = vst.msk [vmem:[#allocation3 + $0xf8] sm:$0xff] %vm404_vm0, %v4267_v19  ;;  %1171 = vperm.xlu0 %2896, %v4267_v19   ;;  %2920 = vpow2.f32 %v972_v20 }
 0x2a0   : > { %2922 = vpow2.f32 %v974_v4 }
 0x2a1   : > { %1630 = vperm.xlu1 %2897, %v4281_v54   ;;  %v4307_v30 = vpop.eup %2904  ;;  %2924 = vpow2.f32 %v976_v48 }
 0x2a2   : > { %v4313_v57 = vpop.eup %2906 }
 0x2a3   : > { %1625 = vperm.xlu0 %2896, %v4290_v60   ;;  %v4321_v47 = vpop.eup %2908 }
 0x2a4   : > { %v1017_v27 = vpop.permute.xlu0 %1016  ;;  %v4323_v55 = vpop.eup %2910 }
 0x2a5   : > { %v1174_v28 = vsub.f32 %v3689_v1, %v1017_v27  ;;  %v1175_v63 = vsub.f32 %v3691_v2, %v1017_v27  ;;  %1635 = vperm.xlu1 %2897, %v4299_v16   ;;  %v5107_v1 = vsub.f32 %v4090_v52, %v4100_v51  ;;  %v4329_v10 = vpop.eup %2912  ;;  %v5112_v27 = vsub.f32 %v4148_v37, %v4153_v29 }
 0x2a6   : > { %v4334_v22 = vpop.eup %2914 }
 0x2a7   : > { %v1238_v24 = vmul.f32 1.442695, %v1174_v28  ;;  %v1240_v32 = vmul.f32 1.442695, %v1175_v63  ;;  %1640 = vperm.xlu0 %2896, %v4307_v30   ;;  %v980_v2 = vmul.f32 1.442695, %v5107_v1  ;;  %v4339_v49 = vpop.eup %2916 }
 0x2a8   : > { %v1022_v58 = vpop.permute.xlu1 %1021  ;;  %v4341_v36 = vpop.eup %2918 }
 0x2a9   : > { %2926 = vpow2.f32 %v1238_v24  ;;  %v1176_v12 = vsub.f32 %v3693_v3, %v1022_v58  ;;  %v1177_v6 = vsub.f32 %v3697_v5, %v1022_v58  ;;  %1645 = vperm.xlu1 %2897, %v4313_v57   ;;  %v5109_v3 = vsub.f32 %v4110_v46, %v4120_v45  ;;  %v4347_v20 = vpop.eup %2920  ;;  %v5114_v58 = vld [vmem:[#allocation73_spill] sm:$0xff] }
 0x2aa   : > { %2928 = vpow2.f32 %v1240_v32  ;;  %v5110_v45 = vsub.f32 %v4128_v43, %v4133_v35  ;;  %v4352_v4 = vpop.eup %2922 }
 0x2ab   : > { %2930 = vpow2.f32 %v978_v61  ;;  %v1242_v51 = vmul.f32 1.442695, %v1176_v12  ;;  %v1244_v52 = vmul.f32 1.442695, %v1177_v6  ;;  %1650 = vperm.xlu0 %2896, %v4321_v47   ;;  %v984_v5 = vmul.f32 1.442695, %v5109_v3  ;;  %v4357_v43 = vpop.eup %2924 }
 0x2ac   : > { %2932 = vpow2.f32 %v980_v2  ;;  %v1027_v23 = vpop.permute.xlu1 %1026  ;;  %v986_v46 = vmul.f32 1.442695, %v5110_v45  ;;  %v5115_v12 = vld [vmem:[#allocation75_spill] sm:$0xff] }
 0x2ad   : > { %2934 = vpow2.f32 %v1242_v51  ;;  %v1178_v18 = vsub.f32 %v3701_v7, %v1027_v23  ;;  %v1179_v41 = vsub.f32 %v3703_v8, %v1027_v23  ;;  %1655 = vperm.xlu1 %2897, %v4323_v55   ;;  %v5111_v7 = vsub.f32 %v4130_v40, %v4140_v39 }
 0x2ae   : > { %2936 = vpow2.f32 %v1244_v52  ;;  %v990_v39 = vmul.f32 1.442695, %v5112_v27 }
 0x2af   : > { %2938 = vpow2.f32 %v982_v38  ;;  %v1246_v0 = vmul.f32 1.442695, %v1178_v18  ;;  %v1248_v42 = vmul.f32 1.442695, %v1179_v41  ;;  %1660 = vperm.xlu0 %2896, %v4329_v10   ;;  %v988_v8 = vmul.f32 1.442695, %v5111_v7 }
 0x2b0   : > { %2940 = vpow2.f32 %v984_v5  ;;  %v1032_v17 = vpop.permute.xlu1 %1031  ;;  %v5119_v5 = vld [vmem:[#allocation19_spill] sm:$0xff]  ;;  %v5120_v18 = vld [vmem:[#allocation20_spill] sm:$0xff]  ;;  %v5121_v7 = vld [vmem:[#allocation74_spill] sm:$0xff] }
 0x2b1   : > { %2942 = vpow2.f32 %v1246_v0  ;;  %v1180_v59 = vsub.f32 %v3705_v9, %v1032_v17  ;;  %v1181_v35 = vsub.f32 %v3709_v11, %v1032_v17  ;;  %1665 = vperm.xlu1 %2897, %v4334_v22   ;;  %v5113_v9 = vsub.f32 %v4150_v34, %v4160_v33 }
 0x2b2   : > { %2944 = vpow2.f32 %v1248_v42 }
 0x2b3   : > { %v2927_v48 = vpop.eup %2926  ;;  %2946 = vpow2.f32 %v986_v46  ;;  %v1250_v40 = vmul.f32 1.442695, %v1180_v59  ;;  %v1252_v28 = vmul.f32 1.442695, %v1181_v35  ;;  %1670 = vperm.xlu0 %2896, %v4339_v49   ;;  %v992_v11 = vmul.f32 1.442695, %v5113_v9 }
 0x2b4   : > { %v2929_v63 = vpop.eup %2928  ;;  %2948 = vpow2.f32 %v988_v8  ;;  %v1037_v53 = vpop.permute.xlu1 %1036  ;;  %v5122_v8 = vld [vmem:[#allocation76_spill] sm:$0xff]  ;;  %v5126_v9 = vld [vmem:[#allocation83_spill] sm:$0xff] }
 0x2b5   : > { %v4366_v61 = vpop.eup %2930  ;;  %2950 = vpow2.f32 %v1250_v40  ;;  %v1182_v24 = vsub.f32 %v3713_v13, %v1037_v53  ;;  %v1183_v32 = vsub.f32 %v3715_v14, %v1037_v53  ;;  %1675 = vperm.xlu1 %2897, %v4341_v36   ;;  %v4371_v29 = vadd.f32 %v2929_v63, %v2927_v48  ;;  %v5117_v14 = vld [vmem:[#allocation79_spill] sm:$0xff]  ;;  %v5124_v35 = vld [vmem:[#allocation80_spill] sm:$0xff] }
 0x2b6   : > { %v4373_v37 = vpop.eup %2932  ;;  %2952 = vpow2.f32 %v1252_v28  ;;  %v5116_v13 = vsub.f32 %v5114_v58, %v5115_v12  ;;  %v942_v38 = vsub.f32 %v5118_v25, %v5117_v14  ;;  %v5123_v17 = vsub.f32 %v5121_v7, %v5122_v8  ;;  %v5132_v7 = vld [vmem:[#allocation23_spill] sm:$0xff] }
 0x2b7   : > { %v2935_v1 = vpop.eup %2934  ;;  %2954 = vpow2.f32 %v990_v39  ;;  %v1254_v2 = vmul.f32 1.442695, %v1182_v24  ;;  %v1256_v33 = vmul.f32 1.442695, %v1183_v32  ;;  %1680 = vperm.xlu0 %2896, %v4347_v20  }
 0x2b8   : > { %v2937_v34 = vpop.eup %2936  ;;  %2956 = vpow2.f32 %v992_v11  ;;  %v994_v6 = vmul.f32 1.442695, %v5116_v13  ;;  %v1042_v51 = vpop.permute.xlu1 %1041  ;;  %v1815_v52 = vpack.c.bf16 %v2935_v1, %v2927_v48  ;;  %v996_v59 = vmul.f32 1.442695, %v5123_v17  ;;  %v5125_v48 = vld [vmem:[#allocation78_spill] sm:$0xff]  ;;  %v5127_v11 = vld [vmem:[#allocation81_spill] sm:$0xff] }
 0x2b9   : > { %v4381_v3 = vpop.eup %2938  ;;  %2958 = vpow2.f32 %v1254_v2  ;;  %v1184_v23 = vsub.f32 %v5119_v5, %v1042_v51  ;;  %v1185_v41 = vsub.f32 %v5120_v18, %v1042_v51  ;;  %1685 = vperm.xlu1 %2897, %v4352_v4   ;;  %v1816_v45 = vpack.c.bf16 %v2937_v34, %v2929_v63  ;;  %v5131_v5 = vld [vmem:[#allocation82_spill] sm:$0xff]  ;;  %v5133_v17 = vld [vmem:[#allocation24_spill] sm:$0xff] }
 0x2ba   : > { %v4386_v46 = vpop.eup %2940  ;;  %2960 = vpow2.f32 %v1256_v33  ;;  %v4388_v0 = vadd.f32 %v2937_v34, %v2935_v1  ;;  %v943_v27 = vsub.f32 %v5125_v48, %v5124_v35  ;;  %v998_v63 = vmul.f32 1.442695, %v942_v38  ;;  %v5128_v1 = vld [vmem:[#allocation21_spill] sm:$0xff]  ;;  %v5129_v33 = vld [vmem:[#allocation22_spill] sm:$0xff] }
 0x2bb   : > { %v2943_v42 = vpop.eup %2942  ;;  %v1258_v39 = vmul.f32 1.442695, %v1184_v23  ;;  %v1260_v40 = vmul.f32 1.442695, %v1185_v41  ;;  %1927 = vmatprep.mubr.bf16.mxu1 %v1816_v45  ;;  %1690 = vperm.xlu0 %2896, %v4357_v43   ;;  %2962 = vpow2.f32 %v994_v6  ;;  %v944_v53 = vsub.f32 %v5127_v11, %v5126_v9 }
 0x2bc   : > { %v2945_v28 = vpop.eup %2944  ;;  %1928 = vmatmul.mubr.bf16.vlgmr.msra.gmra.mrb[0].mxu1 %v1815_v52  ;;  %v1047_v24 = vpop.permute.xlu1 %1046  ;;  %v1000_v6 = vmul.f32 1.442695, %v943_v27  ;;  %v5130_v52 = vld [vmem:[#allocation84_spill] sm:$0xff]  ;;  %v946_v11 = vsub.f32 %v4220_v21, %v4228_v31 }
 0x2bd   : > { %v4398_v32 = vpop.eup %2946  ;;  %2964 = vpow2.f32 %v1258_v39  ;;  %v1186_v2 = vsub.f32 %v5128_v1, %v1047_v24  ;;  %v1187_v34 = vsub.f32 %v5129_v33, %v1047_v24  ;;  %1695 = vperm.xlu1 %2897, %v4366_v61   ;;  %v4403_v58 = vadd.f32 %v2945_v28, %v2943_v42  ;;  %v5135_v1 = vld [vmem:[#allocation26_spill] sm:$0xff] }
 0x2be   : > { %v4405_v12 = vpop.eup %2948  ;;  %2966 = vpow2.f32 %v1260_v40  ;;  %v1002_v51 = vmul.f32 1.442695, %v944_v53  ;;  %v945_v23 = vsub.f32 %v5131_v5, %v5130_v52  ;;  %v5134_v53 = vld [vmem:[#allocation25_spill] sm:$0xff] }
 0x2bf   : > { %v2951_v13 = vpop.eup %2950  ;;  %2968 = vpow2.f32 %v996_v59  ;;  %v1262_v14 = vmul.f32 1.442695, %v1186_v2  ;;  %v1264_v25 = vmul.f32 1.442695, %v1187_v34  ;;  %1700 = vperm.xlu0 %2896, %v4373_v37  }
 0x2c0   : > { %v2953_v38 = vpop.eup %2952  ;;  %2970 = vpow2.f32 %v998_v63  ;;  %v1052_v18 = vpop.permute.xlu1 %1051  ;;  %v1817_v41 = vpack.c.bf16 %v2951_v13, %v2943_v42  ;;  %v1004_v9 = vmul.f32 1.442695, %v945_v23  ;;  %v1006_v23 = vmul.f32 1.442695, %v946_v11  ;;  %v5141_v11 = vld [vmem:[#allocation30_spill] sm:$0xff] }
 0x2c1   : > { %v4410_v45 = vpop.eup %2954  ;;  %2972 = vpow2.f32 %v1262_v14  ;;  %v1188_v8 = vsub.f32 %v5132_v7, %v1052_v18  ;;  %v1189_v59 = vsub.f32 %v5133_v17, %v1052_v18  ;;  %1705 = vperm.xlu1 %2897, %v4381_v3   ;;  %v1818_v35 = vpack.c.bf16 %v2953_v38, %v2945_v28 }
 0x2c2   : > { %v4415_v48 = vpop.eup %2956  ;;  %2974 = vpow2.f32 %v1264_v25  ;;  %v4417_v27 = vadd.f32 %v2953_v38, %v2951_v13  ;;  %v947_v13 = vsub.f32 %v4225_v15, %v4236_v56  ;;  %v5136_v25 = vld [vmem:[#allocation27_spill] sm:$0xff]  ;;  %v948_v18 = vsub.f32 %v4248_v50, %v4256_v26 }
 0x2c3   : > { %v2959_v39 = vpop.eup %2958  ;;  %2976 = vpow2.f32 %v1000_v6  ;;  %v1266_v40 = vmul.f32 1.442695, %v1188_v8  ;;  %v1268_v63 = vmul.f32 1.442695, %v1189_v59  ;;  %1935 = vmatprep.mubr.bf16.mxu1 %v1818_v35  ;;  %1710 = vperm.xlu0 %2896, %v4386_v46  }
 0x2c4   : > { %v2961_v42 = vpop.eup %2960  ;;  %2978 = vpow2.f32 %v1002_v51  ;;  %1936 = vmatmul.mubr.bf16.gmra.mrb[4].mxu1 %v1817_v41  ;;  %v1057_v28 = vpop.permute.xlu1 %1056  ;;  %v5137_v51 = vld [vmem:[#allocation28_spill] sm:$0xff]  ;;  %v1008_v59 = vmul.f32 1.442695, %v947_v13  ;;  %v1010_v26 = vmul.f32 1.442695, %v948_v18 }
 0x2c5   : > { %2980 = vpow2.f32 %v1266_v40  ;;  %v1190_v24 = vsub.f32 %v5134_v53, %v1057_v28  ;;  %v1191_v2 = vsub.f32 %v5135_v1, %v1057_v28  ;;  %1715 = vperm.xlu1 %2897, %v4398_v32   ;;  %v4425_v33 = vadd.f32 %v2961_v42, %v2959_v39  ;;  %v4427_v34 = vpop.eup %2962 }
 0x2c6   : > { %2982 = vpow2.f32 %v1268_v63  ;;  %v1062_v6 = vpop.permute.xlu0 %1061 }
 0x2c7   : > { %v2965_v14 = vpop.eup %2964  ;;  %v1270_v21 = vmul.f32 1.442695, %v1190_v24  ;;  %v1272_v31 = vmul.f32 1.442695, %v1191_v2  ;;  %v1192_v38 = vsub.f32 %v5136_v25, %v1062_v6  ;;  %v1193_v52 = vsub.f32 %v5137_v51, %v1062_v6  ;;  %1720 = vperm.xlu0 %2896, %v4405_v12  }
 0x2c8   : > { %v2967_v5 = vpop.eup %2966  ;;  %2984 = vpow2.f32 %v1004_v9  ;;  %v1819_v41 = vpack.c.bf16 %v2965_v14, %v2959_v39 }
 0x2c9   : > { %v4436_v7 = vpop.eup %2968  ;;  %2986 = vpow2.f32 %v1270_v21  ;;  %v1274_v15 = vmul.f32 1.442695, %v1192_v38  ;;  %v1276_v56 = vmul.f32 1.442695, %v1193_v52  ;;  %1725 = vperm.xlu1 %2897, %v4410_v45   ;;  %v1820_v8 = vpack.c.bf16 %v2967_v5, %v2961_v42  ;;  %v5140_v42 = vld [vmem:[#allocation29_spill] sm:$0xff] }
 0x2ca   : > { %5138 = vst [vmem:[#allocation73_spill] sm:$0xff] %v4436_v7  ;;  %v4439_v17 = vpop.eup %2970  ;;  %2988 = vpow2.f32 %v1272_v31  ;;  %v4441_v35 = vadd.f32 %v2967_v5, %v2965_v14  ;;  %v5143_v14 = vld [vmem:[#allocation31_spill] sm:$0xff]  ;;  %v5144_v31 = vld [vmem:[#allocation32_spill] sm:$0xff] }
 0x2cb   : > { %v2973_v40 = vpop.eup %2972  ;;  %2990 = vpow2.f32 %v1274_v15  ;;  %1943 = vmatprep.mubr.bf16.mxu1 %v1820_v8  ;;  %1730 = vperm.xlu0 %2896, %v4415_v48  }
 0x2cc   : > { %v2975_v50 = vpop.eup %2974  ;;  %2992 = vpow2.f32 %v1276_v56  ;;  %1944 = vmatmul.mubr.bf16.gmra.mrb[8].mxu1 %v1819_v41  ;;  %v1067_v39 = vpop.permute.xlu1 %1066 }
 0x2cd   : > { %v4444_v63 = vpop.eup %2976  ;;  %2994 = vpow2.f32 %v1006_v23  ;;  %v1194_v9 = vsub.f32 %v5140_v42, %v1067_v39  ;;  %v1195_v28 = vsub.f32 %v5141_v11, %v1067_v39  ;;  %1735 = vperm.xlu1 %2897, %v4427_v34   ;;  %v4449_v53 = vadd.f32 %v2975_v50, %v2973_v40  ;;  %v5147_v39 = vld [vmem:[#allocation34_spill] sm:$0xff] }
 0x2ce   : > { %5139 = vst [vmem:[#allocation75_spill] sm:$0xff] %v4444_v63  ;;  %v4451_v24 = vpop.eup %2978  ;;  %2996 = vpow2.f32 %v1008_v59  ;;  %v1072_v1 = vpop.permute.xlu0 %1071 }
 0x2cf   : > { %5142 = vst [vmem:[#allocation79_spill] sm:$0xff] %v4451_v24  ;;  %v2981_v2 = vpop.eup %2980  ;;  %v1278_v13 = vmul.f32 1.442695, %v1194_v9  ;;  %v1280_v6 = vmul.f32 1.442695, %v1195_v28  ;;  %v1196_v21 = vsub.f32 %v5143_v14, %v1072_v1  ;;  %v1197_v25 = vsub.f32 %v5144_v31, %v1072_v1  ;;  %1740 = vperm.xlu0 %2896, %v4436_v7  }
 0x2d0   : > { %v2983_v38 = vpop.eup %2982  ;;  %2998 = vpow2.f32 %v1010_v26  ;;  %v1821_v51 = vpack.c.bf16 %v2981_v2, %v2973_v40  ;;  %v5146_v40 = vld [vmem:[#allocation33_spill] sm:$0xff] }
 0x2d1   : > { %3000 = vpow2.f32 %v1278_v13  ;;  %v1282_v52 = vmul.f32 1.442695, %v1196_v21  ;;  %v1284_v5 = vmul.f32 1.442695, %v1197_v25  ;;  %1745 = vperm.xlu1 %2897, %v4439_v17   ;;  %v1822_v23 = vpack.c.bf16 %v2983_v38, %v2975_v50  ;;  %v5150_v21 = vld [vmem:[#allocation36_spill] sm:$0xff] }
 0x2d2   : > { %v4457_v18 = vpop.eup %2984  ;;  %3002 = vpow2.f32 %v1280_v6  ;;  %v4459_v41 = vadd.f32 %v2983_v38, %v2981_v2  ;;  %v5149_v6 = vld [vmem:[#allocation35_spill] sm:$0xff] }
 0x2d3   : > { %5145 = vst [vmem:[#allocation77_spill] sm:$0xff] %v4457_v18  ;;  %v2987_v15 = vpop.eup %2986  ;;  %3004 = vpow2.f32 %v1282_v52  ;;  %1951 = vmatprep.mubr.bf16.mxu1 %v1822_v23  ;;  %1750 = vperm.xlu0 %2896, %v4444_v63  }
 0x2d4   : > { %v2989_v56 = vpop.eup %2988  ;;  %3006 = vpow2.f32 %v1284_v5  ;;  %1952 = vmatmul.mubr.bf16.gmra.mrb[12].mxu1 %v1821_v51  ;;  %v1077_v8 = vpop.permute.xlu1 %1076 }
 0x2d5   : > { %v2991_v59 = vpop.eup %2990  ;;  %v1198_v26 = vsub.f32 %v5146_v40, %v1077_v8  ;;  %v1199_v42 = vsub.f32 %v5147_v39, %v1077_v8  ;;  %1755 = vperm.xlu1 %2897, %v4451_v24   ;;  %v4465_v50 = vadd.f32 %v2989_v56, %v2987_v15  ;;  %v5154_v39 = vld [vmem:[#allocation38_spill] sm:$0xff] }
 0x2d6   : > { %v2993_v9 = vpop.eup %2992  ;;  %v1082_v11 = vpop.permute.xlu0 %1081  ;;  %v1823_v28 = vpack.c.bf16 %v2991_v59, %v2987_v15 }
 0x2d7   : > { %v4467_v1 = vpop.eup %2994  ;;  %v1286_v2 = vmul.f32 1.442695, %v1198_v26  ;;  %v1288_v13 = vmul.f32 1.442695, %v1199_v42  ;;  %v1200_v14 = vsub.f32 %v5149_v6, %v1082_v11  ;;  %v1201_v31 = vsub.f32 %v5150_v21, %v1082_v11  ;;  %1760 = vperm.xlu0 %2896, %v4457_v18   ;;  %v5155_v21 = vld [vmem:[#allocation39_spill] sm:$0xff] }
 0x2d8   : > { %5148 = vst [vmem:[#allocation19_spill] sm:$0xff] %v4467_v1  ;;  %v4472_v25 = vpop.eup %2996  ;;  %v1824_v38 = vpack.c.bf16 %v2993_v9, %v2989_v56  ;;  %v4474_v51 = vadd.f32 %v2993_v9, %v2991_v59  ;;  %v5153_v59 = vld [vmem:[#allocation37_spill] sm:$0xff] }
 0x2d9   : > { %5151 = vst [vmem:[#allocation20_spill] sm:$0xff] %v4472_v25  ;;  %3008 = vpow2.f32 %v1286_v2  ;;  %v1290_v52 = vmul.f32 1.442695, %v1200_v14  ;;  %v1292_v5 = vmul.f32 1.442695, %v1201_v31  ;;  %1765 = vperm.xlu1 %2897, %v4467_v1  }
 0x2da   : > { %v4477_v23 = vpop.eup %2998  ;;  %3010 = vpow2.f32 %v1288_v13  ;;  %1959 = vmatprep.mubr.bf16.mxu1 %v1824_v38  ;;  %v5156_v38 = vld [vmem:[#allocation40_spill] sm:$0xff] }
 0x2db   : > { %5152 = vst [vmem:[#allocation74_spill] sm:$0xff] %v4477_v23  ;;  %v3001_v15 = vpop.eup %3000  ;;  %3012 = vpow2.f32 %v1290_v52  ;;  %1770 = vperm.xlu0 %2896, %v4472_v25  }
 0x2dc   : > { %v3003_v8 = vpop.eup %3002  ;;  %3014 = vpow2.f32 %v1292_v5  ;;  %1960 = vmatmul.mubr.bf16.gmra.mrb[16].mxu1 %v1823_v28  ;;  %v1087_v40 = vpop.permute.xlu1 %1086 }
 0x2dd   : > { %v3005_v56 = vpop.eup %3004  ;;  %v1202_v26 = vsub.f32 %v5153_v59, %v1087_v40  ;;  %v1203_v42 = vsub.f32 %v5154_v39, %v1087_v40  ;;  %1775 = vperm.xlu1 %2897, %v4477_v23   ;;  %v4483_v9 = vadd.f32 %v3003_v8, %v3001_v15 }
 0x2de   : > { %v3007_v11 = vpop.eup %3006  ;;  %v1092_v2 = vpop.permute.xlu0 %1091  ;;  %v1825_v13 = vpack.c.bf16 %v3005_v56, %v3001_v15 }
 0x2df   : > { %v1294_v6 = vmul.f32 1.442695, %v1202_v26  ;;  %v1296_v14 = vmul.f32 1.442695, %v1203_v42  ;;  %v1204_v31 = vsub.f32 %v5155_v21, %v1092_v2  ;;  %v1205_v52 = vsub.f32 %v5156_v38, %v1092_v2  ;;  %v5157_v42 = vld [vmem:[#allocation41_spill] sm:$0xff]  ;;  %v5158_v21 = vld [vmem:[#allocation42_spill] sm:$0xff] }
 0x2e0   : > { %v1826_v28 = vpack.c.bf16 %v3007_v11, %v3003_v8  ;;  %v4487_v5 = vadd.f32 %v3007_v11, %v3005_v56 }
 0x2e1   : > { %3016 = vpow2.f32 %v1294_v6  ;;  %v1298_v59 = vmul.f32 1.442695, %v1204_v31  ;;  %v1300_v44 = vmul.f32 1.442695, %v1205_v52  ;;  %v5160_v52 = vld [vmem:[#allocation44_spill] sm:$0xff] }
 0x2e2   : > { %3018 = vpow2.f32 %v1296_v14  ;;  %1967 = vmatprep.mubr.bf16.mxu1 %v1826_v28  ;;  %v5159_v14 = vld [vmem:[#allocation43_spill] sm:$0xff] }
 0x2e3   : > { %v3009_v40 = vpop.eup %3008  ;;  %3020 = vpow2.f32 %v1298_v59 }
 0x2e4   : > { %v3011_v39 = vpop.eup %3010  ;;  %3022 = vpow2.f32 %v1300_v44  ;;  %1968 = vmatmul.mubr.bf16.gmra.mrb[20].mxu1 %v1825_v13  ;;  %v1097_v15 = vpop.permute.xlu1 %1096 }
 0x2e5   : > { %v3013_v26 = vpop.eup %3012  ;;  %v1206_v25 = vsub.f32 %v5157_v42, %v1097_v15  ;;  %v1207_v23 = vsub.f32 %v5158_v21, %v1097_v15  ;;  %v4491_v2 = vadd.f32 %v3011_v39, %v3009_v40 }
 0x2e6   : > { %v3015_v8 = vpop.eup %3014  ;;  %v1102_v56 = vpop.permute.xlu0 %1101  ;;  %v1827_v11 = vpack.c.bf16 %v3013_v26, %v3009_v40 }
 0x2e7   : > { %v1302_v6 = vmul.f32 1.442695, %v1206_v25  ;;  %v1304_v31 = vmul.f32 1.442695, %v1207_v23  ;;  %v1208_v38 = vsub.f32 %v5159_v14, %v1102_v56  ;;  %v1209_v28 = vsub.f32 %v5160_v52, %v1102_v56  ;;  %v5161_v23 = vld [vmem:[#allocation45_spill] sm:$0xff]  ;;  %v5162_v14 = vld [vmem:[#allocation46_spill] sm:$0xff] }
 0x2e8   : > { %v1828_v59 = vpack.c.bf16 %v3015_v8, %v3011_v39  ;;  %v4495_v44 = vadd.f32 %v3015_v8, %v3013_v26 }
 0x2e9   : > { %3024 = vpow2.f32 %v1302_v6  ;;  %v1306_v13 = vmul.f32 1.442695, %v1208_v38  ;;  %v1308_v18 = vmul.f32 1.442695, %v1209_v28  ;;  %v5164_v28 = vld [vmem:[#allocation48_spill] sm:$0xff] }
 0x2ea   : > { %3026 = vpow2.f32 %v1304_v31  ;;  %1975 = vmatprep.mubr.bf16.mxu1 %v1828_v59  ;;  %v5163_v31 = vld [vmem:[#allocation47_spill] sm:$0xff] }
 0x2eb   : > { %v3017_v15 = vpop.eup %3016  ;;  %3028 = vpow2.f32 %v1306_v13 }
 0x2ec   : > { %v3019_v42 = vpop.eup %3018  ;;  %3030 = vpow2.f32 %v1308_v18  ;;  %1976 = vmatmul.mubr.bf16.gmra.mrb[24].mxu1 %v1827_v11  ;;  %v1107_v40 = vpop.permute.xlu1 %1106 }
 0x2ed   : > { %v3021_v25 = vpop.eup %3020  ;;  %v1210_v21 = vsub.f32 %v5161_v23, %v1107_v40  ;;  %v1211_v1 = vsub.f32 %v5162_v14, %v1107_v40  ;;  %v4499_v56 = vadd.f32 %v3019_v42, %v3017_v15 }
 0x2ee   : > { %v3023_v39 = vpop.eup %3022  ;;  %v1112_v26 = vpop.permute.xlu0 %1111  ;;  %v1829_v8 = vpack.c.bf16 %v3021_v25, %v3017_v15 }
 0x2ef   : > { %v1310_v6 = vmul.f32 1.442695, %v1210_v21  ;;  %v1312_v38 = vmul.f32 1.442695, %v1211_v1  ;;  %v1212_v52 = vsub.f32 %v5163_v31, %v1112_v26  ;;  %v1213_v59 = vsub.f32 %v5164_v28, %v1112_v26  ;;  %v5165_v1 = vld [vmem:[#allocation49_spill] sm:$0xff]  ;;  %v5166_v31 = vld [vmem:[#allocation50_spill] sm:$0xff] }
 0x2f0   : > { %v1830_v13 = vpack.c.bf16 %v3023_v39, %v3019_v42  ;;  %v4503_v18 = vadd.f32 %v3023_v39, %v3021_v25 }
 0x2f1   : > { %3032 = vpow2.f32 %v1310_v6  ;;  %v1314_v11 = vmul.f32 1.442695, %v1212_v52  ;;  %v1316_v63 = vmul.f32 1.442695, %v1213_v59  ;;  %v5168_v59 = vld [vmem:[#allocation52_spill] sm:$0xff] }
 0x2f2   : > { %3034 = vpow2.f32 %v1312_v38  ;;  %1983 = vmatprep.mubr.bf16.mxu1 %v1830_v13  ;;  %v5167_v38 = vld [vmem:[#allocation51_spill] sm:$0xff] }
 0x2f3   : > { %v3025_v40 = vpop.eup %3024  ;;  %3036 = vpow2.f32 %v1314_v11 }
 0x2f4   : > { %v3027_v23 = vpop.eup %3026  ;;  %3038 = vpow2.f32 %v1316_v63  ;;  %1984 = vmatmul.mubr.bf16.gmra.mrb[28].mxu1 %v1829_v8  ;;  %v1117_v15 = vpop.permute.xlu1 %1116 }
 0x2f5   : > { %v3029_v21 = vpop.eup %3028  ;;  %v1214_v14 = vsub.f32 %v5165_v1, %v1117_v15  ;;  %v1215_v24 = vsub.f32 %v5166_v31, %v1117_v15  ;;  %v4507_v26 = vadd.f32 %v3027_v23, %v3025_v40 }
 0x2f6   : > { %v3031_v42 = vpop.eup %3030  ;;  %v1122_v25 = vpop.permute.xlu0 %1121  ;;  %v1831_v39 = vpack.c.bf16 %v3029_v21, %v3025_v40 }
 0x2f7   : > { %v1318_v6 = vmul.f32 1.442695, %v1214_v14  ;;  %v1320_v52 = vmul.f32 1.442695, %v1215_v24  ;;  %v1216_v28 = vsub.f32 %v5167_v38, %v1122_v25  ;;  %v1217_v13 = vsub.f32 %v5168_v59, %v1122_v25  ;;  %v5169_v14 = vld [vmem:[#allocation53_spill] sm:$0xff]  ;;  %v5170_v25 = vld [vmem:[#allocation54_spill] sm:$0xff] }
 0x2f8   : > { %v1832_v11 = vpack.c.bf16 %v3031_v42, %v3027_v23  ;;  %v4511_v63 = vadd.f32 %v3031_v42, %v3029_v21 }
 0x2f9   : > { %3040 = vpow2.f32 %v1318_v6  ;;  %v1322_v8 = vmul.f32 1.442695, %v1216_v28  ;;  %v1324_v7 = vmul.f32 1.442695, %v1217_v13  ;;  %v5171_v28 = vld [vmem:[#allocation55_spill] sm:$0xff]  ;;  %v5172_v13 = vld [vmem:[#allocation56_spill] sm:$0xff] }
 0x2fa   : > { %3042 = vpow2.f32 %v1320_v52  ;;  %1991 = vmatprep.mubr.bf16.mxu1 %v1832_v11  ;;  %1434 = vadd.xlane.f32.xlu0 %v4388_v0 }
 0x2fb   : > { %v3033_v15 = vpop.eup %3032  ;;  %3044 = vpow2.f32 %v1322_v8 }
 0x2fc   : > { %v3035_v1 = vpop.eup %3034  ;;  %3046 = vpow2.f32 %v1324_v7  ;;  %1992 = vmatmul.mubr.bf16.gmra.mrb[32].mxu1 %v1831_v39  ;;  %v1127_v24 = vpop.permute.xlu1 %1126 }
 0x2fd   : > { %v3037_v40 = vpop.eup %3036  ;;  %v1218_v31 = vsub.f32 %v5169_v14, %v1127_v24  ;;  %v1219_v23 = vsub.f32 %v5170_v25, %v1127_v24  ;;  %v4516_v21 = vadd.f32 %v3035_v1, %v3033_v15  ;;  %v5173_v25 = vld [vmem:[#allocation57_spill] sm:$0xff] }
 0x2fe   : > { %v3039_v42 = vpop.eup %3038  ;;  %v1132_v6 = vpop.permute.xlu0 %1131  ;;  %1437 = vadd.xlane.f32.xlu0 %v4403_v58  ;;  %v1833_v52 = vpack.c.bf16 %v3037_v40, %v3033_v15 }
 0x2ff   : > { %v1326_v38 = vmul.f32 1.442695, %v1218_v31  ;;  %v1328_v0 = vmul.f32 1.442695, %v1219_v23  ;;  %v1220_v59 = vsub.f32 %v5171_v28, %v1132_v6  ;;  %v1221_v7 = vsub.f32 %v5172_v13, %v1132_v6  ;;  %v5175_v28 = vld [vmem:[#allocation59_spill] sm:$0xff] }
 0x300   : > { %v1834_v39 = vpack.c.bf16 %v3039_v42, %v3035_v1  ;;  %v4521_v11 = vadd.f32 %v3039_v42, %v3037_v40  ;;  %v5174_v40 = vld [vmem:[#allocation58_spill] sm:$0xff] }
 0x301   : > { %3048 = vpow2.f32 %v1326_v38  ;;  %v1330_v8 = vmul.f32 1.442695, %v1220_v59  ;;  %v1332_v14 = vmul.f32 1.442695, %v1221_v7  ;;  %1431 = vadd.xlane.f32.xlu1 %v4371_v29 }
 0x302   : > { %3050 = vpow2.f32 %v1328_v0  ;;  %1999 = vmatprep.mubr.bf16.mxu1 %v1834_v39  ;;  %1443 = vadd.xlane.f32.xlu0 %v4425_v33 }
 0x303   : > { %v3041_v58 = vpop.eup %3040  ;;  %3052 = vpow2.f32 %v1330_v8 }
 0x304   : > { %v3043_v15 = vpop.eup %3042  ;;  %3054 = vpow2.f32 %v1332_v14  ;;  %2000 = vmatmul.mubr.bf16.gmra.mrb[36].mxu1 %v1833_v52  ;;  %v1137_v24 = vpop.permute.xlu1 %1136  ;;  %v5176_v52 = vld [vmem:[#allocation60_spill] sm:$0xff] }
 0x305   : > { %v3045_v31 = vpop.eup %3044  ;;  %v1222_v1 = vsub.f32 %v5173_v25, %v1137_v24  ;;  %v1223_v23 = vsub.f32 %v5174_v40, %v1137_v24  ;;  %1440 = vadd.xlane.f32.xlu1 %v4417_v27  ;;  %v4528_v42 = vadd.f32 %v3043_v15, %v3041_v58  ;;  %v5177_v25 = vld [vmem:[#allocation61_spill] sm:$0xff] }
 0x306   : > { %v3047_v29 = vpop.eup %3046  ;;  %v1142_v6 = vpop.permute.xlu0 %1141  ;;  %1449 = vadd.xlane.f32.xlu0 %v4449_v53  ;;  %v1835_v33 = vpack.c.bf16 %v3045_v31, %v3041_v58 }
 0x307   : > { %v1334_v38 = vmul.f32 1.442695, %v1222_v1  ;;  %v1336_v0 = vmul.f32 1.442695, %v1223_v23  ;;  %v1224_v59 = vsub.f32 %v5175_v28, %v1142_v6  ;;  %v1225_v13 = vsub.f32 %v5176_v52, %v1142_v6 }
 0x308   : > { %v1836_v7 = vpack.c.bf16 %v3047_v29, %v3043_v15  ;;  %v4533_v39 = vadd.f32 %v3047_v29, %v3045_v31  ;;  %v5178_v31 = vld [vmem:[#allocation62_spill] sm:$0xff] }
 0x309   : > { %3056 = vpow2.f32 %v1334_v38  ;;  %v1338_v8 = vmul.f32 1.442695, %v1224_v59  ;;  %v1340_v14 = vmul.f32 1.442695, %v1225_v13  ;;  %1446 = vadd.xlane.f32.xlu1 %v4441_v35  ;;  %v5179_v38 = vld [vmem:[#allocation63_spill] sm:$0xff] }
 0x30a   : > { %3058 = vpow2.f32 %v1336_v0  ;;  %2007 = vmatprep.mubr.bf16.mxu1 %v1836_v7  ;;  %1455 = vadd.xlane.f32.xlu0 %v4465_v50 }
 0x30b   : > { %v3049_v27 = vpop.eup %3048  ;;  %3060 = vpow2.f32 %v1338_v8 }
 0x30c   : > { %v3051_v53 = vpop.eup %3050  ;;  %3062 = vpow2.f32 %v1340_v14  ;;  %2008 = vmatmul.mubr.bf16.gmra.mrb[40].mxu1 %v1835_v33  ;;  %v1147_v58 = vpop.permute.xlu1 %1146  ;;  %v5180_v33 = vld [vmem:[#allocation64_spill] sm:$0xff] }
 0x30d   : > { %v3053_v24 = vpop.eup %3052  ;;  %v1226_v15 = vsub.f32 %v5177_v25, %v1147_v58  ;;  %v1227_v1 = vsub.f32 %v5178_v31, %v1147_v58  ;;  %1452 = vadd.xlane.f32.xlu1 %v4459_v41  ;;  %v4540_v40 = vadd.f32 %v3051_v53, %v3049_v27  ;;  %v5182_v58 = vld [vmem:[#allocation66_spill] sm:$0xff] }
 0x30e   : > { %v3055_v35 = vpop.eup %3054  ;;  %v1152_v23 = vpop.permute.xlu0 %1151  ;;  %1461 = vadd.xlane.f32.xlu0 %v4483_v9  ;;  %v1837_v50 = vpack.c.bf16 %v3053_v24, %v3049_v27  ;;  %v5181_v27 = vld [vmem:[#allocation65_spill] sm:$0xff] }
 0x30f   : > { %v1342_v29 = vmul.f32 1.442695, %v1226_v15  ;;  %v1344_v6 = vmul.f32 1.442695, %v1227_v1  ;;  %v1228_v0 = vsub.f32 %v5179_v38, %v1152_v23  ;;  %v1229_v28 = vsub.f32 %v5180_v33, %v1152_v23 }
 0x310   : > { %v1838_v59 = vpack.c.bf16 %v3055_v35, %v3051_v53  ;;  %v4545_v52 = vadd.f32 %v3055_v35, %v3053_v24  ;;  %v5183_v35 = vld [vmem:[#allocation67_spill] sm:$0xff] }
 0x311   : > { %3064 = vpow2.f32 %v1342_v29  ;;  %v1346_v13 = vmul.f32 1.442695, %v1228_v0  ;;  %v1348_v7 = vmul.f32 1.442695, %v1229_v28  ;;  %1458 = vadd.xlane.f32.xlu1 %v4474_v51  ;;  %v5184_v29 = vld [vmem:[#allocation68_spill] sm:$0xff] }
 0x312   : > { %3066 = vpow2.f32 %v1344_v6  ;;  %2015 = vmatprep.mubr.bf16.mxu1 %v1838_v59  ;;  %1467 = vadd.xlane.f32.xlu0 %v4491_v2 }
 0x313   : > { %v3057_v41 = vpop.eup %3056  ;;  %3068 = vpow2.f32 %v1346_v13  ;;  %v5185_v13 = vld [vmem:[#allocation69_spill] sm:$0xff] }
 0x314   : > { %v3059_v9 = vpop.eup %3058  ;;  %3070 = vpow2.f32 %v1348_v7  ;;  %2016 = vmatmul.mubr.bf16.gmra.mrb[44].mxu1 %v1837_v50  ;;  %v1157_v8 = vpop.permute.xlu1 %1156 }
 0x315   : > { %v3061_v14 = vpop.eup %3060  ;;  %v1230_v53 = vsub.f32 %v5181_v27, %v1157_v8  ;;  %v1231_v24 = vsub.f32 %v5182_v58, %v1157_v8  ;;  %1464 = vadd.xlane.f32.xlu1 %v4487_v5  ;;  %v1502_v25 = vadd.f32 %v3059_v9, %v3057_v41  ;;  %v5187_v58 = vld [vmem:[#allocation71_spill] sm:$0xff] }
 0x316   : > { %v3063_v15 = vpop.eup %3062  ;;  %v1162_v51 = vpop.permute.xlu0 %1161  ;;  %1473 = vadd.xlane.f32.xlu0 %v4499_v56  ;;  %v1839_v31 = vpack.c.bf16 %v3061_v14, %v3057_v41  ;;  %v5186_v41 = vld [vmem:[#allocation70_spill] sm:$0xff] }
 0x317   : > { %v1350_v2 = vmul.f32 1.442695, %v1230_v53  ;;  %v1352_v1 = vmul.f32 1.442695, %v1231_v24  ;;  %v1232_v23 = vsub.f32 %v5183_v35, %v1162_v51  ;;  %v1233_v50 = vsub.f32 %v5184_v29, %v1162_v51 }
 0x318   : > { %v1840_v6 = vpack.c.bf16 %v3063_v15, %v3059_v9  ;;  %v4555_v38 = vadd.f32 %v3063_v15, %v3061_v14  ;;  %v5188_v15 = vld [vmem:[#allocation72_spill] sm:$0xff] }
 0x319   : > { %3072 = vpow2.f32 %v1350_v2  ;;  %v1354_v0 = vmul.f32 1.442695, %v1232_v23  ;;  %v1356_v33 = vmul.f32 1.442695, %v1233_v50  ;;  %1470 = vadd.xlane.f32.xlu1 %v4495_v44 }
 0x31a   : > { %3074 = vpow2.f32 %v1352_v1  ;;  %2023 = vmatprep.mubr.bf16.mxu1 %v1840_v6  ;;  %1479 = vadd.xlane.f32.xlu0 %v4507_v26 }
 0x31b   : > { %v3065_v5 = vpop.eup %3064  ;;  %3076 = vpow2.f32 %v1354_v0 }
 0x31c   : > { %v3067_v56 = vpop.eup %3066  ;;  %3078 = vpow2.f32 %v1356_v33  ;;  %2024 = vmatmul.mubr.bf16.gmra.mrb[48].mxu1 %v1839_v31  ;;  %v1167_v28 = vpop.permute.xlu1 %1166 }
 0x31d   : > { %v3069_v59 = vpop.eup %3068  ;;  %v1234_v7 = vsub.f32 %v5185_v13, %v1167_v28  ;;  %v1235_v9 = vsub.f32 %v5186_v41, %v1167_v28  ;;  %1476 = vadd.xlane.f32.xlu1 %v4503_v18  ;;  %v1508_v8 = vadd.f32 %v3067_v56, %v3065_v5 }
 0x31e   : > { %v3071_v14 = vpop.eup %3070  ;;  %v1172_v44 = vpop.permute.xlu0 %1171  ;;  %1485 = vadd.xlane.f32.xlu0 %v4516_v21  ;;  %v1841_v27 = vpack.c.bf16 %v3069_v59, %v3065_v5 }
 0x31f   : > { %v1358_v26 = vmul.f32 1.442695, %v1234_v7  ;;  %v1360_v53 = vmul.f32 1.442695, %v1235_v9  ;;  %v1236_v24 = vsub.f32 %v5187_v58, %v1172_v44  ;;  %v1237_v51 = vsub.f32 %v5188_v15, %v1172_v44 }
 0x320   : > { %v1842_v31 = vpack.c.bf16 %v3071_v14, %v3067_v56  ;;  %v1511_v2 = vadd.f32 %v3071_v14, %v3069_v59  ;;  %v4573_v7 = vpop.permute.xlu1 %1630  ;;  %v5189_v9 = vsub.f32 %v4253_v62, %v4267_v19 }
 0x321   : > { %3080 = vpow2.f32 %v1358_v26  ;;  %v1362_v1 = vmul.f32 1.442695, %v1236_v24  ;;  %v1364_v35 = vmul.f32 1.442695, %v1237_v51  ;;  %1482 = vadd.xlane.f32.xlu1 %v4511_v63 }
 0x322   : > { %3082 = vpow2.f32 %v1360_v53  ;;  %2031 = vmatprep.mubr.bf16.mxu1 %v1842_v31  ;;  %1491 = vadd.xlane.f32.xlu0 %v4528_v42  ;;  %v4571_v59 = vpop.permute.xlu0 %1625 }
 0x323   : > { %v3073_v18 = vpop.eup %3072  ;;  %3084 = vpow2.f32 %v1362_v1 }
 0x324   : > { %v3075_v21 = vpop.eup %3074  ;;  %3086 = vpow2.f32 %v1364_v35  ;;  %2032 = vmatmul.mubr.bf16.gmra.mrb[52].mxu1 %v1841_v27 }
 0x325   : > { %v3077_v23 = vpop.eup %3076  ;;  %1488 = vadd.xlane.f32.xlu1 %v4521_v11  ;;  %v1514_v29 = vadd.f32 %v3075_v21, %v3073_v18 }
 0x326   : > { %v3079_v50 = vpop.eup %3078  ;;  %1497 = vadd.xlane.f32.xlu0 %v4540_v40  ;;  %v1843_v6 = vpack.c.bf16 %v3077_v23, %v3073_v18 }
 0x327   : > { %v1844_v0 = vpack.c.bf16 %v3079_v50, %v3075_v21  ;;  %v1517_v33 = vadd.f32 %v3079_v50, %v3077_v23 }
 0x329   : > { %2039 = vmatprep.mubr.bf16.mxu1 %v1844_v0  ;;  %1494 = vadd.xlane.f32.xlu1 %v4533_v39  ;;  %v4576_v39 = vpop.permute.xlu0 %1640 }
 0x32a   : > { %1503 = vadd.xlane.f32.xlu0 %v1502_v25  ;;  %v4578_v25 = vpop.permute.xlu1 %1635 }
 0x32b   : > { %v3081_v63 = vpop.eup %3080 }
 0x32c   : > { %v3083_v42 = vpop.eup %3082  ;;  %2040 = vmatmul.mubr.bf16.gmra.mrb[56].mxu1 %v1843_v6 }
 0x32d   : > { %v3085_v5 = vpop.eup %3084  ;;  %1500 = vadd.xlane.f32.xlu1 %v4545_v52  ;;  %v1520_v56 = vadd.f32 %v3083_v42, %v3081_v63  ;;  %v4580_v52 = vpop.permute.xlu0 %1650 }
 0x32e   : > { %v3087_v28 = vpop.eup %3086  ;;  %1509 = vadd.xlane.f32.xlu0 %v1508_v8  ;;  %v1845_v11 = vpack.c.bf16 %v3085_v5, %v3081_v63  ;;  %v4582_v41 = vpop.permute.xlu1 %1645  ;;  %v1012_v8 = vmul.f32 1.442695, %v5189_v9  ;;  %v1367_v63 = vld [vmem:[#allocation4 + $0x8] sm:$0xff]  ;;  %v1366_v9 = vld [vmem:[#allocation4] sm:$0xff] }
 0x32f   : > { %v1846_v40 = vpack.c.bf16 %v3087_v28, %v3083_v42  ;;  %v1523_v13 = vadd.f32 %v3087_v28, %v3085_v5  ;;  %v1399_v5 = vmul.f32 %v4281_v54, %v1367_v63  ;;  %v1368_v28 = vld [vmem:[#allocation4 + $0x10] sm:$0xff]  ;;  %v1369_v63 = vld [vmem:[#allocation4 + $0x18] sm:$0xff] }
 0x330   : > { %3088 = vpow2.f32 %v1012_v8 }
 0x331   : > { %2047 = vmatprep.mubr.bf16.mxu1 %v1846_v40  ;;  %1506 = vadd.xlane.f32.xlu1 %v4555_v38  ;;  %v4587_v38 = vpop.permute.xlu0 %1660 }
 0x332   : > { %1515 = vadd.xlane.f32.xlu0 %v1514_v29  ;;  %v4589_v14 = vpop.permute.xlu1 %1655 }
 0x334   : > { %2048 = vmatmul.mubr.bf16.gmra.mrb[60].mxu1 %v1845_v11 }
 0x335   : > { %1512 = vadd.xlane.f32.xlu1 %v1511_v2  ;;  %v4591_v44 = vpop.permute.xlu0 %1670 }
 0x336   : > { %1521 = vadd.xlane.f32.xlu0 %v1520_v56  ;;  %v4593_v27 = vpop.permute.xlu1 %1665 }
 0x339   : > { %1518 = vadd.xlane.f32.xlu1 %v1517_v33  ;;  %v4598_v53 = vpop.permute.xlu0 %1680 }
 0x33a   : > { %v4595_v26 = vpop.eup %3088  ;;  %v4600_v58 = vpop.permute.xlu1 %1675 }
 0x33d   : > { %1524 = vadd.xlane.f32.xlu1 %v1523_v13  ;;  %v4602_v62 = vpop.permute.xlu0 %1690  ;;  %v1400_v13 = vmul.f32 %v4299_v16, %v1368_v28  ;;  %v1783_v16 = vmul.f32 0.0, %v4571_v59 }
 0x33e   : > { %v4604_v19 = vpop.permute.xlu1 %1685 }
 0x341   : > { %v4606_v24 = vpop.permute.xlu0 %1700 }
 0x342   : > { %v4608_v15 = vpop.permute.xlu1 %1695 }
 0x345   : > { %v4610_v51 = vpop.permute.xlu0 %1710 }
 0x346   : > { %v4612_v31 = vpop.permute.xlu1 %1705 }
 0x349   : > { %v4614_v2 = vpop.permute.xlu0 %1720 }
 0x34a   : > { %v4616_v1 = vpop.permute.xlu1 %1715 }
 0x34c   : > { %1780 = vperm.xlu0 %2896, %v4595_v26  }
 0x34d   : > { %v4618_v35 = vpop.permute.xlu0 %1730 }
 0x34e   : > { %v4620_v18 = vpop.permute.xlu1 %1725 }
 0x351   : > { %v4622_v21 = vpop.permute.xlu0 %1740 }
 0x352   : > { %5190 = vst [vmem:[#allocation76_spill] sm:$0xff] %v4622_v21  ;;  %v4624_v23 = vpop.permute.xlu1 %1735 }
 0x355   : > { %v4626_v29 = vpop.permute.xlu0 %1750 }
 0x356   : > { %5191 = vst [vmem:[#allocation80_spill] sm:$0xff] %v4626_v29  ;;  %v4628_v50 = vpop.permute.xlu1 %1745 }
 0x357   : > { %5192 = vst [vmem:[#allocation78_spill] sm:$0xff] %v4628_v50 }
 0x359   : > { %v4630_v6 = vpop.permute.xlu0 %1760 }
 0x35a   : > { %5193 = vst [vmem:[#allocation83_spill] sm:$0xff] %v4630_v6  ;;  %v4632_v0 = vpop.permute.xlu1 %1755  ;;  %v1370_v6 = vld [vmem:[#allocation4 + $0x20] sm:$0xff] }
 0x35b   : > { %5194 = vst [vmem:[#allocation81_spill] sm:$0xff] %v4632_v0  ;;  %v1402_v54 = vmul.f32 %v4313_v57, %v1370_v6 }
 0x35d   : > { %v4634_v33 = vpop.permute.xlu0 %1770 }
 0x35e   : > { %5195 = vst [vmem:[#allocation21_spill] sm:$0xff] %v4634_v33  ;;  %v4636_v42 = vpop.permute.xlu1 %1765  ;;  %v1398_v33 = vmul.f32 %v4290_v60, %v1366_v9  ;;  %v1401_v60 = vmul.f32 %v4307_v30, %v1369_v63 }
 0x35f   : > { %5196 = vst [vmem:[#allocation22_spill] sm:$0xff] %v4636_v42 }
 0x362   : > { %v4639_v40 = vpop.permute.xlu1 %1775 }
 0x363   : > { %5197 = vst [vmem:[#allocation84_spill] sm:$0xff] %v4639_v40  ;;  %v1372_v40 = vld [vmem:[#allocation4 + $0x30] sm:$0xff] }
 0x387   : > { %v1435_v56 = vpop.xlane.xlu0 %1434 }
 0x388   : > { %v1527_v11 = vadd.f32 %v1435_v56, %v1399_v5 }
 0x38a   : > { %1560 = vst.msk [vmem:[#allocation4 + $0x8] sm:$0xff] %vm404_vm0, %v1527_v11 }
 0x38b   : > { %v1438_v8 = vpop.xlane.xlu0 %1437 }
 0x38c   : > { %v1528_v0 = vadd.f32 %v1438_v8, %v1400_v13 }
 0x38e   : > { %1561 = vst.msk [vmem:[#allocation4 + $0x10] sm:$0xff] %vm404_vm0, %v1528_v0  ;;  %v1432_v42 = vpop.xlane.xlu1 %1431  ;;  %v1404_v0 = vmul.f32 %v4323_v55, %v1372_v40  ;;  %v1373_v40 = vld [vmem:[#allocation4 + $0x38] sm:$0xff] }
 0x38f   : > { %v2721_v29 = vpop.f32.mrb[0].mxu1  ;;  %v1526_v5 = vadd.f32 %v1432_v42, %v1398_v33  ;;  %v1444_v56 = vpop.xlane.xlu0 %1443  ;;  %v1371_v33 = vld [vmem:[#allocation4 + $0x28] sm:$0xff]  ;;  %v1784_v42 = vmul.f32 0.0, %v4573_v7 }
 0x390   : > { %v2722_v50 = vpop.f32.mrb[1].mxu1  ;;  %v1530_v11 = vadd.f32 %v1444_v56, %v1402_v54  ;;  %v1374_v56 = vld [vmem:[#allocation4 + $0x40] sm:$0xff]  ;;  %v1403_v30 = vmul.f32 %v4321_v47, %v1371_v33 }
 0x391   : > { %v2156_v28 = vld [vmem:[#allocation4 + $0x8] sm:$0xff]  ;;  %1559 = vst.msk [vmem:[#allocation4] sm:$0xff] %vm404_vm0, %v1526_v5  ;;  %v2723_v13 = vadd.f32 %v2722_v50, %v2721_v29  ;;  %v2724_v8 = vpop.f32.mrb[2].mxu1  ;;  %v1406_v55 = vmul.f32 %v4334_v22, %v1374_v56 }
 0x392   : > { %3090 = vrcp.f32 %v2156_v28  ;;  %1563 = vst.msk [vmem:[#allocation4 + $0x20] sm:$0xff] %vm404_vm0, %v1530_v11  ;;  %v2725_v57 = vpop.f32.mrb[3].mxu1  ;;  %v1441_v6 = vpop.xlane.xlu1 %1440  ;;  %v1376_v28 = vld [vmem:[#allocation4 + $0x50] sm:$0xff] }
 0x393   : > { %v2726_v9 = vadd.f32 %v2725_v57, %v2724_v8  ;;  %v1529_v54 = vadd.f32 %v1441_v6, %v1401_v60  ;;  %v1450_v59 = vpop.xlane.xlu0 %1449  ;;  %v4652_v21 = vadd.f32 %v2723_v13, %v1783_v16  ;;  %v1785_v60 = vmul.f32 0.0, %v4578_v25 }
 0x394   : > { %v1532_v29 = vadd.f32 %v1450_v59, %v1404_v0  ;;  %v1405_v0 = vmul.f32 %v4329_v10, %v1373_v40 }
 0x395   : > { %1562 = vst.msk [vmem:[#allocation4 + $0x18] sm:$0xff] %vm404_vm0, %v1529_v54  ;;  %v4656_v50 = vadd.f32 %v2726_v9, %v1784_v42  ;;  %v2157_v57 = vld [vmem:[#allocation4 + $0x10] sm:$0xff]  ;;  %v1408_v42 = vmul.f32 %v4341_v36, %v1376_v28  ;;  %v1375_v9 = vld [vmem:[#allocation4 + $0x48] sm:$0xff]  ;;  %v1786_v54 = vmul.f32 0.0, %v4576_v39 }
 0x396   : > { %1565 = vst.msk [vmem:[#allocation4 + $0x30] sm:$0xff] %vm404_vm0, %v1532_v29  ;;  %v1447_v63 = vpop.xlane.xlu1 %1446  ;;  %v1378_v29 = vld [vmem:[#allocation4 + $0x60] sm:$0xff]  ;;  %v1407_v36 = vmul.f32 %v4339_v49, %v1375_v9 }
 0x397   : > { %v2727_v7 = vpop.f32.mrb[4].mxu1  ;;  %v1531_v5 = vadd.f32 %v1447_v63, %v1403_v30  ;;  %v1456_v11 = vpop.xlane.xlu0 %1455 }
 0x398   : > { %v2155_v8 = vld [vmem:[#allocation4] sm:$0xff]  ;;  %v2728_v16 = vpop.f32.mrb[5].mxu1  ;;  %v1534_v13 = vadd.f32 %v1456_v11, %v1406_v55  ;;  %v1377_v11 = vld [vmem:[#allocation4 + $0x58] sm:$0xff] }
 0x399   : > { %3092 = vrcp.f32 %v2155_v8  ;;  %1564 = vst.msk [vmem:[#allocation4 + $0x28] sm:$0xff] %vm404_vm0, %v1531_v5  ;;  %v2729_v47 = vadd.f32 %v2728_v16, %v2727_v7  ;;  %v2730_v6 = vpop.f32.mrb[6].mxu1  ;;  %v2159_v10 = vld [vmem:[#allocation4 + $0x20] sm:$0xff]  ;;  %v1410_v5 = vmul.f32 %v4352_v4, %v1378_v29 }
 0x39a   : > { %1567 = vst.msk [vmem:[#allocation4 + $0x40] sm:$0xff] %vm404_vm0, %v1534_v13  ;;  %v2731_v22 = vpop.f32.mrb[7].mxu1  ;;  %v1453_v33 = vpop.xlane.xlu1 %1452  ;;  %3094 = vrcp.f32 %v2157_v57  ;;  %v1380_v13 = vld [vmem:[#allocation4 + $0x70] sm:$0xff] }
 0x39b   : > { %v2732_v59 = vadd.f32 %v2731_v22, %v2730_v6  ;;  %v1533_v56 = vadd.f32 %v1453_v33, %v1405_v0  ;;  %v1462_v25 = vpop.xlane.xlu0 %1461  ;;  %v4666_v30 = vadd.f32 %v2729_v47, %v1785_v60  ;;  %v1787_v6 = vmul.f32 0.0, %v4582_v41 }
 0x39c   : > { %v3091_v63 = vpop.eup %3090  ;;  %v2158_v55 = vld [vmem:[#allocation4 + $0x18] sm:$0xff]  ;;  %v1536_v7 = vadd.f32 %v1462_v25, %v1408_v42  ;;  %v1409_v33 = vmul.f32 %v4347_v20, %v1377_v11  ;;  %v1412_v9 = vmul.f32 %v4366_v61, %v1380_v13 }
 0x39d   : > { %3096 = vrcp.f32 %v2158_v55  ;;  %1566 = vst.msk [vmem:[#allocation4 + $0x38] sm:$0xff] %vm404_vm0, %v1533_v56  ;;  %2258 = vperm.xlu0 %2896, %v3091_v63   ;;  %v4670_v40 = vadd.f32 %v2732_v59, %v1786_v54  ;;  %v2161_v0 = vld [vmem:[#allocation4 + $0x30] sm:$0xff]  ;;  %v1379_v54 = vld [vmem:[#allocation4 + $0x68] sm:$0xff]  ;;  %v1788_v56 = vmul.f32 0.0, %v4580_v52  ;;  %v1382_v63 = vld [vmem:[#allocation4 + $0x80] sm:$0xff] }
 0x39e   : > { %1569 = vst.msk [vmem:[#allocation4 + $0x50] sm:$0xff] %vm404_vm0, %v1536_v7  ;;  %v1459_v39 = vpop.xlane.xlu1 %1458  ;;  %3098 = vrcp.f32 %v2159_v10  ;;  %v1411_v61 = vmul.f32 %v4357_v43, %v1379_v54  ;;  %v1381_v11 = vld [vmem:[#allocation4 + $0x78] sm:$0xff]  ;;  %v1789_v43 = vmul.f32 0.0, %v4589_v14  ;;  %v1383_v54 = vld [vmem:[#allocation4 + $0x88] sm:$0xff] }
 0x39f   : > { %v2733_v28 = vpop.f32.mrb[8].mxu1  ;;  %v1535_v8 = vadd.f32 %v1459_v39, %v1407_v36  ;;  %v1468_v16 = vpop.xlane.xlu0 %1467 }
 0x3a0   : > { %v2160_v60 = vld [vmem:[#allocation4 + $0x28] sm:$0xff]  ;;  %v2734_v57 = vpop.f32.mrb[9].mxu1  ;;  %v1538_v47 = vadd.f32 %v1468_v16, %v1410_v5  ;;  %v1414_v5 = vmul.f32 %v4381_v3, %v1382_v63 }
 0x3a1   : > { %3100 = vrcp.f32 %v2160_v60  ;;  %1568 = vst.msk [vmem:[#allocation4 + $0x48] sm:$0xff] %vm404_vm0, %v1535_v8  ;;  %v2735_v49 = vadd.f32 %v2734_v57, %v2733_v28  ;;  %v2736_v22 = vpop.f32.mrb[10].mxu1  ;;  %v2163_v20 = vld [vmem:[#allocation4 + $0x40] sm:$0xff]  ;;  %v1384_v60 = vld [vmem:[#allocation4 + $0x90] sm:$0xff] }
 0x3a2   : > { %1571 = vst.msk [vmem:[#allocation4 + $0x60] sm:$0xff] %vm404_vm0, %v1538_v47  ;;  %v2737_v4 = vpop.f32.mrb[11].mxu1  ;;  %v1465_v42 = vpop.xlane.xlu1 %1464  ;;  %3102 = vrcp.f32 %v2161_v0 }
 0x3a3   : > { %v3093_v59 = vpop.eup %3092  ;;  %v2738_v25 = vadd.f32 %v2737_v4, %v2736_v22  ;;  %v1537_v41 = vadd.f32 %v1465_v42, %v1409_v33  ;;  %v1474_v29 = vpop.xlane.xlu0 %1473  ;;  %v4680_v55 = vadd.f32 %v2735_v49, %v1787_v6  ;;  %v1413_v22 = vmul.f32 %v4373_v37, %v1381_v11 }
 0x3a4   : > { %v2162_v7 = vld [vmem:[#allocation4 + $0x38] sm:$0xff]  ;;  %v1540_v10 = vadd.f32 %v1474_v29, %v1412_v9  ;;  %2253 = vperm.xlu1 %2897, %v3093_v59   ;;  %v3095_v39 = vpop.eup %3094  ;;  %v1416_v9 = vmul.f32 %v4398_v32, %v1384_v60  ;;  %v1386_v29 = vld [vmem:[#allocation4 + $0xa0] sm:$0xff]  ;;  %v1415_v32 = vmul.f32 %v4386_v46, %v1383_v54  ;;  %v1791_v46 = vmul.f32 0.0, %v4593_v27 }
 0x3a5   : > { %3104 = vrcp.f32 %v2162_v7  ;;  %1570 = vst.msk [vmem:[#allocation4 + $0x58] sm:$0xff] %vm404_vm0, %v1537_v41  ;;  %v4684_v36 = vadd.f32 %v2738_v25, %v1788_v56  ;;  %v2165_v0 = vld [vmem:[#allocation4 + $0x50] sm:$0xff]  ;;  %v1790_v56 = vmul.f32 0.0, %v4587_v38 }
 0x3a6   : > { %1573 = vst.msk [vmem:[#allocation4 + $0x70] sm:$0xff] %vm404_vm0, %v1540_v10  ;;  %v1471_v52 = vpop.xlane.xlu1 %1470  ;;  %3106 = vrcp.f32 %v2163_v20 }
 0x3a7   : > { %v3097_v28 = vpop.eup %3096  ;;  %v2739_v8 = vpop.f32.mrb[12].mxu1  ;;  %v1539_v16 = vadd.f32 %v1471_v52, %v1411_v61  ;;  %v1385_v52 = vld [vmem:[#allocation4 + $0x98] sm:$0xff] }
 0x3a8   : > { %v1480_v13 = vpop.xlane.xlu0 %1479  ;;  %v2164_v57 = vld [vmem:[#allocation4 + $0x48] sm:$0xff]  ;;  %v2740_v47 = vpop.f32.mrb[13].mxu1  ;;  %2263 = vperm.xlu1 %2897, %v3095_v39   ;;  %2268 = vperm.xlu0 %2896, %v3097_v28   ;;  %v1418_v39 = vmul.f32 %v4410_v45, %v1386_v29 }
 0x3a9   : > { %v1542_v6 = vadd.f32 %v1480_v13, %v1414_v5  ;;  %3108 = vrcp.f32 %v2164_v57  ;;  %1572 = vst.msk [vmem:[#allocation4 + $0x68] sm:$0xff] %vm404_vm0, %v1539_v16  ;;  %v2741_v49 = vadd.f32 %v2740_v47, %v2739_v8  ;;  %v2742_v3 = vpop.f32.mrb[14].mxu1  ;;  %v3099_v33 = vpop.eup %3098  ;;  %v2167_v10 = vld [vmem:[#allocation4 + $0x60] sm:$0xff]  ;;  %v1388_v16 = vld [vmem:[#allocation4 + $0xb0] sm:$0xff] }
 0x3aa   : > { %v2743_v4 = vpop.f32.mrb[15].mxu1  ;;  %v1477_v42 = vpop.xlane.xlu1 %1476  ;;  %3110 = vrcp.f32 %v2165_v0 }
 0x3ab   : > { %1575 = vst.msk [vmem:[#allocation4 + $0x80] sm:$0xff] %vm404_vm0, %v1542_v6  ;;  %v3101_v59 = vpop.eup %3100  ;;  %v2744_v14 = vadd.f32 %v2743_v4, %v2742_v3  ;;  %v1541_v25 = vadd.f32 %v1477_v42, %v1413_v22  ;;  %v4694_v63 = vadd.f32 %v2741_v49, %v1789_v43  ;;  %v1417_v43 = vmul.f32 %v4405_v12, %v1385_v52 }
 0x3ac   : > { %v1486_v41 = vpop.xlane.xlu0 %1485  ;;  %v2166_v7 = vld [vmem:[#allocation4 + $0x58] sm:$0xff]  ;;  %2273 = vperm.xlu1 %2897, %v3099_v33   ;;  %2278 = vperm.xlu0 %2896, %v3101_v59   ;;  %v3103_v38 = vpop.eup %3102  ;;  %v1420_v22 = vmul.f32 %v4427_v34, %v1388_v16  ;;  %v1387_v33 = vld [vmem:[#allocation4 + $0xa8] sm:$0xff]  ;;  %v1792_v42 = vmul.f32 0.0, %v4591_v44  ;;  %v1390_v59 = vld [vmem:[#allocation4 + $0xc0] sm:$0xff] }
 0x3ad   : > { %v1544_v37 = vadd.f32 %v1486_v41, %v1416_v9  ;;  %3112 = vrcp.f32 %v2166_v7  ;;  %1574 = vst.msk [vmem:[#allocation4 + $0x78] sm:$0xff] %vm404_vm0, %v1541_v25  ;;  %v4698_v20 = vadd.f32 %v2744_v14, %v1790_v56  ;;  %v2169_v47 = vld [vmem:[#allocation4 + $0x70] sm:$0xff]  ;;  %v1419_v34 = vmul.f32 %v4415_v48, %v1387_v33 }
 0x3ae   : > { %v1483_v61 = vpop.xlane.xlu1 %1482  ;;  %3114 = vrcp.f32 %v2167_v10  ;;  %v1422_v7 = vmul.f32 %v4439_v17, %v1390_v59  ;;  %v1793_v48 = vmul.f32 0.0, %v4600_v58  ;;  %v5198_v16 = vld [vmem:[#allocation73_spill] sm:$0xff] }
 0x3af   : > { %1577 = vst.msk [vmem:[#allocation4 + $0x90] sm:$0xff] %vm404_vm0, %v1544_v37  ;;  %v3105_v5 = vpop.eup %3104  ;;  %v2745_v11 = vpop.f32.mrb[16].mxu1  ;;  %v1543_v28 = vadd.f32 %v1483_v61, %v1415_v32  ;;  %v1389_v37 = vld [vmem:[#allocation4 + $0xb8] sm:$0xff] }
 0x3b0   : > { %v1492_v8 = vpop.xlane.xlu0 %1491  ;;  %v2168_v13 = vld [vmem:[#allocation4 + $0x68] sm:$0xff]  ;;  %v2746_v60 = vpop.f32.mrb[17].mxu1  ;;  %2283 = vperm.xlu1 %2897, %v3103_v38   ;;  %2288 = vperm.xlu0 %2896, %v3105_v5  }
 0x3b1   : > { %v1546_v57 = vadd.f32 %v1492_v8, %v1418_v39  ;;  %3116 = vrcp.f32 %v2168_v13  ;;  %1576 = vst.msk [vmem:[#allocation4 + $0x88] sm:$0xff] %vm404_vm0, %v1543_v28  ;;  %v2747_v6 = vadd.f32 %v2746_v60, %v2745_v11  ;;  %v2748_v45 = vpop.f32.mrb[18].mxu1  ;;  %v3107_v0 = vpop.eup %3106  ;;  %v1392_v39 = vld [vmem:[#allocation4 + $0xd0] sm:$0xff]  ;;  %v1421_v13 = vmul.f32 %v5198_v16, %v1389_v37 }
 0x3b2   : > { %v2749_v49 = vpop.f32.mrb[19].mxu1  ;;  %v1489_v3 = vpop.xlane.xlu1 %1488  ;;  %3118 = vrcp.f32 %v2169_v47  ;;  %v2171_v25 = vld [vmem:[#allocation4 + $0x80] sm:$0xff] }
 0x3b3   : > { %1579 = vst.msk [vmem:[#allocation4 + $0xa0] sm:$0xff] %vm404_vm0, %v1546_v57  ;;  %v3109_v4 = vpop.eup %3108  ;;  %v2750_v27 = vadd.f32 %v2749_v49, %v2748_v45  ;;  %v1545_v9 = vadd.f32 %v1489_v3, %v1417_v43  ;;  %v4708_v56 = vadd.f32 %v2747_v6, %v1791_v46  ;;  %v5199_v47 = vld [vmem:[#allocation79_spill] sm:$0xff]  ;;  %v1391_v45 = vld [vmem:[#allocation4 + $0xc8] sm:$0xff] }
 0x3b4   : > { %v1498_v54 = vpop.xlane.xlu0 %1497  ;;  %v2170_v14 = vld [vmem:[#allocation4 + $0x78] sm:$0xff]  ;;  %2293 = vperm.xlu1 %2897, %v3107_v0   ;;  %2298 = vperm.xlu0 %2896, %v3109_v4   ;;  %v3111_v44 = vpop.eup %3110  ;;  %v1424_v6 = vmul.f32 %v5199_v47, %v1392_v39  ;;  %v1794_v0 = vmul.f32 0.0, %v4598_v53  ;;  %v1795_v39 = vmul.f32 0.0, %v4604_v19  ;;  %v1796_v47 = vmul.f32 0.0, %v4602_v62 }
 0x3b5   : > { %v1548_v12 = vadd.f32 %v1498_v54, %v1420_v22  ;;  %3120 = vrcp.f32 %v2170_v14  ;;  %1578 = vst.msk [vmem:[#allocation4 + $0x98] sm:$0xff] %vm404_vm0, %v1545_v9  ;;  %v4712_v41 = vadd.f32 %v2750_v27, %v1792_v42  ;;  %v1394_v22 = vld [vmem:[#allocation4 + $0xe0] sm:$0xff] }
 0x3b6   : > { %v1495_v29 = vpop.xlane.xlu1 %1494  ;;  %3122 = vrcp.f32 %v2171_v25  ;;  %v2173_v28 = vld [vmem:[#allocation4 + $0x90] sm:$0xff]  ;;  %v5200_v9 = vld [vmem:[#allocation75_spill] sm:$0xff] }
 0x3b7   : > { %1581 = vst.msk [vmem:[#allocation4 + $0xb0] sm:$0xff] %vm404_vm0, %v1548_v12  ;;  %v3113_v10 = vpop.eup %3112  ;;  %v2751_v32 = vpop.f32.mrb[20].mxu1  ;;  %v1547_v38 = vadd.f32 %v1495_v29, %v1419_v34  ;;  %v1423_v54 = vmul.f32 %v5200_v9, %v1391_v45  ;;  %v5201_v12 = vld [vmem:[#allocation19_spill] sm:$0xff]  ;;  %v1393_v34 = vld [vmem:[#allocation4 + $0xd8] sm:$0xff] }
 0x3b8   : > { %v1504_v61 = vpop.xlane.xlu0 %1503  ;;  %v2172_v52 = vld [vmem:[#allocation4 + $0x88] sm:$0xff]  ;;  %v2752_v5 = vpop.f32.mrb[21].mxu1  ;;  %2303 = vperm.xlu1 %2897, %v3111_v44   ;;  %2308 = vperm.xlu0 %2896, %v3113_v10   ;;  %v1426_v25 = vmul.f32 %v5201_v12, %v1394_v22  ;;  %v1396_v10 = vld [vmem:[#allocation4 + $0xf0] sm:$0xff] }
 0x3b9   : > { %v1550_v11 = vadd.f32 %v1504_v61, %v1422_v7  ;;  %3124 = vrcp.f32 %v2172_v52  ;;  %1580 = vst.msk [vmem:[#allocation4 + $0xa8] sm:$0xff] %vm404_vm0, %v1547_v38  ;;  %v2753_v8 = vadd.f32 %v2752_v5, %v2751_v32  ;;  %v2754_v17 = vpop.f32.mrb[22].mxu1  ;;  %v3115_v60 = vpop.eup %3114 }
 0x3ba   : > { %v2755_v57 = vpop.f32.mrb[23].mxu1  ;;  %v1501_v46 = vpop.xlane.xlu1 %1500  ;;  %3126 = vrcp.f32 %v2173_v28  ;;  %v2175_v27 = vld [vmem:[#allocation4 + $0xa0] sm:$0xff] }
 0x3bb   : > { %1583 = vst.msk [vmem:[#allocation4 + $0xc0] sm:$0xff] %vm404_vm0, %v1550_v11  ;;  %v3117_v43 = vpop.eup %3116  ;;  %v2756_v58 = vadd.f32 %v2755_v57, %v2754_v17  ;;  %v1549_v49 = vadd.f32 %v1501_v46, %v1421_v13  ;;  %v4722_v33 = vadd.f32 %v2753_v8, %v1793_v48  ;;  %v5202_v48 = vld [vmem:[#allocation77_spill] sm:$0xff]  ;;  %v5203_v13 = vld [vmem:[#allocation74_spill] sm:$0xff]  ;;  %v1395_v57 = vld [vmem:[#allocation4 + $0xe8] sm:$0xff] }
 0x3bc   : > { %v1510_v3 = vpop.xlane.xlu0 %1509  ;;  %v2174_v4 = vld [vmem:[#allocation4 + $0x98] sm:$0xff]  ;;  %2313 = vperm.xlu1 %2897, %v3115_v60   ;;  %2318 = vperm.xlu0 %2896, %v3117_v43   ;;  %v3119_v53 = vpop.eup %3118  ;;  %v1425_v28 = vmul.f32 %v5202_v48, %v1393_v34  ;;  %v1428_v60 = vmul.f32 %v5203_v13, %v1396_v10 }
 0x3bd   : > { %v1552_v42 = vadd.f32 %v1510_v3, %v1424_v6  ;;  %3128 = vrcp.f32 %v2174_v4  ;;  %1582 = vst.msk [vmem:[#allocation4 + $0xb8] sm:$0xff] %vm404_vm0, %v1549_v49  ;;  %v4726_v59 = vadd.f32 %v2756_v58, %v1794_v0  ;;  %v5204_v3 = vld [vmem:[#allocation20_spill] sm:$0xff] }
 0x3be   : > { %v1507_v14 = vpop.xlane.xlu1 %1506  ;;  %3130 = vrcp.f32 %v2175_v27  ;;  %v2177_v52 = vld [vmem:[#allocation4 + $0xb0] sm:$0xff]  ;;  %v1427_v22 = vmul.f32 %v5204_v3, %v1395_v57  ;;  %v1397_v27 = vld [vmem:[#allocation4 + $0xf8] sm:$0xff] }
 0x3bf   : > { %1585 = vst.msk [vmem:[#allocation4 + $0xd0] sm:$0xff] %vm404_vm0, %v1552_v42  ;;  %v3121_v44 = vpop.eup %3120  ;;  %v2757_v29 = vpop.f32.mrb[24].mxu1  ;;  %v1551_v7 = vadd.f32 %v1507_v14, %v1423_v54 }
 0x3c0   : > { %v1516_v37 = vpop.xlane.xlu0 %1515  ;;  %v2176_v32 = vld [vmem:[#allocation4 + $0xa8] sm:$0xff]  ;;  %v2758_v38 = vpop.f32.mrb[25].mxu1  ;;  %2323 = vperm.xlu1 %2897, %v3119_v53   ;;  %2328 = vperm.xlu0 %2896, %v3121_v44  }
 0x3c1   : > { %v1554_v61 = vadd.f32 %v1516_v37, %v1426_v25  ;;  %3132 = vrcp.f32 %v2176_v32  ;;  %1584 = vst.msk [vmem:[#allocation4 + $0xc8] sm:$0xff] %vm404_vm0, %v1551_v7  ;;  %v2759_v5 = vadd.f32 %v2758_v38, %v2757_v29  ;;  %v2760_v11 = vpop.f32.mrb[26].mxu1  ;;  %v3123_v8 = vpop.eup %3122  ;;  %v1797_v25 = vmul.f32 0.0, %v4608_v15 }
 0x3c2   : > { %v2761_v17 = vpop.f32.mrb[27].mxu1  ;;  %v1513_v16 = vpop.xlane.xlu1 %1512  ;;  %3134 = vrcp.f32 %v2177_v52  ;;  %v2179_v49 = vld [vmem:[#allocation4 + $0xc0] sm:$0xff]  ;;  %v1429_v7 = vmul.f32 %v4595_v26, %v1397_v27 }
 0x3c3   : > { %1587 = vst.msk [vmem:[#allocation4 + $0xe0] sm:$0xff] %vm404_vm0, %v1554_v61  ;;  %v3125_v46 = vpop.eup %3124  ;;  %v2762_v19 = vadd.f32 %v2761_v17, %v2760_v11  ;;  %v1553_v6 = vadd.f32 %v1513_v16, %v1425_v28  ;;  %v4736_v43 = vadd.f32 %v2759_v5, %v1795_v39  ;;  %v1798_v61 = vmul.f32 0.0, %v4606_v24 }
 0x3c4   : > { %v1522_v45 = vpop.xlane.xlu0 %1521  ;;  %v2178_v0 = vld [vmem:[#allocation4 + $0xb8] sm:$0xff]  ;;  %2333 = vperm.xlu1 %2897, %v3123_v8   ;;  %2338 = vperm.xlu0 %2896, %v3125_v46   ;;  %v3127_v42 = vpop.eup %3126  ;;  %v1799_v16 = vmul.f32 0.0, %v4612_v31 }
 0x3c5   : > { %v1556_v58 = vadd.f32 %v1522_v45, %v1428_v60  ;;  %3136 = vrcp.f32 %v2178_v0  ;;  %1586 = vst.msk [vmem:[#allocation4 + $0xd8] sm:$0xff] %vm404_vm0, %v1553_v6  ;;  %v4740_v4 = vadd.f32 %v2762_v19, %v1796_v47  ;;  %v1800_v6 = vmul.f32 0.0, %v4610_v51 }
 0x3c6   : > { %v1519_v62 = vpop.xlane.xlu1 %1518  ;;  %3138 = vrcp.f32 %v2179_v49  ;;  %v2181_v34 = vld [vmem:[#allocation4 + $0xd0] sm:$0xff] }
 0x3c7   : > { %1589 = vst.msk [vmem:[#allocation4 + $0xf0] sm:$0xff] %vm404_vm0, %v1556_v58  ;;  %v3129_v9 = vpop.eup %3128  ;;  %v2763_v54 = vpop.f32.mrb[28].mxu1  ;;  %v1555_v53 = vadd.f32 %v1519_v62, %v1427_v22  ;;  %v1801_v62 = vmul.f32 0.0, %v4616_v1  ;;  %v1803_v1 = vmul.f32 0.0, %v4620_v18 }
 0x3c8   : > { %v2180_v14 = vld [vmem:[#allocation4 + $0xc8] sm:$0xff]  ;;  %v2764_v12 = vpop.f32.mrb[29].mxu1  ;;  %2343 = vperm.xlu1 %2897, %v3127_v42   ;;  %2348 = vperm.xlu0 %2896, %v3129_v9   ;;  %v3131_v37 = vpop.eup %3130 }
 0x3c9   : > { %3140 = vrcp.f32 %v2180_v14  ;;  %1588 = vst.msk [vmem:[#allocation4 + $0xe8] sm:$0xff] %vm404_vm0, %v1555_v53  ;;  %v2765_v44 = vadd.f32 %v2764_v12, %v2763_v54  ;;  %v2766_v29 = vpop.f32.mrb[30].mxu1  ;;  %v1802_v14 = vmul.f32 0.0, %v4614_v2  ;;  %v1804_v2 = vmul.f32 0.0, %v4618_v35 }
 0x3ca   : > { %v2767_v10 = vpop.f32.mrb[31].mxu1  ;;  %v1525_v32 = vpop.xlane.xlu1 %1524  ;;  %3142 = vrcp.f32 %v2181_v34  ;;  %v2183_v11 = vld [vmem:[#allocation4 + $0xe0] sm:$0xff] }
 0x3cb   : > { %v3133_v38 = vpop.eup %3132  ;;  %v2768_v39 = vadd.f32 %v2767_v10, %v2766_v29  ;;  %v1557_v52 = vadd.f32 %v1525_v32, %v1429_v7  ;;  %v4747_v5 = vadd.f32 %v2765_v44, %v1797_v25 }
 0x3cc   : > { %v2182_v15 = vld [vmem:[#allocation4 + $0xd8] sm:$0xff]  ;;  %2353 = vperm.xlu1 %2897, %v3131_v37   ;;  %2358 = vperm.xlu0 %2896, %v3133_v38   ;;  %v3135_v26 = vpop.eup %3134 }
 0x3cd   : > { %3144 = vrcp.f32 %v2182_v15  ;;  %1590 = vst.msk [vmem:[#allocation4 + $0xf8] sm:$0xff] %vm404_vm0, %v1557_v52  ;;  %v4750_v48 = vadd.f32 %v2768_v39, %v1798_v61 }
 0x3ce   : > { %3146 = vrcp.f32 %v2183_v11  ;;  %v2185_v13 = vld [vmem:[#allocation4 + $0xf0] sm:$0xff] }
 0x3cf   : > { %v3137_v28 = vpop.eup %3136  ;;  %v2769_v8 = vpop.f32.mrb[32].mxu1 }
 0x3d0   : > { %v2184_v17 = vld [vmem:[#allocation4 + $0xe8] sm:$0xff]  ;;  %v2770_v24 = vpop.f32.mrb[33].mxu1  ;;  %2363 = vperm.xlu1 %2897, %v3135_v26   ;;  %2368 = vperm.xlu0 %2896, %v3137_v28   ;;  %v3139_v46 = vpop.eup %3138  ;;  %v1805_v26 = vmul.f32 0.0, %v4624_v23 }
 0x3d1   : > { %3148 = vrcp.f32 %v2184_v17  ;;  %v2771_v60 = vadd.f32 %v2770_v24, %v2769_v8  ;;  %v2772_v57 = vpop.f32.mrb[34].mxu1  ;;  %v5205_v24 = vld [vmem:[#allocation76_spill] sm:$0xff] }
 0x3d2   : > { %v2773_v47 = vpop.f32.mrb[35].mxu1  ;;  %3150 = vrcp.f32 %v2185_v13 }
 0x3d3   : > { %v3141_v19 = vpop.eup %3140  ;;  %v2774_v45 = vadd.f32 %v2773_v47, %v2772_v57  ;;  %v4754_v0 = vadd.f32 %v2771_v60, %v1799_v16  ;;  %v1806_v16 = vmul.f32 0.0, %v5205_v24  ;;  %v1781_v24 = vpop.permute.xlu0 %1780 }
 0x3d4   : > { %v2186_v58 = vld [vmem:[#allocation4 + $0xf8] sm:$0xff]  ;;  %2373 = vperm.xlu1 %2897, %v3139_v46   ;;  %2378 = vperm.xlu0 %2896, %v3141_v19   ;;  %v3143_v31 = vpop.eup %3142 }
 0x3d5   : > { %3152 = vrcp.f32 %v2186_v58  ;;  %v4756_v49 = vadd.f32 %v2774_v45, %v1800_v6  ;;  %v5206_v46 = vld [vmem:[#allocation78_spill] sm:$0xff]  ;;  %v5207_v58 = vld [vmem:[#allocation80_spill] sm:$0xff] }
 0x3d6   : > { %v1807_v47 = vmul.f32 0.0, %v5206_v46 }
 0x3d7   : > { %v3145_v3 = vpop.eup %3144  ;;  %v2775_v22 = vpop.f32.mrb[36].mxu1 }
 0x3d8   : > { %v2776_v42 = vpop.f32.mrb[37].mxu1  ;;  %2383 = vperm.xlu1 %2897, %v3143_v31   ;;  %2388 = vperm.xlu0 %2896, %v3145_v3   ;;  %v3147_v9 = vpop.eup %3146  ;;  %v1808_v31 = vmul.f32 0.0, %v5207_v58 }
 0x3d9   : > { %v2777_v27 = vadd.f32 %v2776_v42, %v2775_v22  ;;  %v2778_v51 = vpop.f32.mrb[38].mxu1 }
 0x3da   : > { %v2779_v54 = vpop.f32.mrb[39].mxu1 }
 0x3db   : > { %v3149_v53 = vpop.eup %3148  ;;  %v2780_v12 = vadd.f32 %v2779_v54, %v2778_v51  ;;  %v4760_v25 = vadd.f32 %v2777_v27, %v1801_v62  ;;  %v5208_v27 = vld [vmem:[#allocation81_spill] sm:$0xff] }
 0x3dc   : > { %2393 = vperm.xlu1 %2897, %v3147_v9   ;;  %2398 = vperm.xlu0 %2896, %v3149_v53   ;;  %v3151_v44 = vpop.eup %3150  ;;  %v1809_v51 = vmul.f32 0.0, %v5208_v27 }
 0x3dd   : > { %v4762_v34 = vadd.f32 %v2780_v12, %v1802_v14  ;;  %v5209_v14 = vld [vmem:[#allocation83_spill] sm:$0xff] }
 0x3de   : > { %v1810_v12 = vmul.f32 0.0, %v5209_v14 }
 0x3df   : > { %v3153_v29 = vpop.eup %3152  ;;  %v2781_v7 = vpop.f32.mrb[40].mxu1 }
 0x3e0   : > { %v2782_v37 = vpop.f32.mrb[41].mxu1  ;;  %2403 = vperm.xlu1 %2897, %v3151_v44   ;;  %2408 = vperm.xlu0 %2896, %v3153_v29  }
 0x3e1   : > { %v2783_v10 = vadd.f32 %v2782_v37, %v2781_v7  ;;  %v2784_v32 = vpop.f32.mrb[42].mxu1 }
 0x3e2   : > { %v2785_v38 = vpop.f32.mrb[43].mxu1 }
 0x3e3   : > { %v2786_v61 = vadd.f32 %v2785_v38, %v2784_v32  ;;  %v4766_v39 = vadd.f32 %v2783_v10, %v1803_v1  ;;  %v5210_v10 = vld [vmem:[#allocation22_spill] sm:$0xff] }
 0x3e4   : > { %v1811_v32 = vmul.f32 0.0, %v5210_v10 }
 0x3e5   : > { %v4768_v52 = vadd.f32 %v2786_v61, %v1804_v2 }
 0x3e7   : > { %v2787_v15 = vpop.f32.mrb[44].mxu1 }
 0x3e8   : > { %v2788_v11 = vpop.f32.mrb[45].mxu1 }
 0x3e9   : > { %v2789_v28 = vadd.f32 %v2788_v11, %v2787_v15  ;;  %v2790_v8 = vpop.f32.mrb[46].mxu1  ;;  %v5211_v15 = vld [vmem:[#allocation21_spill] sm:$0xff] }
 0x3ea   : > { %v2791_v17 = vpop.f32.mrb[47].mxu1  ;;  %v1812_v11 = vmul.f32 0.0, %v5211_v15 }
 0x3eb   : > { %v2792_v18 = vadd.f32 %v2791_v17, %v2790_v8  ;;  %v4772_v13 = vadd.f32 %v2789_v28, %v1805_v26 }
 0x3ed   : > { %v4774_v60 = vadd.f32 %v2792_v18, %v1806_v16  ;;  %v5212_v18 = vld [vmem:[#allocation84_spill] sm:$0xff] }
 0x3ef   : > { %v2793_v35 = vpop.f32.mrb[48].mxu1 }
 0x3f0   : > { %v2794_v57 = vpop.f32.mrb[49].mxu1 }
 0x3f1   : > { %v2795_v19 = vadd.f32 %v2794_v57, %v2793_v35  ;;  %v2796_v6 = vpop.f32.mrb[50].mxu1  ;;  %v1813_v35 = vmul.f32 0.0, %v5212_v18 }
 0x3f2   : > { %v2797_v45 = vpop.f32.mrb[51].mxu1 }
 0x3f3   : > { %v2798_v23 = vadd.f32 %v2797_v45, %v2796_v6  ;;  %v4778_v3 = vadd.f32 %v2795_v19, %v1807_v47  ;;  %v1814_v19 = vmul.f32 0.0, %v1781_v24 }
 0x3f5   : > { %v4780_v22 = vadd.f32 %v2798_v23, %v1808_v31 }
 0x3f7   : > { %v2799_v42 = vpop.f32.mrb[52].mxu1 }
 0x3f8   : > { %v2800_v62 = vpop.f32.mrb[53].mxu1 }
 0x3f9   : > { %v2801_v9 = vadd.f32 %v2800_v62, %v2799_v42  ;;  %v2802_v54 = vpop.f32.mrb[54].mxu1 }
 0x3fa   : > { %v2803_v53 = vpop.f32.mrb[55].mxu1 }
 0x3fb   : > { %v2804_v44 = vadd.f32 %v2803_v53, %v2802_v54  ;;  %v4784_v29 = vadd.f32 %v2801_v9, %v1809_v51 }
 0x3fd   : > { %v4786_v7 = vadd.f32 %v2804_v44, %v1810_v12 }
 0x3ff   : > { %v2805_v37 = vpop.f32.mrb[56].mxu1 }
 0x400   : > { %v2806_v1 = vpop.f32.mrb[57].mxu1 }
 0x401   : > { %v2807_v38 = vadd.f32 %v2806_v1, %v2805_v37  ;;  %v2808_v2 = vpop.f32.mrb[58].mxu1 }
 0x402   : > { %v2809_v61 = vpop.f32.mrb[59].mxu1 }
 0x403   : > { %v2810_v26 = vadd.f32 %v2809_v61, %v2808_v2  ;;  %v4790_v28 = vadd.f32 %v2807_v38, %v1811_v32 }
 0x405   : > { %v4792_v8 = vadd.f32 %v2810_v26, %v1812_v11 }
 0x407   : > { %v2811_v17 = vpop.f32.mrb[60].mxu1 }
 0x408   : > { %v2812_v16 = vpop.f32.mrb[61].mxu1 }
 0x409   : > { %v2813_v57 = vadd.f32 %v2812_v16, %v2811_v17  ;;  %v2814_v46 = vpop.f32.mrb[62].mxu1 }
 0x40a   : > { %v2815_v47 = vpop.f32.mrb[63].mxu1 }
 0x40b   : > { %v2816_v6 = vadd.f32 %v2815_v47, %v2814_v46  ;;  %v4795_v45 = vadd.f32 %v2813_v57, %v1813_v35 }
 0x40d   : > { %v4797_v58 = vadd.f32 %v2816_v6, %v1814_v19 }
 0x41c   : > { %v2259_v31 = vpop.permute.xlu0 %2258 }
 0x41d   : > { %v2412_v23 = vmul.f32 %v2259_v31, %v4656_v50 }
 0x41f   : > { %2444 = vst [vmem:[%s4801_s24 + $0x8] sm:$0xff] %v2412_v23 }
 0x423   : > { %v2254_v42 = vpop.permute.xlu1 %2253 }
 0x424   : > { %v2411_v62 = vmul.f32 %v2254_v42, %v4652_v21 }
 0x426   : > { %2443 = vst [vmem:[%s4801_s24] sm:$0xff] %v2411_v62 }
 0x427   : > { %v2269_v27 = vpop.permute.xlu0 %2268  ;;  %v2264_v51 = vpop.permute.xlu1 %2263 }
 0x428   : > { %v2414_v9 = vmul.f32 %v2269_v27, %v4670_v40  ;;  %v2413_v50 = vmul.f32 %v2264_v51, %v4666_v30 }
 0x42a   : > { %2446 = vst [vmem:[%s4801_s24 + $0x18] sm:$0xff] %v2414_v9  ;;  %2445 = vst [vmem:[%s4801_s24 + $0x10] sm:$0xff] %v2413_v50 }
 0x42b   : > { %v2279_v54 = vpop.permute.xlu0 %2278  ;;  %v2274_v53 = vpop.permute.xlu1 %2273 }
 0x42c   : > { %v2416_v14 = vmul.f32 %v2279_v54, %v4684_v36  ;;  %v2415_v12 = vmul.f32 %v2274_v53, %v4680_v55 }
 0x42e   : > { %2448 = vst [vmem:[%s4801_s24 + $0x28] sm:$0xff] %v2416_v14  ;;  %2447 = vst [vmem:[%s4801_s24 + $0x20] sm:$0xff] %v2415_v12 }
 0x42f   : > { %v2289_v21 = vpop.permute.xlu0 %2288  ;;  %v2284_v44 = vpop.permute.xlu1 %2283 }
 0x430   : > { %v2418_v40 = vmul.f32 %v2289_v21, %v4698_v20  ;;  %v2417_v30 = vmul.f32 %v2284_v44, %v4694_v63 }
 0x432   : > { %2450 = vst [vmem:[%s4801_s24 + $0x38] sm:$0xff] %v2418_v40  ;;  %2449 = vst [vmem:[%s4801_s24 + $0x30] sm:$0xff] %v2417_v30 }
 0x433   : > { %v2299_v37 = vpop.permute.xlu0 %2298  ;;  %v2294_v1 = vpop.permute.xlu1 %2293 }
 0x434   : > { %v2420_v36 = vmul.f32 %v2299_v37, %v4712_v41  ;;  %v2419_v55 = vmul.f32 %v2294_v1, %v4708_v56 }
 0x436   : > { %2452 = vst [vmem:[%s4801_s24 + $0x48] sm:$0xff] %v2420_v36  ;;  %2451 = vst [vmem:[%s4801_s24 + $0x40] sm:$0xff] %v2419_v55 }
 0x437   : > { %v2309_v10 = vpop.permute.xlu0 %2308  ;;  %v2304_v32 = vpop.permute.xlu1 %2303 }
 0x438   : > { %v2422_v20 = vmul.f32 %v2309_v10, %v4726_v59  ;;  %v2421_v63 = vmul.f32 %v2304_v32, %v4722_v33 }
 0x43a   : > { %2454 = vst [vmem:[%s4801_s24 + $0x58] sm:$0xff] %v2422_v20  ;;  %2453 = vst [vmem:[%s4801_s24 + $0x50] sm:$0xff] %v2421_v63 }
 0x43b   : > { %v2319_v38 = vpop.permute.xlu0 %2318  ;;  %v2314_v2 = vpop.permute.xlu1 %2313 }
 0x43c   : > { %v2424_v41 = vmul.f32 %v2319_v38, %v4740_v4  ;;  %v2423_v56 = vmul.f32 %v2314_v2, %v4736_v43 }
 0x43e   : > { %2456 = vst [vmem:[%s4801_s24 + $0x68] sm:$0xff] %v2424_v41  ;;  %2455 = vst [vmem:[%s4801_s24 + $0x60] sm:$0xff] %v2423_v56 }
 0x43f   : > { %v2329_v61 = vpop.permute.xlu0 %2328  ;;  %v2324_v15 = vpop.permute.xlu1 %2323 }
 0x440   : > { %v2426_v59 = vmul.f32 %v2329_v61, %v4750_v48  ;;  %v2425_v33 = vmul.f32 %v2324_v15, %v4747_v5 }
 0x442   : > { %2458 = vst [vmem:[%s4801_s24 + $0x78] sm:$0xff] %v2426_v59  ;;  %2457 = vst [vmem:[%s4801_s24 + $0x70] sm:$0xff] %v2425_v33 }
 0x443   : > { %v2339_v11 = vpop.permute.xlu0 %2338  ;;  %v2334_v26 = vpop.permute.xlu1 %2333 }
 0x444   : > { %v2428_v4 = vmul.f32 %v2339_v11, %v4756_v49  ;;  %v2427_v43 = vmul.f32 %v2334_v26, %v4754_v0 }
 0x446   : > { %2460 = vst [vmem:[%s4801_s24 + $0x88] sm:$0xff] %v2428_v4  ;;  %2459 = vst [vmem:[%s4801_s24 + $0x80] sm:$0xff] %v2427_v43 }
 0x447   : > { %v2349_v17 = vpop.permute.xlu0 %2348  ;;  %v2344_v24 = vpop.permute.xlu1 %2343 }
 0x448   : > { %v2430_v48 = vmul.f32 %v2349_v17, %v4762_v34  ;;  %v2429_v5 = vmul.f32 %v2344_v24, %v4760_v25 }
 0x44a   : > { %2462 = vst [vmem:[%s4801_s24 + $0x98] sm:$0xff] %v2430_v48  ;;  %2461 = vst [vmem:[%s4801_s24 + $0x90] sm:$0xff] %v2429_v5 }
 0x44b   : > { %v2359_v16 = vpop.permute.xlu0 %2358  ;;  %v2354_v18 = vpop.permute.xlu1 %2353 }
 0x44c   : > { %v2432_v49 = vmul.f32 %v2359_v16, %v4768_v52  ;;  %v2431_v0 = vmul.f32 %v2354_v18, %v4766_v39 }
 0x44e   : > { %2464 = vst [vmem:[%s4801_s24 + $0xa8] sm:$0xff] %v2432_v49  ;;  %2463 = vst [vmem:[%s4801_s24 + $0xa0] sm:$0xff] %v2431_v0 }
 0x44f   : > { %v2369_v35 = vpop.permute.xlu0 %2368  ;;  %v2364_v57 = vpop.permute.xlu1 %2363 }
 0x450   : > { %v2434_v34 = vmul.f32 %v2369_v35, %v4774_v60  ;;  %v2433_v25 = vmul.f32 %v2364_v57, %v4772_v13 }
 0x452   : > { %2466 = vst [vmem:[%s4801_s24 + $0xb8] sm:$0xff] %v2434_v34  ;;  %2465 = vst [vmem:[%s4801_s24 + $0xb0] sm:$0xff] %v2433_v25 }
 0x453   : > { %v2379_v46 = vpop.permute.xlu0 %2378  ;;  %v2374_v47 = vpop.permute.xlu1 %2373 }
 0x454   : > { %v2436_v52 = vmul.f32 %v2379_v46, %v4780_v22  ;;  %v2435_v39 = vmul.f32 %v2374_v47, %v4778_v3 }
 0x456   : > { %2468 = vst [vmem:[%s4801_s24 + $0xc8] sm:$0xff] %v2436_v52  ;;  %2467 = vst [vmem:[%s4801_s24 + $0xc0] sm:$0xff] %v2435_v39 }
 0x457   : > { %v2389_v19 = vpop.permute.xlu0 %2388  ;;  %v2384_v6 = vpop.permute.xlu1 %2383 }
 0x458   : > { %v2438_v60 = vmul.f32 %v2389_v19, %v4786_v7  ;;  %v2437_v13 = vmul.f32 %v2384_v6, %v4784_v29 }
 0x45a   : > { %2470 = vst [vmem:[%s4801_s24 + $0xd8] sm:$0xff] %v2438_v60  ;;  %2469 = vst [vmem:[%s4801_s24 + $0xd0] sm:$0xff] %v2437_v13 }
 0x45b   : > { %v2399_v31 = vpop.permute.xlu0 %2398  ;;  %v2394_v23 = vpop.permute.xlu1 %2393 }
 0x45c   : > { %v2440_v22 = vmul.f32 %v2399_v31, %v4792_v8  ;;  %v2439_v3 = vmul.f32 %v2394_v23, %v4790_v28 }
 0x45e   : > { %2472 = vst [vmem:[%s4801_s24 + $0xe8] sm:$0xff] %v2440_v22  ;;  %2471 = vst [vmem:[%s4801_s24 + $0xe0] sm:$0xff] %v2439_v3 }
 0x45f   : > { %v2409_v42 = vpop.permute.xlu0 %2408  ;;  %v2404_v7 = vpop.permute.xlu1 %2403 }
 0x460   : > { %v2442_v29 = vmul.f32 %v2409_v42, %v4797_v58  ;;  %v2441_v28 = vmul.f32 %v2404_v7, %v4795_v45 }
 0x462   : > { %2474 = vst [vmem:[%s4801_s24 + $0xf8] sm:$0xff] %v2442_v29  ;;  %2473 = vst [vmem:[%s4801_s24 + $0xf0] sm:$0xff] %v2441_v28 }
 0x463   : > { %3257 = shalt.err (!%p3254_p12)
}
 0x464   : > { %s3258_s28 = scalar_lea.hbm %s4867_s30, 4096  ;;  %s3262_s10 = scalar_lea.hbm %s4924_s3, 32768 }
 0x465   : > { %p3259_p11 = scmp.ne.s32.totalorder %s4867_s30, %s3258_s28  ;;  %p3263_p6 = scmp.lt.u32.totalorder %s4867_s30, %s4924_s3 }
 0x466   : > { %p3264_p3 = scmp.lt.u32.totalorder %s3262_s10, %s3258_s28  ;;  %p3266_p13 = scmp.lt.u32.totalorder %s3258_s28, %s4867_s30 }
 0x467   : > { %p3260_p5 = pnand %p3259_p11, %p5213_p7 }
 0x468   : > { %p3265_p2 = por %p3264_p3, %p3263_p6 }
 0x469   : > { %p3261_p4 = pneg %p3260_p5 }
 0x46a   : > { %p3267_p8 = por %p3266_p13, %p3265_p2 }
 0x46c   : > { %p3268_p9 = pnand %p3267_p8, %p3261_p4 }
 0x46e   : > { %3271 = shalt.err (!%p3268_p9)
}
 0x46f   : > { %s3341_s11 = smov 128   ;;  %s3342_s19 = smov 8  }
 0x470   : > { %2823 = dma.vmem_to_hbm [thread:$0]  (%p5213_p7), %s4869_s20, 4096, %s4867_s30, %s2476_s15, %s3341_s11, %s3341_s11, %s3342_s19  }
 0x471 PF: > { %p2840_p0 = scmp.ge.s32.totalorder %s3330_s17, 2  ;;  %s2506_s9 = sand.u32 1, %s3310_s12  }
 0x472   : > { %p5214_p1 = scmp.ne.s32.totalorder %s5014_s27, 0  ;;  %s2507_s18 = scalar_lea.sflag [#allocation8], %s2506_s9 }
 0x474   : > { %p2836_p10 = pnand %p2840_p0, %p5214_p1 }
 0x476   : > { %3305 = dma.done.wait (!%p2836_p10), %s2507_s18, 4096  }
 0x477   : > { %3307 = vsyncadd (!%p2836_p10), %s2507_s18, 4294963200  ;;  %s22_s17 = sadd.s32 1, %s3330_s17   ;;  %s5215_s24 = sld [smem:[#allocation18_spill]] }
 0x478   : > { %p19_p12 = scmp.ge.s32.totalorder %s22_s17, 10   ;;  %s5216_s15 = sld [smem:[#allocation16_spill]] }
 0x479   : > { %s5217_s16 = sld [smem:[#allocation17_spill]]  ;;  %s5218_s12 = smov %s3314_s13 }
 0x47a   : > { %s5219_s13 = smov %s3318_s14  ;;  %21 = sbr.rel (!%p19_p12) target bundleno = 10 (0xa), region = 109 }
 0x47d   : > { %s5220_s14 = smov %s5215_s24 }
 0x481   :  { %2512 = vsyncpa [#allocation7], 1 }
 0x482   :  { %2514 = vsyncpa [#allocation7 + $0x1], 1 }
 0x483   :  { %2515 = vsyncpa [#allocation10], 1 }
 0x484   :  { %2517 = vsyncpa [#allocation10 + $0x1], 1 }
 0x485   :  { %2518 = vsyncpa [#allocation8], 1 }
 0x486   :  { %2520 = vsyncpa [#allocation8 + $0x1], 1 }

</bundles_post_ra>
